<compile_context>
chip_gen: v5e
topology: v5e:2x2
jax: 0.10.0
libtpu: 0.0.40
codegen_flags: <defaults>
</compile_context>

<pallas_src>
import jax
import jax.numpy as jnp
from jax.experimental import pallas as pl
from jax.experimental.pallas import tpu as pltpu

LANE = 128       # TPU vreg lane width
TB_UNIT = 1024   # batch-tile granularity: TB//LANE must be a multiple of 8 sublanes


def _round_up(n, m):
    return ((n + m - 1) // m) * m


def _mlp_kernel(x_ref, w1_ref, w2_ref, w3_ref, b_ref, out_ref):
    """One batch tile of the 3-layer MLP.

    x_ref  : (TB, F)         f32  streamed per batch tile
    w1_ref : (F, H1p)        cdt  VMEM-resident (constant index_map)
    w2_ref : (H1p, H2p)      cdt
    w3_ref : (1, H2p)        cdt  layer-3 weights as a row vector (single real output)
    b_ref  : (3, Hmax)       f32  row0=b1 (0-padded), row1=b2 (0-padded), row2=b3 replicated
    out_ref: (TB//128, 128)  f32  lanes-as-batch: element (t, l) = tile row t*128 + l
    """
    cdt = w1_ref.dtype
    h1p = w1_ref.shape[1]
    h2p = w2_ref.shape[1]
    tb = x_ref.shape[0]
    tbd = tb // LANE

    # Layer 1 (MXU) + bias + ReLU; f32 accumulation, bias/ReLU in f32.
    x = x_ref[...].astype(cdt)
    h1 = jnp.dot(x, w1_ref[...], preferred_element_type=jnp.float32)
    h1 = jnp.maximum(h1 + b_ref[0:1, :h1p], 0.0)

    # Layer 2 (MXU) + bias + ReLU (cast to MXU operand dtype fused right at the dot).
    h2 = jnp.dot(h1.astype(cdt), w2_ref[...], preferred_element_type=jnp.float32)
    h2 = jnp.maximum(h2 + b_ref[1:2, :h2p], 0.0)                 # (TB, H2p) f32

    # Layer 3: one real output column -> VPU multiply + XLU lane reduction instead of
    # a padded MXU matmul.  The reshape only splits the leading (sublane-major) dim
    # at a 128-row boundary, so it is layout-free, and the reduction lands the batch
    # on lanes -> lane-dense, unmasked output stores.
    w3 = w3_ref[...].astype(jnp.float32)                         # (1, H2p)
    h2r = h2.reshape(tbd, LANE, h2p)                             # (TBd, 128, H2p)
    out = jnp.sum(h2r * w3, axis=-1) + b_ref[2:3, :LANE]         # (TBd, 128)
    out_ref[...] = out.astype(out_ref.dtype)


def init_params(key, num_features, hidden1=56, hidden2=20):
    """PyTorch nn.Linear-style init; weights stored as (in, out), biases as (1, out)."""
    ks = jax.random.split(key, 6)

    def linear(kw, kb, fan_in, fan_out):
        bound = 1.0 / jnp.sqrt(jnp.float32(fan_in))
        w = jax.random.uniform(kw, (fan_in, fan_out), jnp.float32, -bound, bound)
        b = jax.random.uniform(kb, (1, fan_out), jnp.float32, -bound, bound)
        return w, b

    w1, b1 = linear(ks[0], ks[1], num_features, hidden1)
    w2, b2 = linear(ks[2], ks[3], hidden1, hidden2)
    w3, b3 = linear(ks[4], ks[5], hidden2, 1)
    return {"w1": w1, "b1": b1, "w2": w2, "b2": b2, "w3": w3, "b3": b3}


def pack_params(params, param_dtype=jnp.bfloat16):
    """Pad hidden dims to multiples of 128 lanes and pack the biases.

    * w1/w2: zero-padded columns/rows -> padded hidden units are exactly 0 after
      bias+ReLU and contribute nothing downstream (numerics unchanged).
    * w3: stored as a (1, H2p) row vector so layer 3 runs on the VPU, no padded matmul.
    * biases: (3, Hmax) f32 slab; rows 0/1 zero-padded, row 2 = output bias replicated
      across all lanes (so the kernel adds it with a plain sublane broadcast).
    * param_dtype defaults to bf16 (MXU-native on v5e/v6e/v7x); f32 accumulation and
      f32 biases are kept in-kernel.
    """
    w1 = jnp.asarray(params["w1"], jnp.float32)
    w2 = jnp.asarray(params["w2"], jnp.float32)
    w3 = jnp.asarray(params["w3"], jnp.float32)
    b1 = jnp.asarray(params["b1"], jnp.float32).reshape(-1)
    b2 = jnp.asarray(params["b2"], jnp.float32).reshape(-1)
    b3 = jnp.asarray(params["b3"], jnp.float32).reshape(-1)

    F, H1 = w1.shape
    H2 = w2.shape[1]
    assert w3.shape == (H2, 1), "MyDNN output layer must have a single unit"
    H1p, H2p = _round_up(H1, LANE), _round_up(H2, LANE)
    Hmax = max(H1p, H2p)

    w1p = jnp.zeros((F, H1p), param_dtype).at[:, :H1].set(w1.astype(param_dtype))
    w2p = jnp.zeros((H1p, H2p), param_dtype).at[:H1, :H2].set(w2.astype(param_dtype))
    w3p = jnp.zeros((1, H2p), param_dtype).at[0, :H2].set(w3[:, 0].astype(param_dtype))

    bpk = jnp.zeros((3, Hmax), jnp.float32)
    bpk = bpk.at[0, :H1].set(b1)
    bpk = bpk.at[1, :H2].set(b2)
    bpk = bpk.at[2, :].set(b3[0])          # replicate the scalar output bias

    return {"w1": w1p, "w2": w2p, "w3": w3p, "b": bpk}


def mydnn_forward(x, packed, *, tb_max=4096):
    """Forward pass: x (B, F) f32 -> (B, 1) f32, identical math to PyTorch MyDNN."""
    w1p, w2p, w3p, bpk = packed["w1"], packed["w2"], packed["w3"], packed["b"]
    B, F = x.shape
    assert w1p.shape[0] == F, "feature dim mismatch between x and packed params"
    tb_max = _round_up(max(int(tb_max), TB_UNIT), TB_UNIT)

    # Batch tiling: TB is a multiple of 1024 so the (TB//128, 128) output block obeys
    # the (8,128) sublane/lane constraint.  Force an even number of grid steps so both
    # v7x TensorCores receive tiles (harmless on v5e/v6e).  Tail rows are zero-padded
    # and their outputs discarded below.
    n_tiles = max(2, pl.cdiv(B, tb_max))
    n_tiles += n_tiles % 2
    TB = _round_up(pl.cdiv(B, n_tiles), TB_UNIT)
    B_pad = n_tiles * TB
    if B_pad != B:
        x = jnp.pad(x, ((0, B_pad - B), (0, 0)))

    TBd = TB // LANE

    out = pl.pallas_call(
        _mlp_kernel,
        out_shape=jax.ShapeDtypeStruct((B_pad // LANE, LANE), jnp.float32),
        grid=(n_tiles,),
        in_specs=[
            pl.BlockSpec((TB, F), lambda i: (i, 0)),     # x: streamed per batch tile
            pl.BlockSpec(w1p.shape, lambda i: (0, 0)),   # params: constant index_map
            pl.BlockSpec(w2p.shape, lambda i: (0, 0)),   #   -> DMA'd once, VMEM-resident
            pl.BlockSpec(w3p.shape, lambda i: (0, 0)),
            pl.BlockSpec(bpk.shape, lambda i: (0, 0)),
        ],
        # Lanes-as-batch output: array element (r, l) = batch row r*128 + l.
        out_specs=pl.BlockSpec((TBd, LANE), lambda i: (i, 0)),
        compiler_params=pltpu.CompilerParams(
            dimension_semantics=("parallel",),           # shard batch tiles across TCs
            vmem_limit_bytes=32 * 1024 * 1024,
        ),
    )(x, w1p, w2p, w3p, bpk)

    # Flatten the lanes-as-batch layout back to (B, 1) and drop the batch padding.
    return out.reshape(-1, 1)[:B]


if __name__ == "__main__":
    key = jax.random.PRNGKey(0)
    k_x, k_x2, k_p = jax.random.split(key, 3)

    batch = 8
    num_features = 32

    params = init_params(k_p, num_features, hidden1=56, hidden2=20)

    def ref_forward(xx):
        h = jnp.maximum(xx @ params["w1"] + params["b1"], 0.0)
        h = jnp.maximum(h @ params["w2"] + params["b2"], 0.0)
        return h @ params["w3"] + params["b3"]

    x = jax.random.normal(k_x, (batch, num_features), dtype=jnp.float32)

    # f32-parameter path: tight check against the pure-JAX reference.
    packed_f32 = pack_params(params, param_dtype=jnp.float32)
    out_f32 = mydnn_forward(x, packed_f32)
    jax.block_until_ready(out_f32)
    assert out_f32.shape == (batch, 1)
    assert jnp.allclose(out_f32, ref_forward(x), atol=1e-4, rtol=1e-4)

    # Default bf16-parameter path (MXU-native operands, f32 accumulation) -> looser tol.
    packed = pack_params(params)
    out_bf16 = mydnn_forward(x, packed)
    jax.block_until_ready(out_bf16)
    assert out_bf16.shape == (batch, 1)
    assert jnp.allclose(out_bf16, ref_forward(x), atol=5e-2, rtol=5e-2)

    # Multi-tile check: exercises >2 grid steps and the tail batch-padding path.
    x2 = jax.random.normal(k_x2, (3000, num_features), dtype=jnp.float32)
    out2 = mydnn_forward(x2, packed, tb_max=1024)
    jax.block_until_ready(out2)
    assert out2.shape == (3000, 1)
    assert jnp.allclose(out2, ref_forward(x2), atol=5e-2, rtol=5e-2)

    print("KERNEL_OK")
</pallas_src>

<mosaic_0001>
module attributes {stable_mosaic.version = 11 : i64} {
  func.func @_mlp_kernel(%arg0: i32, %arg1: memref<1024x32xf32, #tpu.memory_space<vmem>>, %arg2: memref<32x128xf32, #tpu.memory_space<vmem>>, %arg3: memref<128x128xf32, #tpu.memory_space<vmem>>, %arg4: memref<1x128xf32, #tpu.memory_space<vmem>>, %arg5: memref<3x128xf32, #tpu.memory_space<vmem>>, %arg6: memref<8x128xf32, #tpu.memory_space<vmem>>) attributes {dimension_semantics = [#tpu.dimension_semantics<parallel>], iteration_bounds = array<i64: 2>, scalar_prefetch = 0 : i64, scratch_operands = 0 : i64, tpu.core_type = #tpu.core_type<tc>, window_params = [{transform_indices = @transform_0, window_bounds = array<i64: 1024, 32>}, {pipeline_mode = #tpu.pipeline_mode<synchronous>, transform_indices = @transform_1, window_bounds = array<i64: 32, 128>}, {pipeline_mode = #tpu.pipeline_mode<synchronous>, transform_indices = @transform_2, window_bounds = array<i64: 128, 128>}, {pipeline_mode = #tpu.pipeline_mode<synchronous>, transform_indices = @transform_3, window_bounds = array<i64: 1, 128>}, {pipeline_mode = #tpu.pipeline_mode<synchronous>, transform_indices = @transform_4, window_bounds = array<i64: 3, 128>}, {transform_indices = @transform_5, window_bounds = array<i64: 8, 128>}]} {
    %c0 = arith.constant 0 : index
    %c0_0 = arith.constant 0 : index
    %0 = vector.load %arg1[%c0, %c0_0] : memref<1024x32xf32, #tpu.memory_space<vmem>>, vector<1024x32xf32>
    %c0_1 = arith.constant 0 : index
    %c0_2 = arith.constant 0 : index
    %1 = vector.load %arg2[%c0_1, %c0_2] : memref<32x128xf32, #tpu.memory_space<vmem>>, vector<32x128xf32>
    %cst = arith.constant dense<0.000000e+00> : vector<1024x128xf32>
    %2 = tpu.matmul %0, %1, %cst {dimension_numbers = #tpu.dot_dimension_numbers<[1], [0], [0], [1], [0, 0, 1, 1], [], []>} : vector<1024x32xf32>, vector<32x128xf32>, vector<1024x128xf32> -> vector<1024x128xf32>
    %c0_3 = arith.constant 0 : index
    %c0_4 = arith.constant 0 : index
    %3 = vector.load %arg5[%c0_3, %c0_4] : memref<3x128xf32, #tpu.memory_space<vmem>>, vector<1x128xf32>
    %4 = vector.broadcast %3 : vector<1x128xf32> to vector<1024x128xf32>
    %5 = arith.addf %2, %4 : vector<1024x128xf32>
    %cst_5 = arith.constant 0.000000e+00 : f32
    %6 = vector.broadcast %cst_5 : f32 to vector<1024x128xf32>
    %7 = arith.maximumf %5, %6 : vector<1024x128xf32>
    %c0_6 = arith.constant 0 : index
    %c0_7 = arith.constant 0 : index
    %8 = vector.load %arg3[%c0_6, %c0_7] : memref<128x128xf32, #tpu.memory_space<vmem>>, vector<128x128xf32>
    %cst_8 = arith.constant dense<0.000000e+00> : vector<1024x128xf32>
    %9 = tpu.matmul %7, %8, %cst_8 {dimension_numbers = #tpu.dot_dimension_numbers<[1], [0], [0], [1], [0, 0, 1, 1], [], []>} : vector<1024x128xf32>, vector<128x128xf32>, vector<1024x128xf32> -> vector<1024x128xf32>
    %c1 = arith.constant 1 : index
    %c0_9 = arith.constant 0 : index
    %10 = vector.load %arg5[%c1, %c0_9] : memref<3x128xf32, #tpu.memory_space<vmem>>, vector<1x128xf32>
    %11 = vector.broadcast %10 : vector<1x128xf32> to vector<1024x128xf32>
    %12 = arith.addf %9, %11 : vector<1024x128xf32>
    %cst_10 = arith.constant 0.000000e+00 : f32
    %13 = vector.broadcast %cst_10 : f32 to vector<1024x128xf32>
    %14 = arith.maximumf %12, %13 : vector<1024x128xf32>
    %c0_11 = arith.constant 0 : index
    %c0_12 = arith.constant 0 : index
    %15 = vector.load %arg4[%c0_11, %c0_12] : memref<1x128xf32, #tpu.memory_space<vmem>>, vector<1x128xf32>
    %16 = vector.shape_cast %14 : vector<1024x128xf32> to vector<8x128x128xf32>
    %17 = vector.shape_cast %15 : vector<1x128xf32> to vector<1x1x128xf32>
    %18 = vector.broadcast %17 : vector<1x1x128xf32> to vector<8x128x128xf32>
    %19 = arith.mulf %16, %18 : vector<8x128x128xf32>
    %cst_13 = arith.constant dense<0.000000e+00> : vector<8x128xf32>
    %20 = vector.multi_reduction <add>, %19, %cst_13 [2] : vector<8x128x128xf32> to vector<8x128xf32>
    %c2 = arith.constant 2 : index
    %c0_14 = arith.constant 0 : index
    %21 = vector.load %arg5[%c2, %c0_14] : memref<3x128xf32, #tpu.memory_space<vmem>>, vector<1x128xf32>
    %22 = vector.broadcast %21 : vector<1x128xf32> to vector<8x128xf32>
    %23 = arith.addf %20, %22 : vector<8x128xf32>
    %c0_15 = arith.constant 0 : index
    %c0_16 = arith.constant 0 : index
    %24 = vector.load %arg6[%c0_15, %c0_16] : memref<8x128xf32, #tpu.memory_space<vmem>>, vector<8x128xf32>
    tpu.vector_store %arg6[%c0_15, %c0_16], %23 {strides = array<i32>} : memref<8x128xf32, #tpu.memory_space<vmem>>, vector<8x128xf32>,
    return
  }
  func.func @transform_0(%arg0: i32) -> (i32, i32) {
    %c0_i32 = arith.constant 0 : i32
    %c0_i32_0 = arith.constant 0 : i32
    return %arg0, %c0_i32 : i32, i32
  }
  func.func @transform_1(%arg0: i32) -> (i32, i32) {
    %c0_i32 = arith.constant 0 : i32
    %c0_i32_0 = arith.constant 0 : i32
    %c0_i32_1 = arith.constant 0 : i32
    return %c0_i32, %c0_i32_0 : i32, i32
  }
  func.func @transform_2(%arg0: i32) -> (i32, i32) {
    %c0_i32 = arith.constant 0 : i32
    %c0_i32_0 = arith.constant 0 : i32
    %c0_i32_1 = arith.constant 0 : i32
    return %c0_i32, %c0_i32_0 : i32, i32
  }
  func.func @transform_3(%arg0: i32) -> (i32, i32) {
    %c0_i32 = arith.constant 0 : i32
    %c0_i32_0 = arith.constant 0 : i32
    %c0_i32_1 = arith.constant 0 : i32
    return %c0_i32, %c0_i32_0 : i32, i32
  }
  func.func @transform_4(%arg0: i32) -> (i32, i32) {
    %c0_i32 = arith.constant 0 : i32
    %c0_i32_0 = arith.constant 0 : i32
    %c0_i32_1 = arith.constant 0 : i32
    return %c0_i32, %c0_i32_0 : i32, i32
  }
  func.func @transform_5(%arg0: i32) -> (i32, i32) {
    %c0_i32 = arith.constant 0 : i32
    %c0_i32_0 = arith.constant 0 : i32
    return %arg0, %c0_i32 : i32, i32
  }
}

</mosaic_0001>

<bundles_post_ra>
// kernel: tpu_custom_call.1
= control target key start
LH: loop header
LB: loop body
LE: loop exit
PB: predicated region body
PF: predicated region fallthrough
CT: control target
= control target key end

     0   :  { %10 = vsyncpa [#allocation3], 0  ;;  %s5837_s0 = inlined_call_operand.vmem [shape: f32[2048,32], index: 0, kind: input, shape index: {}]   ;;  %s5838_s1 = inlined_call_operand.vmem [shape: f32[32,128], index: 1, kind: input, shape index: {}]   ;;  %s5839_s2 = inlined_call_operand.vmem [shape: f32[128,128], index: 2, kind: input, shape index: {}]   ;;  %s5840_s3 = inlined_call_operand.vmem [shape: f32[1,128], index: 3, kind: input, shape index: {}]   ;;  %s5841_s4 = inlined_call_operand.vmem [shape: f32[3,128], index: 4, kind: input, shape index: {}]   ;;  %s5842_s5 = inlined_call_operand.hbm [shape: f32[16,128], index: 5, kind: output, shape index: {}]  }
   0x1   :  { %12 = vsyncpa [#allocation3 + $0x1], 0  ;;  %s3675_s18 = smov 0   ;;  %s3677_s19 = smov 0  }
   0x2   :  { %s3679_s20 = smov 0   ;;  %s3681_s21 = smov 0  }
   0x3 LB: > { %s3696_s22 = sadd.s32 4294967295, %s3642_s21   ;;  %s3334_s23 = sadd.s32 4294967294, %s3642_s21   ;;  %s3642_s21 = sphi %s3681_s21, %s6019_s21   ;;  %s3638_s20 = sphi %s3679_s20, %s6018_s20   ;;  %s3634_s19 = sphi %s3677_s19, %s6017_s19   ;;  %s3630_s18 = sphi %s3675_s18, %s6016_s18  }
   0x4   : > { %s3700_s24 = sadd.s32 1, %s3642_s21   ;;  %s135_s25 = sadd.s32 1, %s3638_s20 }
   0x5   : > { %s132_s26 = ssub.s32 %s3642_s21, %s3700_s24  ;;  %p145_p0 = scmp.ne.s32.totalorder %s3638_s20, %s3634_s19 }
   0x6   : > { %p133_p1 = scmp.eq.s32.totalorder %s132_s26, 0  ;;  %p146_p2 = scmp.eq.s32.totalorder %s3696_s22, 1 }
   0x7   : > { %p151_p3 = scmp.ne.s32.totalorder %s3634_s19, %s3630_s18  ;;  %p152_p4 = scmp.eq.s32.totalorder %s3334_s23, 1 }
   0x8   : > { %s3711_s27 = scalar_select %p133_p1, %s3638_s20, %s135_s25  }
   0x9   : > { %p3713_p5 = por %p146_p2, %p145_p0  ;;  %p3717_p6 = por %p152_p4, %p151_p3 }
   0xa   : > { %p3337_p7 = scmp.ge.s32.totalorder %s3642_s21, 1  ;;  %p191_p8 = scmp.lt.s32.totalorder %s3642_s21, 3 }
   0xc   : > { %p192_p9 = pnand %p3337_p7, %p191_p8 }
   0xe   : > { %195 = sbr.rel (%p192_p9) target bundleno = 3128 (0xc38), region = 40 }
  0x13   : > { %v356_v0 = vld [vmem:[%s5838_s1 + $0x18] sm:$0xff]  ;;  %v355_v1 = vld [vmem:[%s5838_s1 + $0x10] sm:$0xff]  ;;  %s3339_s9 = sshll.u32 %s3696_s22, 7  ;;  %v354_v2 = vld [vmem:[%s5838_s1 + $0x8] sm:$0xff]  ;;  %vm359_vm0 = vcmask 261120   ;;  %v5843_v35 = vlaneseq  ;;  %vm2968_vm1 = vcmask 130112  }
  0x14   : > { %756 = vmatpush.msra.mxu0 %v356_v0  ;;  %p220_p10 = scmp.lt.s32.totalorder %s3339_s9, 255  ;;  %3473 = vmatpush.msra.mxu3 %v356_v0  ;;  %v353_v3 = vld [vmem:[%s5838_s1] sm:$0xff]  ;;  %v1288_v13 = vld [vmem:[%s5839_s2 + $0x78] sm:$0xff]  ;;  %v1287_v14 = vld [vmem:[%s5839_s2 + $0x70] sm:$0xff]  ;;  %vm2972_vm2 = vcmask 195712   ;;  %vm2976_vm3 = vcmask 261312  }
  0x15   : > { %1291 = vmatpush.msra.mxu1 %v1288_v13  ;;  %3477 = vmatpush.msra.mxu2 %v1288_v13  ;;  %v1286_v15 = vld [vmem:[%s5839_s2 + $0x68] sm:$0xff]  ;;  %v1285_v17 = vld [vmem:[%s5839_s2 + $0x60] sm:$0xff]  ;;  %v1284_v18 = vld [vmem:[%s5839_s2 + $0x58] sm:$0xff]  ;;  %v3820_v36 = vshrl.u32 %v5843_v35, 7  ;;  %vm2980_vm4 = vcmask 326912   ;;  %vm2984_vm5 = vcmask 392512  }
  0x16   : > { %757 = vmatpush.msra.mxu0 %v355_v1  ;;  %s6021_s9 = smov (!%p220_p10, %s3339_s9), 255  ;;  %3474 = vmatpush.msra.mxu3 %v355_v1  ;;  %v1283_v19 = vld [vmem:[%s5839_s2 + $0x50] sm:$0xff]  ;;  %v1282_v20 = vld [vmem:[%s5839_s2 + $0x48] sm:$0xff]  ;;  %v1281_v22 = vld [vmem:[%s5839_s2 + $0x40] sm:$0xff]  ;;  %vm2988_vm6 = vcmask 458112   ;;  %vm2992_vm7 = vcmask 523712  }
  0x17   : > { %s3340_s14 = sshll.u32 %s6021_s9, 3  ;;  %1292 = vmatpush.msra.mxu1 %v1287_v14  ;;  %3479 = vmatpush.msra.mxu2 %v1287_v14  ;;  %v1280_v23 = vld [vmem:[%s5839_s2 + $0x38] sm:$0xff]  ;;  %v1279_v24 = vld [vmem:[%s5839_s2 + $0x30] sm:$0xff]  ;;  %v1278_v25 = vld [vmem:[%s5839_s2 + $0x28] sm:$0xff]  ;;  %v2225_v37 = vadd.s32 16, %v3820_v36  ;;  %v2243_v45 = vadd.s32 40, %v3820_v36 }
  0x18   : > { %758 = vmatpush.msra.mxu0 %v354_v2  ;;  %3475 = vmatpush.msra.mxu3 %v354_v2  ;;  %s3739_s17 = scalar_lea.vmem %s5837_s0, %s3340_s14  ;;  %v1277_v27 = vld [vmem:[%s5839_s2 + $0x20] sm:$0xff]  ;;  %v1276_v28 = vld [vmem:[%s5839_s2 + $0x18] sm:$0xff]  ;;  %v1275_v29 = vld [vmem:[%s5839_s2 + $0x10] sm:$0xff]  ;;  %v2231_v46 = vadd.s32 24, %v3820_v36  ;;  %v2219_v55 = vadd.s32 8, %v3820_v36  ;;  %v2255_v56 = vadd.s32 56, %v3820_v36 }
  0x19   : > { %v225_v4 = vld [vmem:[%s3739_s17] sm:$0xff]  ;;  %v226_v5 = vld [vmem:[%s3739_s17 + $0x8] sm:$0xff]  ;;  %v227_v6 = vld [vmem:[%s3739_s17 + $0x10] sm:$0xff]  ;;  %1293 = vmatpush.msra.mxu1 %v1286_v15  ;;  %3481 = vmatpush.msra.mxu2 %v1286_v15  ;;  %v2237_v57 = vadd.s32 32, %v3820_v36  ;;  %v2273_v2 = vadd.s32 80, %v3820_v36  ;;  %vm2996_vm8 = vcmask 589312  }
  0x1a   : > { %759 = vmatpush.msra.mxu0 %v353_v3  ;;  %3476 = vmatpush.msra.mxu3 %v353_v3  ;;  %v228_v7 = vld [vmem:[%s3739_s17 + $0x18] sm:$0xff]  ;;  %v229_v8 = vld [vmem:[%s3739_s17 + $0x20] sm:$0xff]  ;;  %v230_v9 = vld [vmem:[%s3739_s17 + $0x28] sm:$0xff]  ;;  %v2261_v3 = vadd.s32 64, %v3820_v36  ;;  %vm3000_vm9 = vcmask 654912   ;;  %vm3004_vm10 = vcmask 720512  }
  0x1b   : > { %3341 = vmatmul.msk.f32.vlgmr.msra.gmra.mxu0 %vm359_vm0, %v225_v4  ;;  %v231_v10 = vld [vmem:[%s3739_s17 + $0x30] sm:$0xff]  ;;  %v232_v11 = vld [vmem:[%s3739_s17 + $0x38] sm:$0xff]  ;;  %v233_v12 = vld [vmem:[%s3739_s17 + $0x40] sm:$0xff]  ;;  %1294 = vmatpush.msra.mxu1 %v1285_v17  ;;  %v2249_v4 = vadd.s32 48, %v3820_v36  ;;  %vm5868_vm11 = vcmask 786112   ;;  %vm3012_vm12 = vcmask 851712  }
  0x1c   : > { %3478 = vmatpush.msrb.mxu3 %v1288_v13  ;;  %v234_v16 = vld [vmem:[%s3739_s17 + $0x48] sm:$0xff]  ;;  %3483 = vmatpush.msra.mxu2 %v1285_v17  ;;  %v235_v21 = vld [vmem:[%s3739_s17 + $0x50] sm:$0xff]  ;;  %v236_v26 = vld [vmem:[%s3739_s17 + $0x58] sm:$0xff]  ;;  %v2291_v13 = vadd.s32 104, %v3820_v36  ;;  %vm3016_vm13 = vcmask 917312   ;;  %vm3020_vm14 = vcmask 982912  }
  0x1d   : > { %1295 = vmatpush.msra.mxu1 %v1284_v18  ;;  %v237_v30 = vld [vmem:[%s3739_s17 + $0x60] sm:$0xff]  ;;  %v1274_v31 = vld [vmem:[%s5839_s2 + $0x8] sm:$0xff]  ;;  %v239_v34 = vld [vmem:[%s3739_s17 + $0x70] sm:$0xff]  ;;  %3549 = vset.pattern.permute.xlu2 %v3820_v36  ;;  %vm3024_vm15 = vcmask 1048512   ;;  %s216_s12 = sand.u32 1, %s3634_s19   ;;  %s3470_s14 = sshll.u32 %s3696_s22, 3 }
  0x1e   : > { %3480 = vmatpush.msrb.mxu3 %v1287_v14  ;;  %3485 = vmatpush.msra.mxu2 %v1284_v18  ;;  %v1273_v32 = vld [vmem:[%s5839_s2] sm:$0xff]  ;;  %v238_v33 = vld [vmem:[%s3739_s17 + $0x68] sm:$0xff]  ;;  %v240_v38 = vld [vmem:[%s3739_s17 + $0x78] sm:$0xff]  ;;  %v2267_v14 = vadd.s32 72, %v3820_v36  ;;  %s3338_s13 = sshll.u32 %s216_s12, 3  ;;  %s3270_s23 = scalar_lea.hbm %s5842_s5, %s3470_s14 }
  0x1f   : > { %1296 = vmatpush.msra.mxu1 %v1283_v19  ;;  %3551 = vset.pattern.permute.xlu1 %v2225_v37  ;;  %v3829_v39 = vld [vmem:[%s5841_s4] ss:$0 sm:$0xff]  ;;  %v3834_v40 = vld [vmem:[%s5841_s4 + $0x2] ss:$0 sm:$0xff]  ;;  %v242_v48 = vld [vmem:[%s3739_s17 + $0x88] sm:$0xff]  ;;  %s218_s25 = scalar_lea.vmem [#allocation2], %s3338_s13 }
  0x20   : > { %3482 = vmatpush.msrb.mxu3 %v1286_v15  ;;  %3487 = vmatpush.msra.mxu2 %v1283_v19  ;;  %v241_v42 = vld [vmem:[%s3739_s17 + $0x80] sm:$0xff]  ;;  %v243_v52 = vld [vmem:[%s3739_s17 + $0x90] sm:$0xff]  ;;  %v244_v59 = vld [vmem:[%s3739_s17 + $0x98] sm:$0xff]  ;;  %s3272_s26 = sshll.u32 %s218_s25, 4  ;;  %s3274_s22 = sshll.u32 %s3270_s23, 4  ;;  %s3273_s26 = int_to_ptr.vmem [resolvable:$true] %s3272_s26  ;;  %s3275_s22 = int_to_ptr.hbm [resolvable:$true] %s3274_s22 }
  0x21   : > { %1297 = vmatpush.msra.mxu1 %v1282_v20  ;;  %3550 = vset.pattern.permute.xlu0 %v2219_v55  ;;  %v245_v63 = vld [vmem:[%s3739_s17 + $0xa0] sm:$0xff]  ;;  %s3594_s30 = sshra.s32 %s3275_s22, 4  ;;  %s3600_s9 = scalar_lea.hbm %s5842_s5, 16  ;;  %s3595_s30 = int_to_ptr.hbm [resolvable:$true] %s3594_s30 }
  0x22   : > { %3484 = vmatpush.msrb.mxu3 %v1285_v17  ;;  %3489 = vmatpush.msra.mxu2 %v1282_v20  ;;  %v249_v37 = vld [vmem:[%s3739_s17 + $0xc0] sm:$0xff]  ;;  %s3596_s6 = scalar_lea.hbm %s3595_s30, 8  ;;  %p3601_p0 = scmp.lt.s32.totalorder %s3595_s30, %s5842_s5 }
  0x23   : > { %3342 = vmatmul.msk.f32.gmra.mxu0 %vm359_vm0, %v226_v5  ;;  %1298 = vmatpush.msra.mxu1 %v1281_v22  ;;  %v3910_v55 = vld [vmem:[%s5840_s3] ss:$0 sm:$0xff]  ;;  %p3597_p11 = scmp.ne.s32.totalorder %s3595_s30, %s3596_s6  ;;  %p3602_p1 = scmp.lt.s32.totalorder %s3600_s9, %s3596_s6 }
  0x24   : > { %3486 = vmatpush.msrb.mxu3 %v1284_v18  ;;  %3491 = vmatpush.msra.mxu2 %v1281_v22 }
  0x25   : > { %1299 = vmatpush.msra.mxu1 %v1280_v23  ;;  %2215 = vperm.xlu2 %3549, %v3834_v40   ;;  %p3598_p12 = pnand %p3597_p11, %p3713_p5  ;;  %p3603_p2 = por %p3602_p1, %p3601_p0 }
  0x26   : > { %3488 = vmatpush.msrb.mxu3 %v1283_v19  ;;  %3493 = vmatpush.msra.mxu2 %v1280_v23 }
  0x27   : > { %1300 = vmatpush.msra.mxu1 %v1279_v24  ;;  %2227 = vperm.xlu1 %3551, %v3834_v40   ;;  %p3599_p13 = pneg %p3598_p12 }
  0x28   : > { %3490 = vmatpush.msrb.mxu3 %v1282_v20  ;;  %3495 = vmatpush.msra.mxu2 %v1279_v24 }
  0x29   : > { %1301 = vmatpush.msra.mxu1 %v1278_v25  ;;  %2221 = vperm.xlu0 %3550, %v3834_v40   ;;  %p3604_p3 = pnand %p3603_p2, %p3599_p13 }
  0x2a   : > { %3492 = vmatpush.msrb.mxu3 %v1281_v22  ;;  %3497 = vmatpush.msra.mxu2 %v1278_v25  ;;  %v2279_v22 = vadd.s32 88, %v3820_v36 }
  0x2b   : > { %3343 = vmatmul.msk.f32.gmra.mxu0 %vm359_vm0, %v227_v6  ;;  %1302 = vmatpush.msra.mxu1 %v1277_v27  ;;  %v246_v6 = vld [vmem:[%s3739_s17 + $0xa8] sm:$0xff] }
  0x2c   : > { %3494 = vmatpush.msrb.mxu3 %v1280_v23  ;;  %3499 = vmatpush.msra.mxu2 %v1277_v27 }
  0x2d   : > { %1303 = vmatpush.msra.mxu1 %v1276_v28  ;;  %3552 = vset.pattern.permute.xlu2 %v2231_v46 }
  0x2e   : > { %3496 = vmatpush.msrb.mxu3 %v1279_v24  ;;  %3501 = vmatpush.msra.mxu2 %v1276_v28 }
  0x2f   : > { %1304 = vmatpush.msra.mxu1 %v1275_v29  ;;  %3554 = vset.pattern.permute.xlu1 %v2243_v45 }
  0x30   : > { %3498 = vmatpush.msrb.mxu3 %v1278_v25  ;;  %3503 = vmatpush.msra.mxu2 %v1275_v29 }
  0x31   : > { %1305 = vmatpush.msra.mxu1 %v1274_v31  ;;  %3557 = vset.pattern.permute.xlu0 %v2261_v3 }
  0x32   : > { %3500 = vmatpush.msrb.mxu3 %v1277_v27  ;;  %3505 = vmatpush.msra.mxu2 %v1274_v31 }
  0x33   : > { %3344 = vmatmul.msk.f32.gmra.mxu0 %vm359_vm0, %v228_v7  ;;  %1306 = vmatpush.msra.mxu1 %v1273_v32 }
  0x34   : > { %3502 = vmatpush.msrb.mxu3 %v1276_v28  ;;  %3507 = vmatpush.msra.mxu2 %v1273_v32 }
  0x35   : > { %2233 = vperm.xlu2 %3552, %v3834_v40  }
  0x36   : > { %3504 = vmatpush.msrb.mxu3 %v1275_v29 }
  0x37   : > { %2245 = vperm.xlu1 %3554, %v3834_v40  }
  0x38   : > { %3506 = vmatpush.msrb.mxu3 %v1274_v31  ;;  %v2297_v31 = vadd.s32 112, %v3820_v36 }
  0x39   : > { %2263 = vperm.xlu0 %3557, %v3834_v40  }
  0x3a   : > { %3508 = vmatpush.msrb.mxu3 %v1273_v32 }
  0x3b   : > { %3345 = vmatmul.msk.f32.gmra.mxu0 %vm359_vm0, %v229_v8 }
  0x3d   : > { %3553 = vset.pattern.permute.xlu2 %v2237_v57 }
  0x3f   : > { %3556 = vset.pattern.permute.xlu1 %v2255_v56 }
  0x41   : > { %3562 = vset.pattern.permute.xlu0 %v2291_v13 }
  0x43   : > { %3346 = vmatmul.msk.f32.gmra.mxu0 %vm359_vm0, %v230_v9 }
  0x45   : > { %2239 = vperm.xlu2 %3553, %v3834_v40  }
  0x47   : > { %2257 = vperm.xlu1 %3556, %v3834_v40  }
  0x49   : > { %2293 = vperm.xlu0 %3562, %v3834_v40  }
  0x4b   : > { %3347 = vmatmul.msk.f32.gmra.mxu0 %vm359_vm0, %v231_v10 }
  0x4d   : > { %3555 = vset.pattern.permute.xlu2 %v2249_v4 }
  0x4f   : > { %3559 = vset.pattern.permute.xlu1 %v2273_v2 }
  0x53   : > { %3348 = vmatmul.msk.f32.gmra.mxu0 %vm359_vm0, %v232_v11 }
  0x55   : > { %2251 = vperm.xlu2 %3555, %v3834_v40  }
  0x57   : > { %2275 = vperm.xlu1 %3559, %v3834_v40  }
  0x5b   : > { %3349 = vmatmul.msk.f32.gmra.mxu0 %vm359_vm0, %v233_v12  ;;  %v2285_v12 = vadd.s32 96, %v3820_v36 }
  0x5d   : > { %3558 = vset.pattern.permute.xlu2 %v2267_v14 }
  0x5f   : > { %3561 = vset.pattern.permute.xlu1 %v2285_v12 }
  0x63   : > { %3350 = vmatmul.msk.f32.gmra.mxu0 %vm359_vm0, %v234_v16 }
  0x65   : > { %2269 = vperm.xlu2 %3558, %v3834_v40  }
  0x67   : > { %2287 = vperm.xlu1 %3561, %v3834_v40  }
  0x6b   : > { %3351 = vmatmul.msk.f32.gmra.mxu0 %vm359_vm0, %v235_v21  ;;  %v2303_v21 = vadd.s32 120, %v3820_v36 }
  0x6d   : > { %3560 = vset.pattern.permute.xlu2 %v2279_v22 }
  0x6f   : > { %3564 = vset.pattern.permute.xlu1 %v2303_v21 }
  0x73   : > { %3352 = vmatmul.msk.f32.gmra.mxu0 %vm359_vm0, %v236_v26  ;;  %v247_v26 = vld [vmem:[%s3739_s17 + $0xb0] sm:$0xff] }
  0x75   : > { %2281 = vperm.xlu2 %3560, %v3834_v40  }
  0x77   : > { %2305 = vperm.xlu1 %3564, %v3834_v40  }
  0x7b   : > { %3353 = vmatmul.msk.f32.gmra.mxu0 %vm359_vm0, %v237_v30  ;;  %v248_v30 = vld [vmem:[%s3739_s17 + $0xb8] sm:$0xff] }
  0x7d   : > { %3563 = vset.pattern.permute.xlu2 %v2297_v31 }
  0x83   : > { %3354 = vmatmul.msk.f32.gmra.mxu0 %vm359_vm0, %v238_v33 }
  0x85   : > { %2299 = vperm.xlu2 %3563, %v3834_v40   ;;  %v3903_v40 = vld [vmem:[%s5841_s4 + $0x1] ss:$0 sm:$0xff] }
  0x8b   : > { %3355 = vmatmul.msk.f32.gmra.mxu0 %vm359_vm0, %v239_v34 }
  0x93   : > { %3356 = vmatmul.msk.f32.gmra.mxu0 %vm359_vm0, %v240_v38 }
  0x98   : > { %v761_v41 = vpop.f32.mrf.mxu0 }
  0x99   : > { %v762_v43 = vadd.f32 %v3829_v39, %v761_v41 }
  0x9b   : > { %v1145_v44 = vmax.f32 %v762_v43, 0.0  ;;  %3357 = vmatmul.msk.f32.gmra.mxu0 %vm359_vm0, %v241_v42 }
  0x9d   : > { %1307 = vmatmul.f32.vlgmr.msra.gmra.mxu1 %v1145_v44 }
  0xa0   : > { %v764_v47 = vpop.f32.mrf.mxu0 }
  0xa1   : > { %v765_v49 = vadd.f32 %v3829_v39, %v764_v47 }
  0xa3   : > { %v1146_v50 = vmax.f32 %v765_v49, 0.0  ;;  %3358 = vmatmul.msk.f32.gmra.mxu0 %vm359_vm0, %v242_v48 }
  0xa5   : > { %1310 = vmatmul.f32.gmra.mxu1 %v1146_v50 }
  0xa8   : > { %v767_v51 = vpop.f32.mrf.mxu0 }
  0xa9   : > { %v768_v53 = vadd.f32 %v3829_v39, %v767_v51 }
  0xab   : > { %v1147_v54 = vmax.f32 %v768_v53, 0.0  ;;  %3359 = vmatmul.msk.f32.gmra.mxu0 %vm359_vm0, %v243_v52 }
  0xad   : > { %1313 = vmatmul.f32.gmra.mxu1 %v1147_v54 }
  0xb0   : > { %v770_v58 = vpop.f32.mrf.mxu0 }
  0xb1   : > { %v771_v60 = vadd.f32 %v3829_v39, %v770_v58 }
  0xb3   : > { %v1148_v61 = vmax.f32 %v771_v60, 0.0  ;;  %3360 = vmatmul.msk.f32.gmra.mxu0 %vm359_vm0, %v244_v59 }
  0xb5   : > { %1316 = vmatmul.f32.gmra.mxu1 %v1148_v61 }
  0xb8   : > { %v773_v62 = vpop.f32.mrf.mxu0 }
  0xb9   : > { %v774_v0 = vadd.f32 %v3829_v39, %v773_v62 }
  0xbb   : > { %v1149_v1 = vmax.f32 %v774_v0, 0.0  ;;  %3361 = vmatmul.msk.f32.gmra.mxu0 %vm359_vm0, %v245_v63  ;;  %v250_v0 = vld [vmem:[%s3739_s17 + $0xc8] sm:$0xff] }
  0xbd   : > { %1319 = vmatmul.f32.gmra.mxu1 %v1149_v1 }
  0xc0   : > { %v776_v5 = vpop.f32.mrf.mxu0 }
  0xc1   : > { %v777_v7 = vadd.f32 %v3829_v39, %v776_v5 }
  0xc3   : > { %v1150_v8 = vmax.f32 %v777_v7, 0.0  ;;  %3362 = vmatmul.msk.f32.gmra.mxu0 %vm359_vm0, %v246_v6 }
  0xc5   : > { %1322 = vmatmul.f32.gmra.mxu1 %v1150_v8  ;;  %v251_v8 = vld [vmem:[%s3739_s17 + $0xd0] sm:$0xff] }
  0xc8   : > { %v779_v9 = vpop.f32.mrf.mxu0 }
  0xc9   : > { %v780_v10 = vadd.f32 %v3829_v39, %v779_v9 }
  0xcb   : > { %v1151_v11 = vmax.f32 %v780_v10, 0.0  ;;  %3363 = vmatmul.msk.f32.gmra.mxu0 %vm359_vm0, %v247_v26 }
  0xcd   : > { %1325 = vmatmul.f32.gmra.mxu1 %v1151_v11 }
  0xd0   : > { %v782_v15 = vpop.f32.mrf.mxu0 }
  0xd1   : > { %v783_v16 = vadd.f32 %v3829_v39, %v782_v15 }
  0xd3   : > { %v1152_v17 = vmax.f32 %v783_v16, 0.0  ;;  %3364 = vmatmul.msk.f32.gmra.mxu0 %vm359_vm0, %v248_v30  ;;  %v252_v16 = vld [vmem:[%s3739_s17 + $0xd8] sm:$0xff] }
  0xd5   : > { %1328 = vmatmul.f32.gmra.mxu1 %v1152_v17 }
  0xd8   : > { %v785_v18 = vpop.f32.mrf.mxu0 }
  0xd9   : > { %v786_v19 = vadd.f32 %v3829_v39, %v785_v18 }
  0xdb   : > { %v1153_v20 = vmax.f32 %v786_v19, 0.0  ;;  %3365 = vmatmul.msk.f32.gmra.mxu0 %vm359_vm0, %v249_v37 }
  0xdd   : > { %1331 = vmatmul.f32.gmra.mxu1 %v1153_v20 }
  0xe0   : > { %v788_v23 = vpop.f32.mrf.mxu0 }
  0xe1   : > { %v789_v24 = vadd.f32 %v3829_v39, %v788_v23 }
  0xe3   : > { %v1154_v25 = vmax.f32 %v789_v24, 0.0  ;;  %3366 = vmatmul.msk.f32.gmra.mxu0 %vm359_vm0, %v250_v0 }
  0xe5   : > { %1334 = vmatmul.f32.gmra.mxu1 %v1154_v25 }
  0xe8   : > { %v791_v27 = vpop.f32.mrf.mxu0 }
  0xe9   : > { %v792_v28 = vadd.f32 %v3829_v39, %v791_v27 }
  0xeb   : > { %v1155_v29 = vmax.f32 %v792_v28, 0.0  ;;  %3367 = vmatmul.msk.f32.gmra.mxu0 %vm359_vm0, %v251_v8 }
  0xed   : > { %1337 = vmatmul.f32.gmra.mxu1 %v1155_v29 }
  0xf0   : > { %v794_v32 = vpop.f32.mrf.mxu0 }
  0xf1   : > { %v795_v33 = vadd.f32 %v3829_v39, %v794_v32 }
  0xf3   : > { %v1156_v34 = vmax.f32 %v795_v33, 0.0  ;;  %3368 = vmatmul.msk.f32.gmra.mxu0 %vm359_vm0, %v252_v16 }
  0xf5   : > { %1340 = vmatmul.f32.gmra.mxu1 %v1156_v34 }
  0xf8   : > { %v797_v38 = vpop.f32.mrf.mxu0 }
  0xf9   : > { %v798_v41 = vadd.f32 %v3829_v39, %v797_v38 }
  0xfb   : > { %v1157_v42 = vmax.f32 %v798_v41, 0.0 }
  0xfd   : > { %1343 = vmatmul.f32.gmra.mxu1 %v1157_v42 }
 0x100   : > { %v800_v43 = vpop.f32.mrf.mxu0 }
 0x101   : > { %v801_v36 = vadd.f32 %v3829_v39, %v800_v43 }
 0x103   : > { %v1158_v44 = vmax.f32 %v801_v36, 0.0 }
 0x105   : > { %1346 = vmatmul.f32.gmra.mxu1 %v1158_v44 }
 0x108   : > { %v803_v45 = vpop.f32.mrf.mxu0 }
 0x109   : > { %v804_v46 = vadd.f32 %v3829_v39, %v803_v45 }
 0x10b   : > { %v1159_v47 = vmax.f32 %v804_v46, 0.0 }
 0x10d   : > { %1349 = vmatmul.f32.gmra.mxu1 %v1159_v47 }
 0x110   : > { %v806_v48 = vpop.f32.mrf.mxu0 }
 0x111   : > { %v807_v49 = vadd.f32 %v3829_v39, %v806_v48 }
 0x113   : > { %v1160_v50 = vmax.f32 %v807_v49, 0.0  ;;  %v253_v49 = vld [vmem:[%s3739_s17 + $0xe0] sm:$0xff] }
 0x114   : > { %3369 = vmatmul.msk.f32.gmra.mxu0 %vm359_vm0, %v253_v49 }
 0x115   : > { %1352 = vmatmul.f32.gmra.mxu1 %v1160_v50 }
 0x118   : > { %v809_v51 = vpop.f32.mrf.mxu0 }
 0x119   : > { %v810_v52 = vadd.f32 %v3829_v39, %v809_v51 }
 0x11a   : > { %v1308_v53 = vpop.f32.mrf.mxu1 }
 0x11b   : > { %v1309_v54 = vadd.f32 %v3903_v40, %v1308_v53  ;;  %v1161_v56 = vmax.f32 %v810_v52, 0.0 }
 0x11d   : > { %v1692_v57 = vmax.f32 %v1309_v54, 0.0  ;;  %1355 = vmatmul.f32.gmra.mxu1 %v1161_v56 }
 0x11f   : > { %v1824_v58 = vmul.f32 %v3910_v55, %v1692_v57 }
 0x120   : > { %v812_v59 = vpop.f32.mrf.mxu0 }
 0x121   : > { %1952 = vadd.xlane.f32.xlu0 %v1824_v58  ;;  %v813_v60 = vadd.f32 %v3829_v39, %v812_v59  ;;  %v254_v58 = vld [vmem:[%s3739_s17 + $0xe8] sm:$0xff] }
 0x122   : > { %v1311_v61 = vpop.f32.mrf.mxu1  ;;  %3370 = vmatmul.msk.f32.gmra.mxu0 %vm359_vm0, %v254_v58 }
 0x123   : > { %v1312_v62 = vadd.f32 %v3903_v40, %v1311_v61  ;;  %v1162_v63 = vmax.f32 %v813_v60, 0.0 }
 0x125   : > { %v1693_v1 = vmax.f32 %v1312_v62, 0.0  ;;  %1358 = vmatmul.f32.gmra.mxu1 %v1162_v63 }
 0x127   : > { %v1825_v2 = vmul.f32 %v3910_v55, %v1693_v1  ;;  %v3950_v1 = vpop.permute.xlu1 %2227 }
 0x128   : > { %v815_v3 = vpop.f32.mrf.mxu0  ;;  %5875 = vst [vmem:[#allocation5_spill] sm:$0xff] %v3950_v1 }
 0x129   : > { %1954 = vadd.xlane.f32.xlu0 %v1825_v2  ;;  %v816_v4 = vadd.f32 %v3829_v39, %v815_v3  ;;  %v255_v3 = vld [vmem:[%s3739_s17 + $0xf0] sm:$0xff] }
 0x12a   : > { %v1314_v5 = vpop.f32.mrf.mxu1  ;;  %3371 = vmatmul.msk.f32.gmra.mxu0 %vm359_vm0, %v255_v3  ;;  %v261_v3 = vld [vmem:[%s3739_s17 + $0x120] sm:$0xff] }
 0x12b   : > { %v1315_v6 = vadd.f32 %v3903_v40, %v1314_v5  ;;  %v1163_v7 = vmax.f32 %v816_v4, 0.0 }
 0x12d   : > { %v1694_v9 = vmax.f32 %v1315_v6, 0.0  ;;  %1361 = vmatmul.f32.gmra.mxu1 %v1163_v7 }
 0x12f   : > { %v1826_v10 = vmul.f32 %v3910_v55, %v1694_v9 }
 0x130   : > { %v818_v11 = vpop.f32.mrf.mxu0 }
 0x131   : > { %1956 = vadd.xlane.f32.xlu1 %v1826_v10  ;;  %v819_v12 = vadd.f32 %v3829_v39, %v818_v11  ;;  %v3957_v10 = vpop.permute.xlu1 %2245 }
 0x132   : > { %v1317_v13 = vpop.f32.mrf.mxu1  ;;  %5876 = vst [vmem:[#allocation6_spill] sm:$0xff] %v3957_v10 }
 0x133   : > { %v1318_v14 = vadd.f32 %v3903_v40, %v1317_v13  ;;  %v1164_v15 = vmax.f32 %v819_v12, 0.0  ;;  %v3960_v13 = vpop.permute.xlu0 %2221 }
 0x134   : > { %5877 = vst [vmem:[#allocation7_spill] sm:$0xff] %v3960_v13 }
 0x135   : > { %v1695_v17 = vmax.f32 %v1318_v14, 0.0  ;;  %1364 = vmatmul.f32.gmra.mxu1 %v1164_v15  ;;  %v3644_v15 = vmov 0  }
 0x136   : > { %3566 = vset.pattern.permute.xlu1 %v3644_v15  ;;  %3565 = vset.pattern.permute.xlu2 %v3644_v15 }
 0x137   : > { %v1827_v18 = vmul.f32 %v3910_v55, %v1695_v17  ;;  %3567 = vset.pattern.permute.xlu0 %v3644_v15 }
 0x138   : > { %v821_v19 = vpop.f32.mrf.mxu0 }
 0x139   : > { %1958 = vadd.xlane.f32.xlu1 %v1827_v18  ;;  %v822_v20 = vadd.f32 %v3829_v39, %v821_v19  ;;  %v3963_v17 = vpop.permute.xlu1 %2257 }
 0x13a   : > { %v1320_v21 = vpop.f32.mrf.mxu1  ;;  %5878 = vst [vmem:[#allocation8_spill] sm:$0xff] %v3963_v17 }
 0x13b   : > { %v1321_v22 = vadd.f32 %v3903_v40, %v1320_v21  ;;  %v1165_v23 = vmax.f32 %v822_v20, 0.0  ;;  %v3966_v20 = vpop.permute.xlu0 %2263 }
 0x13d   : > { %v1696_v24 = vmax.f32 %v1321_v22, 0.0  ;;  %1367 = vmatmul.f32.gmra.mxu1 %v1165_v23 }
 0x13f   : > { %v1828_v25 = vmul.f32 %v3910_v55, %v1696_v24 }
 0x140   : > { %v824_v26 = vpop.f32.mrf.mxu0 }
 0x141   : > { %1960 = vadd.xlane.f32.xlu2 %v1828_v25  ;;  %v825_v27 = vadd.f32 %v3829_v39, %v824_v26  ;;  %v3969_v24 = vpop.permute.xlu1 %2275 }
 0x142   : > { %v1323_v28 = vpop.f32.mrf.mxu1 }
 0x143   : > { %v1324_v29 = vadd.f32 %v3903_v40, %v1323_v28  ;;  %v1166_v30 = vmax.f32 %v825_v27, 0.0  ;;  %v3972_v26 = vpop.permute.xlu0 %2293 }
 0x145   : > { %v1697_v31 = vmax.f32 %v1324_v29, 0.0  ;;  %1370 = vmatmul.f32.gmra.mxu1 %v1166_v30 }
 0x147   : > { %v1829_v32 = vmul.f32 %v3910_v55, %v1697_v31 }
 0x148   : > { %v827_v51 = vpop.f32.mrf.mxu0 }
 0x149   : > { %1962 = vadd.xlane.f32.xlu2 %v1829_v32  ;;  %v828_v53 = vadd.f32 %v3829_v39, %v827_v51  ;;  %v3976_v31 = vpop.permute.xlu1 %2287 }
 0x14a   : > { %v1326_v33 = vpop.f32.mrf.mxu1  ;;  %5879 = vst [vmem:[#allocation9_spill] sm:$0xff] %v3976_v31 }
 0x14b   : > { %v1327_v34 = vadd.f32 %v3903_v40, %v1326_v33  ;;  %v1167_v56 = vmax.f32 %v828_v53, 0.0  ;;  %v256_v33 = vld [vmem:[%s3739_s17 + $0xf8] sm:$0xff] }
 0x14c   : > { %3372 = vmatmul.msk.f32.gmra.mxu0 %vm359_vm0, %v256_v33 }
 0x14d   : > { %v1698_v37 = vmax.f32 %v1327_v34, 0.0  ;;  %1373 = vmatmul.f32.gmra.mxu1 %v1167_v56  ;;  %v259_v56 = vld [vmem:[%s3739_s17 + $0x110] sm:$0xff] }
 0x14f   : > { %v1830_v38 = vmul.f32 %v3910_v55, %v1698_v37 }
 0x150   : > { %v830_v60 = vpop.f32.mrf.mxu0 }
 0x151   : > { %1964 = vadd.xlane.f32.xlu0 %v1830_v38  ;;  %v831_v62 = vadd.f32 %v3829_v39, %v830_v60  ;;  %v257_v38 = vld [vmem:[%s3739_s17 + $0x100] sm:$0xff] }
 0x152   : > { %v1329_v41 = vpop.f32.mrf.mxu1 }
 0x153   : > { %v1330_v42 = vadd.f32 %v3903_v40, %v1329_v41  ;;  %v1168_v0 = vmax.f32 %v831_v62, 0.0  ;;  %v260_v62 = vld [vmem:[%s3739_s17 + $0x118] sm:$0xff] }
 0x154   : > { %3373 = vmatmul.msk.f32.gmra.mxu0 %vm359_vm0, %v257_v38 }
 0x155   : > { %v1699_v43 = vmax.f32 %v1330_v42, 0.0  ;;  %1376 = vmatmul.f32.gmra.mxu1 %v1168_v0  ;;  %v3983_v42 = vpop.permute.xlu1 %2305 }
 0x156   : > { %5880 = vst [vmem:[#allocation10_spill] sm:$0xff] %v3983_v42 }
 0x157   : > { %v1831_v36 = vmul.f32 %v3910_v55, %v1699_v43 }
 0x158   : > { %v833_v5 = vpop.f32.mrf.mxu0 }
 0x159   : > { %1966 = vadd.xlane.f32.xlu1 %v1831_v36  ;;  %v834_v7 = vadd.f32 %v3829_v39, %v833_v5 }
 0x15a   : > { %v1332_v44 = vpop.f32.mrf.mxu1 }
 0x15b   : > { %v1333_v45 = vadd.f32 %v3903_v40, %v1332_v44  ;;  %v1169_v9 = vmax.f32 %v834_v7, 0.0  ;;  %v262_v7 = vld [vmem:[%s3739_s17 + $0x128] sm:$0xff] }
 0x15d   : > { %v1700_v46 = vmax.f32 %v1333_v45, 0.0  ;;  %1379 = vmatmul.f32.gmra.mxu1 %v1169_v9 }
 0x15f   : > { %v1832_v47 = vmul.f32 %v3910_v55, %v1700_v46  ;;  %v258_v46 = vld [vmem:[%s3739_s17 + $0x108] sm:$0xff] }
 0x160   : > { %v836_v44 = vpop.f32.mrf.mxu0  ;;  %3374 = vmatmul.msk.f32.gmra.mxu0 %vm359_vm0, %v258_v46 }
 0x161   : > { %1968 = vadd.xlane.f32.xlu2 %v1832_v47  ;;  %v837_v45 = vadd.f32 %v3829_v39, %v836_v44 }
 0x162   : > { %v1335_v48 = vpop.f32.mrf.mxu1 }
 0x163   : > { %v1336_v50 = vadd.f32 %v3903_v40, %v1335_v48  ;;  %v1170_v47 = vmax.f32 %v837_v45, 0.0  ;;  %v3989_v48 = vpop.permute.xlu2 %2215 }
 0x164   : > { %5881 = vst [vmem:[#allocation11_spill] sm:$0xff] %v3989_v48 }
 0x165   : > { %v1701_v52 = vmax.f32 %v1336_v50, 0.0  ;;  %1382 = vmatmul.f32.gmra.mxu1 %v1170_v47 }
 0x167   : > { %v1833_v54 = vmul.f32 %v3910_v55, %v1701_v52 }
 0x168   : > { %v839_v52 = vpop.f32.mrf.mxu0  ;;  %3375 = vmatmul.msk.f32.gmra.mxu0 %vm359_vm0, %v259_v56 }
 0x169   : > { %1970 = vadd.xlane.f32.xlu0 %v1833_v54  ;;  %v840_v54 = vadd.f32 %v3829_v39, %v839_v52 }
 0x16a   : > { %v1338_v57 = vpop.f32.mrf.mxu1 }
 0x16b   : > { %v1339_v59 = vadd.f32 %v3903_v40, %v1338_v57  ;;  %v1171_v57 = vmax.f32 %v840_v54, 0.0  ;;  %v3996_v58 = vpop.permute.xlu2 %2233 }
 0x16c   : > { %5882 = vst [vmem:[#allocation12_spill] sm:$0xff] %v3996_v58 }
 0x16d   : > { %v1702_v61 = vmax.f32 %v1339_v59, 0.0  ;;  %1385 = vmatmul.f32.gmra.mxu1 %v1171_v57 }
 0x16f   : > { %v1834_v63 = vmul.f32 %v3910_v55, %v1702_v61 }
 0x170   : > { %v842_v60 = vpop.f32.mrf.mxu0  ;;  %3376 = vmatmul.msk.f32.gmra.mxu0 %vm359_vm0, %v260_v62  ;;  %v270_v62 = vld [vmem:[%s3739_s17 + $0x168] sm:$0xff] }
 0x171   : > { %1972 = vadd.xlane.f32.xlu1 %v1834_v63  ;;  %v843_v61 = vadd.f32 %v3829_v39, %v842_v60 }
 0x172   : > { %v1341_v2 = vpop.f32.mrf.mxu1 }
 0x173   : > { %v1342_v4 = vadd.f32 %v3903_v40, %v1341_v2  ;;  %v1172_v63 = vmax.f32 %v843_v61, 0.0  ;;  %v4001_v0 = vpop.permute.xlu2 %2239  ;;  %v269_v61 = vld [vmem:[%s3739_s17 + $0x160] sm:$0xff] }
 0x174   : > { %5883 = vst [vmem:[#allocation13_spill] sm:$0xff] %v4001_v0 }
 0x175   : > { %v1703_v6 = vmax.f32 %v1342_v4, 0.0  ;;  %1388 = vmatmul.f32.gmra.mxu1 %v1172_v63 }
 0x177   : > { %v1835_v8 = vmul.f32 %v3910_v55, %v1703_v6 }
 0x178   : > { %3377 = vmatmul.msk.f32.gmra.mxu0 %vm359_vm0, %v261_v3 }
 0x179   : > { %1974 = vadd.xlane.f32.xlu2 %v1835_v8 }
 0x17a   : > { %v1344_v11 = vpop.f32.mrf.mxu1 }
 0x17b   : > { %v1345_v12 = vadd.f32 %v3903_v40, %v1344_v11  ;;  %v4007_v4 = vpop.permute.xlu2 %2251 }
 0x17c   : > { %5884 = vst [vmem:[#allocation14_spill] sm:$0xff] %v4007_v4 }
 0x17d   : > { %v1704_v14 = vmax.f32 %v1345_v12, 0.0 }
 0x17f   : > { %v1836_v16 = vmul.f32 %v3910_v55, %v1704_v14 }
 0x180   : > { %3378 = vmatmul.msk.f32.gmra.mxu0 %vm359_vm0, %v262_v7 }
 0x181   : > { %1976 = vadd.xlane.f32.xlu0 %v1836_v16  ;;  %v263_v16 = vld [vmem:[%s3739_s17 + $0x130] sm:$0xff] }
 0x182   : > { %v1347_v18 = vpop.f32.mrf.mxu1 }
 0x183   : > { %v1348_v19 = vadd.f32 %v3903_v40, %v1347_v18  ;;  %v4015_v11 = vpop.permute.xlu2 %2269 }
 0x184   : > { %5885 = vst [vmem:[#allocation15_spill] sm:$0xff] %v4015_v11 }
 0x185   : > { %v1705_v21 = vmax.f32 %v1348_v19, 0.0 }
 0x187   : > { %v1837_v22 = vmul.f32 %v3910_v55, %v1705_v21 }
 0x188   : > { %3379 = vmatmul.msk.f32.gmra.mxu0 %vm359_vm0, %v263_v16 }
 0x189   : > { %1978 = vadd.xlane.f32.xlu1 %v1837_v22 }
 0x18a   : > { %v1350_v23 = vpop.f32.mrf.mxu1 }
 0x18b   : > { %v1351_v25 = vadd.f32 %v3903_v40, %v1350_v23  ;;  %v4022_v21 = vpop.permute.xlu2 %2281 }
 0x18c   : > { %5886 = vst [vmem:[#allocation16_spill] sm:$0xff] %v4022_v21 }
 0x18d   : > { %v1706_v27 = vmax.f32 %v1351_v25, 0.0 }
 0x18f   : > { %v1838_v28 = vmul.f32 %v3910_v55, %v1706_v27  ;;  %v264_v27 = vld [vmem:[%s3739_s17 + $0x138] sm:$0xff] }
 0x190   : > { %3380 = vmatmul.msk.f32.gmra.mxu0 %vm359_vm0, %v264_v27 }
 0x191   : > { %1980 = vadd.xlane.f32.xlu2 %v1838_v28 }
 0x192   : > { %v1353_v29 = vpop.f32.mrf.mxu1 }
 0x193   : > { %v1354_v30 = vadd.f32 %v3903_v40, %v1353_v29  ;;  %v4028_v29 = vpop.permute.xlu2 %2299 }
 0x194   : > { %v1953_v32 = vpop.xlane.xlu0 %1952  ;;  %5887 = vst [vmem:[#allocation17_spill] sm:$0xff] %v4028_v29 }
 0x195   : > { %v1707_v34 = vmax.f32 %v1354_v30, 0.0  ;;  %v2323_v49 = vadd.f32 %v3989_v48, %v1953_v32  ;;  %v265_v32 = vld [vmem:[%s3739_s17 + $0x140] sm:$0xff] }
 0x197   : > { %v1839_v37 = vmul.f32 %v3910_v55, %v1707_v34  ;;  %v845_v34 = vpop.f32.mrf.mxu0 }
 0x198   : > { %3381 = vmatmul.msk.f32.gmra.mxu0 %vm359_vm0, %v265_v32 }
 0x199   : > { %1982 = vadd.xlane.f32.xlu0 %v1839_v37  ;;  %v846_v37 = vadd.f32 %v3829_v39, %v845_v34 }
 0x19a   : > { %v1356_v43 = vpop.f32.mrf.mxu1 }
 0x19b   : > { %v1357_v5 = vadd.f32 %v3903_v40, %v1356_v43  ;;  %v266_v43 = vld [vmem:[%s3739_s17 + $0x148] sm:$0xff] }
 0x19c   : > { %v1955_v41 = vpop.xlane.xlu0 %1954 }
 0x19d   : > { %v2324_v36 = vadd.f32 %v3960_v13, %v1955_v41  ;;  %v1708_v6 = vmax.f32 %v1357_v5, 0.0  ;;  %v1173_v41 = vmax.f32 %v846_v37, 0.0 }
 0x19f   : > { %v1840_v12 = vmul.f32 %v3910_v55, %v1708_v6  ;;  %1391 = vmatmul.f32.gmra.mxu1 %v1173_v41  ;;  %v848_v45 = vpop.f32.mrf.mxu0  ;;  %v271_v6 = vld [vmem:[%s3739_s17 + $0x170] sm:$0xff] }
 0x1a0   : > { %3382 = vmatmul.msk.f32.gmra.mxu0 %vm359_vm0, %v266_v43  ;;  %v849_v46 = vadd.f32 %v3829_v39, %v848_v45 }
 0x1a2   : > { %2583 = vperm.xlu1 %3566, %v2324_v36   ;;  %v1359_v51 = vpop.f32.mrf.mxu1  ;;  %v1174_v47 = vmax.f32 %v849_v46, 0.0 }
 0x1a3   : > { %v1360_v8 = vadd.f32 %v3903_v40, %v1359_v51 }
 0x1a4   : > { %v1957_v50 = vpop.xlane.xlu1 %1956 }
 0x1a5   : > { %v2325_v53 = vadd.f32 %v3950_v1, %v1957_v50  ;;  %v1709_v14 = vmax.f32 %v1360_v8, 0.0 }
 0x1a7   : > { %v1841_v18 = vmul.f32 %v3910_v55, %v1709_v14  ;;  %1394 = vmatmul.f32.gmra.mxu1 %v1174_v47 }
 0x1a9   : > { %2580 = vperm.xlu2 %3565, %v2323_v49   ;;  %v267_v49 = vld [vmem:[%s3739_s17 + $0x150] sm:$0xff] }
 0x1aa   : > { %v1362_v59 = vpop.f32.mrf.mxu1  ;;  %3383 = vmatmul.msk.f32.gmra.mxu0 %vm359_vm0, %v267_v49 }
 0x1ab   : > { %v1363_v15 = vadd.f32 %v3903_v40, %v1362_v59  ;;  %v268_v59 = vld [vmem:[%s3739_s17 + $0x158] sm:$0xff] }
 0x1ac   : > { %v1959_v36 = vpop.xlane.xlu1 %1958 }
 0x1ad   : > { %2586 = vperm.xlu0 %3567, %v2325_v53   ;;  %v1710_v19 = vmax.f32 %v1363_v15, 0.0  ;;  %v2326_v44 = vadd.f32 %v3996_v58, %v1959_v36  ;;  %v851_v53 = vpop.f32.mrf.mxu0 }
 0x1ae   : > { %v852_v56 = vadd.f32 %v3829_v39, %v851_v53 }
 0x1af   : > { %v1842_v23 = vmul.f32 %v3910_v55, %v1710_v19 }
 0x1b0   : > { %v1175_v57 = vmax.f32 %v852_v56, 0.0 }
 0x1b2   : > { %v4003_v2 = vpop.f32.mrf.mxu1  ;;  %3384 = vmatmul.msk.f32.gmra.mxu0 %vm359_vm0, %v268_v59  ;;  %1397 = vmatmul.f32.gmra.mxu1 %v1175_v57  ;;  %v292_v59 = vld [vmem:[%s3739_s17 + $0x218] sm:$0xff] }
 0x1b3   : > { %v1366_v63 = vadd.f32 %v3903_v40, %v4003_v2 }
 0x1b4   : > { %v1961_v33 = vpop.xlane.xlu2 %1960 }
 0x1b5   : > { %v2327_v38 = vadd.f32 %v4001_v0, %v1961_v33  ;;  %v1711_v5 = vmax.f32 %v1366_v63, 0.0  ;;  %v274_v33 = vld [vmem:[%s3739_s17 + $0x188] sm:$0xff]  ;;  %v277_v63 = vld [vmem:[%s3739_s17 + $0x1a0] sm:$0xff] }
 0x1b7   : > { %v1843_v7 = vmul.f32 %v3910_v55, %v1711_v5 }
 0x1ba   : > { %v4013_v9 = vpop.f32.mrf.mxu1  ;;  %3385 = vmatmul.msk.f32.gmra.mxu0 %vm359_vm0, %v269_v61 }
 0x1bc   : > { %v1963_v50 = vpop.xlane.xlu2 %1962 }
 0x1bd   : > { %v2328_v52 = vadd.f32 %v3957_v10, %v1963_v50  ;;  %v291_v50 = vld [vmem:[%s3739_s17 + $0x210] sm:$0xff] }
 0x1be   : > { %3407 = vmatmul.msk.f32.vlgmr.msra.gmra.mxu3 %vm359_vm0, %v291_v50 }
 0x1c2   : > { %v1371_v22 = vpop.f32.mrf.mxu1  ;;  %3386 = vmatmul.msk.f32.gmra.mxu0 %vm359_vm0, %v270_v62 }
 0x1c3   : > { %v1372_v25 = vadd.f32 %v3903_v40, %v1371_v22 }
 0x1c4   : > { %v1965_v34 = vpop.xlane.xlu0 %1964 }
 0x1c5   : > { %v1713_v28 = vmax.f32 %v1372_v25, 0.0  ;;  %v2329_v41 = vadd.f32 %v4007_v4, %v1965_v34 }
 0x1c6   : > { %3408 = vmatmul.msk.f32.gmra.mxu3 %vm359_vm0, %v292_v59 }
 0x1c7   : > { %v1845_v30 = vmul.f32 %v3910_v55, %v1713_v28 }
 0x1c9   : > { %v854_v15 = vpop.f32.mrf.mxu0 }
 0x1ca   : > { %v4046_v60 = vpop.f32.mrf.mxu1  ;;  %3387 = vmatmul.msk.f32.gmra.mxu0 %vm359_vm0, %v271_v6  ;;  %v855_v16 = vadd.f32 %v3829_v39, %v854_v15  ;;  %v293_v6 = vld [vmem:[%s3739_s17 + $0x220] sm:$0xff] }
 0x1cc   : > { %1984 = vadd.xlane.f32.xlu1 %v1840_v12  ;;  %v1967_v51 = vpop.xlane.xlu1 %1966  ;;  %v1369_v12 = vadd.f32 %v3903_v40, %v4013_v9  ;;  %v1176_v22 = vmax.f32 %v855_v16, 0.0  ;;  %v273_v9 = vld [vmem:[%s3739_s17 + $0x180] sm:$0xff]  ;;  %v294_v16 = vld [vmem:[%s3739_s17 + $0x228] sm:$0xff] }
 0x1cd   : > { %v2330_v54 = vadd.f32 %v3963_v17, %v1967_v51 }
 0x1ce   : > { %v1712_v2 = vmax.f32 %v1369_v12, 0.0  ;;  %1400 = vmatmul.f32.gmra.mxu1 %v1176_v22  ;;  %3409 = vmatmul.msk.f32.gmra.mxu3 %vm359_vm0, %v293_v6  ;;  %v278_v12 = vld [vmem:[%s3739_s17 + $0x1a8] sm:$0xff] }
 0x1d1   : > { %v857_v27 = vpop.f32.mrf.mxu0 }
 0x1d2   : > { %1986 = vadd.xlane.f32.xlu2 %v1841_v18  ;;  %v4053_v3 = vpop.f32.mrf.mxu1  ;;  %v272_v18 = vld [vmem:[%s3739_s17 + $0x178] sm:$0xff]  ;;  %v858_v28 = vadd.f32 %v3829_v39, %v857_v27 }
 0x1d3   : > { %3388 = vmatmul.msk.f32.gmra.mxu0 %vm359_vm0, %v272_v18 }
 0x1d4   : > { %v1969_v47 = vpop.xlane.xlu2 %1968 }
 0x1d5   : > { %v2331_v51 = vadd.f32 %v3966_v20, %v1969_v47 }
 0x1d6   : > { %3410 = vmatmul.msk.f32.gmra.mxu3 %vm359_vm0, %v294_v16  ;;  %v284_v16 = vld [vmem:[%s3739_s17 + $0x1d8] sm:$0xff] }
 0x1d7   : > { %1988 = vadd.xlane.f32.xlu0 %v1842_v23  ;;  %v1844_v23 = vmul.f32 %v3910_v55, %v1712_v2  ;;  %v1375_v2 = vadd.f32 %v3903_v40, %v4046_v60  ;;  %v295_v60 = vld [vmem:[%s3739_s17 + $0x230] sm:$0xff] }
 0x1d9   : > { %v1714_v18 = vmax.f32 %v1375_v2, 0.0 }
 0x1da   : > { %v1380_v8 = vpop.f32.mrf.mxu1 }
 0x1db   : > { %v1381_v14 = vadd.f32 %v3903_v40, %v1380_v8  ;;  %3389 = vmatmul.msk.f32.gmra.mxu0 %vm359_vm0, %v273_v9  ;;  %v1846_v9 = vmul.f32 %v3910_v55, %v1714_v18 }
 0x1dd   : > { %v1716_v19 = vmax.f32 %v1381_v14, 0.0  ;;  %v860_v32 = vpop.f32.mrf.mxu0 }
 0x1de   : > { %v861_v37 = vadd.f32 %v3829_v39, %v860_v32  ;;  %3411 = vmatmul.msk.f32.gmra.mxu3 %vm359_vm0, %v295_v60  ;;  %v301_v60 = vld [vmem:[%s3739_s17 + $0x260] sm:$0xff] }
 0x1df   : > { %1994 = vadd.xlane.f32.xlu0 %v1845_v30  ;;  %v1848_v25 = vmul.f32 %v3910_v55, %v1716_v19  ;;  %v1177_v30 = vmax.f32 %v858_v28, 0.0 }
 0x1e1   : > { %1403 = vmatmul.f32.gmra.mxu1 %v1177_v30  ;;  %v1378_v30 = vadd.f32 %v3903_v40, %v4053_v3 }
 0x1e2   : > { %v4084_v57 = vpop.f32.mrf.mxu1 }
 0x1e3   : > { %3390 = vmatmul.msk.f32.gmra.mxu0 %vm359_vm0, %v274_v33 }
 0x1e4   : > { %v1973_v45 = vpop.xlane.xlu1 %1972 }
 0x1e5   : > { %2592 = vperm.xlu1 %3566, %v2327_v38   ;;  %v1178_v38 = vmax.f32 %v861_v37, 0.0  ;;  %v863_v43 = vpop.f32.mrf.mxu0  ;;  %v2333_v49 = vadd.f32 %v3969_v24, %v1973_v45  ;;  %v1715_v37 = vmax.f32 %v1378_v30, 0.0  ;;  %v281_v45 = vld [vmem:[%s3739_s17 + $0x1c0] sm:$0xff] }
 0x1e6   : > { %v864_v36 = vadd.f32 %v3829_v39, %v863_v43  ;;  %v296_v43 = vld [vmem:[%s3739_s17 + $0x238] sm:$0xff] }
 0x1e7   : > { %v1847_v3 = vmul.f32 %v3910_v55, %v1715_v37  ;;  %3412 = vmatmul.msk.f32.gmra.mxu3 %vm359_vm0, %v296_v43 }
 0x1e8   : > { %v1179_v46 = vmax.f32 %v864_v36, 0.0 }
 0x1e9   : > { %1406 = vmatmul.f32.gmra.mxu1 %v1178_v38  ;;  %v280_v38 = vld [vmem:[%s3739_s17 + $0x1b8] sm:$0xff] }
 0x1ea   : > { %2589 = vperm.xlu2 %3565, %v2326_v44   ;;  %v275_v44 = vld [vmem:[%s3739_s17 + $0x190] sm:$0xff] }
 0x1eb   : > { %3391 = vmatmul.msk.f32.gmra.mxu0 %vm359_vm0, %v275_v44 }
 0x1f1   : > { %1409 = vmatmul.f32.gmra.mxu1 %v1179_v46 }
 0x1f2   : > { %2595 = vperm.xlu2 %3565, %v2328_v52   ;;  %v866_v52 = vpop.f32.mrf.mxu0 }
 0x1f3   : > { %2601 = vperm.xlu0 %3567, %v2330_v54   ;;  %v867_v53 = vadd.f32 %v3829_v39, %v866_v52  ;;  %v276_v54 = vld [vmem:[%s3739_s17 + $0x198] sm:$0xff]  ;;  %v282_v52 = vld [vmem:[%s3739_s17 + $0x1c8] sm:$0xff] }
 0x1f4   : > { %3392 = vmatmul.msk.f32.gmra.mxu0 %vm359_vm0, %v276_v54  ;;  %v1971_v54 = vpop.xlane.xlu0 %1970 }
 0x1f5   : > { %v1180_v56 = vmax.f32 %v867_v53, 0.0  ;;  %v2332_v59 = vadd.f32 %v4015_v11, %v1971_v54 }
 0x1f9   : > { %1412 = vmatmul.f32.gmra.mxu1 %v1180_v56  ;;  %v298_v56 = vld [vmem:[%s3739_s17 + $0x248] sm:$0xff] }
 0x1fa   : > { %v869_v61 = vpop.f32.mrf.mxu0 }
 0x1fb   : > { %v870_v62 = vadd.f32 %v3829_v39, %v869_v61 }
 0x1fc   : > { %3393 = vmatmul.msk.f32.gmra.mxu0 %vm359_vm0, %v277_v63  ;;  %v1979_v61 = vpop.xlane.xlu1 %1978  ;;  %v283_v63 = vld [vmem:[%s3739_s17 + $0x1d0] sm:$0xff] }
 0x1fd   : > { %v1181_v5 = vmax.f32 %v870_v62, 0.0  ;;  %v2336_v6 = vadd.f32 %v3972_v26, %v1979_v61 }
 0x201   : > { %1415 = vmatmul.f32.gmra.mxu1 %v1181_v5 }
 0x202   : > { %v872_v8 = vpop.f32.mrf.mxu0 }
 0x203   : > { %v873_v14 = vadd.f32 %v3829_v39, %v872_v8 }
 0x204   : > { %3394 = vmatmul.msk.f32.gmra.mxu0 %vm359_vm0, %v278_v12  ;;  %v1975_v12 = vpop.xlane.xlu2 %1974 }
 0x205   : > { %v1182_v15 = vmax.f32 %v873_v14, 0.0  ;;  %v299_v14 = vld [vmem:[%s3739_s17 + $0x250] sm:$0xff] }
 0x209   : > { %1418 = vmatmul.f32.gmra.mxu1 %v1182_v15  ;;  %v2334_v15 = vadd.f32 %v4022_v21, %v1975_v12  ;;  %v305_v12 = vld [vmem:[%s3739_s17 + $0x280] sm:$0xff] }
 0x20a   : > { %v875_v19 = vpop.f32.mrf.mxu0 }
 0x20b   : > { %v876_v22 = vadd.f32 %v3829_v39, %v875_v19 }
 0x20d   : > { %v1183_v27 = vmax.f32 %v876_v22, 0.0 }
 0x20f   : > { %1990 = vadd.xlane.f32.xlu1 %v1843_v7  ;;  %v4093_v7 = vpop.f32.mrf.mxu1 }
 0x211   : > { %1421 = vmatmul.f32.gmra.mxu1 %v1183_v27 }
 0x212   : > { %v878_v32 = vpop.f32.mrf.mxu0 }
 0x213   : > { %v879_v34 = vadd.f32 %v3829_v39, %v878_v32 }
 0x21a   : > { %v881_v44 = vpop.f32.mrf.mxu0 }
 0x21b   : > { %1992 = vadd.xlane.f32.xlu2 %v1844_v23  ;;  %v279_v23 = vld [vmem:[%s3739_s17 + $0x1b0] sm:$0xff]  ;;  %v882_v46 = vadd.f32 %v3829_v39, %v881_v44 }
 0x21c   : > { %3395 = vmatmul.msk.f32.gmra.mxu0 %vm359_vm0, %v279_v23  ;;  %v300_v23 = vld [vmem:[%s3739_s17 + $0x258] sm:$0xff] }
 0x21d   : > { %2000 = vadd.xlane.f32.xlu0 %v1848_v25  ;;  %v1389_v25 = vpop.f32.mrf.mxu1  ;;  %v1185_v47 = vmax.f32 %v882_v46, 0.0 }
 0x21e   : > { %v1390_v28 = vadd.f32 %v3903_v40, %v1389_v25 }
 0x220   : > { %v1719_v33 = vmax.f32 %v1390_v28, 0.0 }
 0x222   : > { %v1851_v36 = vmul.f32 %v3910_v55, %v1719_v33  ;;  %v884_v50 = vpop.f32.mrf.mxu0 }
 0x224   : > { %3396 = vmatmul.msk.f32.gmra.mxu0 %vm359_vm0, %v280_v38  ;;  %v302_v38 = vld [vmem:[%s3739_s17 + $0x268] sm:$0xff] }
 0x225   : > { %v4144_v22 = vpop.f32.mrf.mxu1 }
 0x228   : > { %2598 = vperm.xlu1 %3566, %v2329_v41   ;;  %v1184_v41 = vmax.f32 %v879_v34, 0.0  ;;  %v286_v34 = vld [vmem:[%s3739_s17 + $0x1e8] sm:$0xff] }
 0x22a   : > { %1424 = vmatmul.f32.gmra.mxu1 %v1184_v41  ;;  %v887_v62 = vpop.f32.mrf.mxu0  ;;  %v1384_v41 = vadd.f32 %v3903_v40, %v4084_v57  ;;  %v1387_v57 = vadd.f32 %v3903_v40, %v4093_v7 }
 0x22b   : > { %v888_v5 = vadd.f32 %v3829_v39, %v887_v62  ;;  %v304_v62 = vld [vmem:[%s3739_s17 + $0x278] sm:$0xff] }
 0x22c   : > { %3397 = vmatmul.msk.f32.gmra.mxu0 %vm359_vm0, %v281_v45  ;;  %v1717_v45 = vmax.f32 %v1384_v41, 0.0 }
 0x22d   : > { %v1187_v8 = vmax.f32 %v888_v5, 0.0  ;;  %v4152_v30 = vpop.f32.mrf.mxu1  ;;  %v289_v5 = vld [vmem:[%s3739_s17 + $0x200] sm:$0xff] }
 0x231   : > { %2610 = vperm.xlu0 %3567, %v2333_v49   ;;  %v297_v49 = vld [vmem:[%s3739_s17 + $0x240] sm:$0xff] }
 0x232   : > { %1427 = vmatmul.f32.gmra.mxu1 %v1185_v47  ;;  %3413 = vmatmul.msk.f32.gmra.mxu3 %vm359_vm0, %v297_v49  ;;  %v890_v2 = vpop.f32.mrf.mxu0  ;;  %v303_v49 = vld [vmem:[%s3739_s17 + $0x270] sm:$0xff] }
 0x233   : > { %2604 = vperm.xlu2 %3565, %v2331_v51   ;;  %v885_v51 = vadd.f32 %v3829_v39, %v884_v50  ;;  %v4140_v39 = vld [vmem:[%s5841_s4] ss:$0 sm:$0xff] }
 0x234   : > { %3398 = vmatmul.msk.f32.gmra.mxu0 %vm359_vm0, %v282_v52  ;;  %v891_v18 = vadd.f32 %v4140_v39, %v890_v2  ;;  %v290_v2 = vld [vmem:[%s3739_s17 + $0x208] sm:$0xff] }
 0x235   : > { %v1186_v53 = vmax.f32 %v885_v51, 0.0  ;;  %v1398_v43 = vpop.f32.mrf.mxu1  ;;  %v1849_v51 = vmul.f32 %v3910_v55, %v1717_v45 }
 0x236   : > { %v1188_v19 = vmax.f32 %v891_v18, 0.0  ;;  %v1399_v46 = vadd.f32 %v3903_v40, %v1398_v43 }
 0x238   : > { %v1722_v50 = vmax.f32 %v1399_v46, 0.0 }
 0x23a   : > { %1430 = vmatmul.f32.gmra.mxu1 %v1186_v53  ;;  %3414 = vmatmul.msk.f32.gmra.mxu3 %vm359_vm0, %v298_v56  ;;  %v893_v25 = vpop.f32.mrf.mxu0  ;;  %v288_v53 = vld [vmem:[%s3739_s17 + $0x1f8] sm:$0xff]  ;;  %v1718_v56 = vmax.f32 %v1387_v57, 0.0 }
 0x23b   : > { %v894_v27 = vadd.f32 %v4140_v39, %v893_v25  ;;  %v1977_v25 = vpop.xlane.xlu0 %1976 }
 0x23c   : > { %3399 = vmatmul.msk.f32.gmra.mxu0 %vm359_vm0, %v283_v63  ;;  %v1850_v7 = vmul.f32 %v3910_v55, %v1718_v56  ;;  %v310_v56 = vld [vmem:[%s3739_s17 + $0x2a8] sm:$0xff] }
 0x23d   : > { %v1189_v28 = vmax.f32 %v894_v27, 0.0 }
 0x242   : > { %1433 = vmatmul.f32.gmra.mxu1 %v1187_v8  ;;  %3415 = vmatmul.msk.f32.gmra.mxu3 %vm359_vm0, %v299_v14  ;;  %v896_v32 = vpop.f32.mrf.mxu0  ;;  %v4182_v14 = vpop.permute.xlu1 %2583 }
 0x243   : > { %v897_v33 = vadd.f32 %v4140_v39, %v896_v32 }
 0x244   : > { %3400 = vmatmul.msk.f32.gmra.mxu0 %vm359_vm0, %v284_v16 }
 0x245   : > { %v1190_v37 = vmax.f32 %v897_v33, 0.0  ;;  %v1981_v33 = vpop.xlane.xlu2 %1980 }
 0x24a   : > { %1436 = vmatmul.f32.gmra.mxu1 %v1188_v19  ;;  %3416 = vmatmul.msk.f32.gmra.mxu3 %vm359_vm0, %v300_v23  ;;  %v306_v19 = vld [vmem:[%s3739_s17 + $0x288] sm:$0xff]  ;;  %v1985_v23 = vpop.xlane.xlu1 %1984 }
 0x24b   : > { %v4197_v43 = vpop.f32.mrf.mxu1 }
 0x252   : > { %1996 = vadd.xlane.f32.xlu1 %v1846_v9  ;;  %v285_v9 = vld [vmem:[%s3739_s17 + $0x1e0] sm:$0xff]  ;;  %1439 = vmatmul.f32.gmra.mxu1 %v1189_v28 }
 0x253   : > { %3401 = vmatmul.msk.f32.gmra.mxu0 %vm359_vm0, %v285_v9  ;;  %3417 = vmatmul.msk.f32.gmra.mxu3 %vm359_vm0, %v301_v60  ;;  %v2339_v9 = vadd.f32 %v3989_v48, %v1985_v23  ;;  %v2335_v60 = vadd.f32 %v3976_v31, %v1977_v25 }
 0x25a   : > { %1442 = vmatmul.f32.gmra.mxu1 %v1190_v37 }
 0x25b   : > { %2006 = vadd.xlane.f32.xlu0 %v1851_v36  ;;  %3402 = vmatmul.msk.f32.gmra.mxu0 %vm359_vm0, %v286_v34  ;;  %v899_v36 = vpop.f32.mrf.mxu0  ;;  %v307_v34 = vld [vmem:[%s3739_s17 + $0x290] sm:$0xff] }
 0x25c   : > { %1998 = vadd.xlane.f32.xlu2 %v1847_v3  ;;  %3418 = vmatmul.msk.f32.gmra.mxu3 %vm359_vm0, %v302_v38  ;;  %v287_v3 = vld [vmem:[%s3739_s17 + $0x1f0] sm:$0xff]  ;;  %v900_v44 = vadd.f32 %v4140_v39, %v899_v36  ;;  %v2337_v38 = vadd.f32 %v4028_v29, %v1981_v33  ;;  %v4199_v36 = vpop.f32.mrf.mxu3  ;;  %v4241_v33 = vpop.permute.xlu1 %2592 }
 0x25e   : > { %v1191_v47 = vmax.f32 %v900_v44, 0.0  ;;  %v308_v44 = vld [vmem:[%s3739_s17 + $0x298] sm:$0xff]  ;;  %v4206_v57 = vpop.f32.mrf.mxu1 }
 0x262   : > { %1445 = vmatmul.f32.gmra.mxu1 %v1191_v47 }
 0x263   : > { %3403 = vmatmul.msk.f32.gmra.mxu0 %vm359_vm0, %v287_v3  ;;  %v902_v52 = vpop.f32.mrf.mxu0 }
 0x264   : > { %3419 = vmatmul.msk.f32.gmra.mxu3 %vm359_vm0, %v303_v49  ;;  %v903_v54 = vadd.f32 %v4140_v39, %v902_v52  ;;  %v4204_v47 = vpop.f32.mrf.mxu3 }
 0x266   : > { %v1192_v61 = vmax.f32 %v903_v54, 0.0 }
 0x26a   : > { %1448 = vmatmul.f32.gmra.mxu1 %v1192_v61 }
 0x26b   : > { %2607 = vperm.xlu1 %3566, %v2332_v59   ;;  %v1854_v59 = vmul.f32 %v3910_v55, %v1722_v50  ;;  %3404 = vmatmul.msk.f32.gmra.mxu0 %vm359_vm0, %v288_v53  ;;  %v905_v63 = vpop.f32.mrf.mxu0  ;;  %v309_v50 = vld [vmem:[%s3739_s17 + $0x2a0] sm:$0xff] }
 0x26c   : > { %3420 = vmatmul.msk.f32.gmra.mxu3 %vm359_vm0, %v304_v62  ;;  %v4211_v53 = vpop.f32.mrf.mxu3 }
 0x26f   : > { %2619 = vperm.xlu0 %3567, %v2336_v6   ;;  %v906_v6 = vadd.f32 %v4140_v39, %v905_v63  ;;  %v1393_v63 = vadd.f32 %v3903_v40, %v4144_v22 }
 0x271   : > { %v1193_v8 = vmax.f32 %v906_v6, 0.0 }
 0x273   : > { %3405 = vmatmul.msk.f32.gmra.mxu0 %vm359_vm0, %v289_v5  ;;  %1451 = vmatmul.f32.gmra.mxu1 %v1193_v8  ;;  %v311_v8 = vld [vmem:[%s3739_s17 + $0x2b0] sm:$0xff] }
 0x274   : > { %2613 = vperm.xlu2 %3565, %v2334_v15   ;;  %3421 = vmatmul.msk.f32.gmra.mxu3 %vm359_vm0, %v305_v12  ;;  %v908_v15 = vpop.f32.mrf.mxu0  ;;  %v4219_v5 = vpop.f32.mrf.mxu3 }
 0x275   : > { %v909_v16 = vadd.f32 %v4140_v39, %v908_v15  ;;  %v1720_v15 = vmax.f32 %v1393_v63, 0.0 }
 0x277   : > { %v1194_v18 = vmax.f32 %v909_v16, 0.0  ;;  %v1852_v22 = vmul.f32 %v3910_v55, %v1720_v15 }
 0x27b   : > { %3406 = vmatmul.msk.f32.gmra.mxu0 %vm359_vm0, %v290_v2  ;;  %1454 = vmatmul.f32.gmra.mxu1 %v1194_v18  ;;  %v1396_v2 = vadd.f32 %v3903_v40, %v4152_v30 }
 0x27c   : > { %3422 = vmatmul.msk.f32.gmra.mxu3 %vm359_vm0, %v306_v19  ;;  %v911_v27 = vpop.f32.mrf.mxu0  ;;  %v4228_v23 = vpop.f32.mrf.mxu3 }
 0x27d   : > { %v912_v28 = vadd.f32 %v4140_v39, %v911_v27  ;;  %v1721_v27 = vmax.f32 %v1396_v2, 0.0 }
 0x27f   : > { %v1195_v32 = vmax.f32 %v912_v28, 0.0 }
 0x283   : > { %1457 = vmatmul.f32.gmra.mxu1 %v1195_v32 }
 0x284   : > { %3423 = vmatmul.msk.f32.gmra.mxu3 %vm359_vm0, %v307_v34  ;;  %v914_v37 = vpop.f32.mrf.mxu0  ;;  %v313_v34 = vld [vmem:[%s3739_s17 + $0x2c0] sm:$0xff] }
 0x285   : > { %v915_v41 = vadd.f32 %v4140_v39, %v914_v37 }
 0x287   : > { %v1196_v3 = vmax.f32 %v915_v41, 0.0 }
 0x28b   : > { %1460 = vmatmul.f32.gmra.mxu1 %v1196_v3 }
 0x28c   : > { %3424 = vmatmul.msk.f32.gmra.mxu3 %vm359_vm0, %v308_v44  ;;  %v917_v45 = vpop.f32.mrf.mxu0  ;;  %v1991_v44 = vpop.xlane.xlu1 %1990 }
 0x28d   : > { %v918_v46 = vadd.f32 %v4140_v39, %v917_v45  ;;  %v314_v45 = vld [vmem:[%s3739_s17 + $0x2c8] sm:$0xff] }
 0x28f   : > { %v1197_v49 = vmax.f32 %v918_v46, 0.0  ;;  %v4249_v46 = vpop.permute.xlu2 %2580 }
 0x293   : > { %1463 = vmatmul.f32.gmra.mxu1 %v1197_v49  ;;  %v2342_v49 = vadd.f32 %v3996_v58, %v1991_v44  ;;  %v319_v44 = vld [vmem:[%s3739_s17 + $0x2f0] sm:$0xff] }
 0x294   : > { %3425 = vmatmul.msk.f32.gmra.mxu3 %vm359_vm0, %v309_v50 }
 0x295   : > { %2002 = vadd.xlane.f32.xlu1 %v1849_v51  ;;  %v920_v51 = vpop.f32.mrf.mxu0 }
 0x296   : > { %v921_v52 = vadd.f32 %v4140_v39, %v920_v51 }
 0x298   : > { %v1198_v54 = vmax.f32 %v921_v52, 0.0 }
 0x299   : > { %2012 = vadd.xlane.f32.xlu0 %v1854_v59  ;;  %v1407_v59 = vpop.f32.mrf.mxu1 }
 0x29a   : > { %v1408_v62 = vadd.f32 %v3903_v40, %v1407_v59  ;;  %v4235_v40 = vld [vmem:[%s5840_s3] ss:$0 sm:$0xff] }
 0x29b   : > { %1466 = vmatmul.f32.gmra.mxu1 %v1198_v54  ;;  %v1853_v30 = vmul.f32 %v4235_v40, %v1721_v27  ;;  %v1983_v54 = vpop.xlane.xlu0 %1982 }
 0x29c   : > { %3426 = vmatmul.msk.f32.gmra.mxu3 %vm359_vm0, %v310_v56  ;;  %v1725_v12 = vmax.f32 %v1408_v62, 0.0  ;;  %v315_v62 = vld [vmem:[%s3739_s17 + $0x2d0] sm:$0xff] }
 0x29d   : > { %2004 = vadd.xlane.f32.xlu2 %v1850_v7  ;;  %v923_v61 = vpop.f32.mrf.mxu0 }
 0x29e   : > { %v924_v7 = vadd.f32 %v4140_v39, %v923_v61  ;;  %v1857_v18 = vmul.f32 %v3910_v55, %v1725_v12  ;;  %v2338_v61 = vadd.f32 %v3983_v42, %v1983_v54 }
 0x2a0   : > { %v1199_v6 = vmax.f32 %v924_v7, 0.0  ;;  %v1987_v7 = vpop.xlane.xlu2 %1986 }
 0x2a1   : > { %v4253_v51 = vpop.f32.mrf.mxu1 }
 0x2a3   : > { %1469 = vmatmul.f32.gmra.mxu1 %v1199_v6 }
 0x2a4   : > { %3427 = vmatmul.msk.f32.gmra.mxu3 %vm359_vm0, %v311_v8  ;;  %v2340_v8 = vadd.f32 %v3960_v13, %v1987_v7 }
 0x2a5   : > { %v926_v16 = vpop.f32.mrf.mxu0 }
 0x2a6   : > { %v927_v19 = vadd.f32 %v4140_v39, %v926_v16  ;;  %v316_v16 = vld [vmem:[%s3739_s17 + $0x2d8] sm:$0xff] }
 0x2a8   : > { %v1200_v25 = vmax.f32 %v927_v19, 0.0 }
 0x2a9   : > { %v4265_v15 = vpop.f32.mrf.mxu1 }
 0x2ab   : > { %1472 = vmatmul.f32.gmra.mxu1 %v1200_v25 }
 0x2ad   : > { %2628 = vperm.xlu0 %3567, %v2339_v9   ;;  %v312_v9 = vld [vmem:[%s3739_s17 + $0x2b8] sm:$0xff]  ;;  %v929_v55 = vpop.f32.mrf.mxu0 }
 0x2ae   : > { %2616 = vperm.xlu1 %3566, %v2335_v60   ;;  %3428 = vmatmul.msk.f32.gmra.mxu3 %vm359_vm0, %v312_v9  ;;  %v930_v28 = vadd.f32 %v4140_v39, %v929_v55  ;;  %v4239_v60 = vpop.f32.mrf.mxu3  ;;  %v317_v9 = vld [vmem:[%s3739_s17 + $0x2e0] sm:$0xff] }
 0x2b0   : > { %v1201_v32 = vmax.f32 %v930_v28, 0.0  ;;  %v318_v28 = vld [vmem:[%s3739_s17 + $0x2e8] sm:$0xff] }
 0x2b1   : > { %v1416_v27 = vpop.f32.mrf.mxu1 }
 0x2b3   : > { %1475 = vmatmul.f32.gmra.mxu1 %v1201_v32  ;;  %v4280_v32 = vld [vmem:[%s5841_s4 + $0x1] ss:$0 sm:$0xff] }
 0x2b5   : > { %2622 = vperm.xlu2 %3565, %v2337_v38   ;;  %v932_v37 = vpop.f32.mrf.mxu0 }
 0x2b6   : > { %3429 = vmatmul.msk.f32.gmra.mxu3 %vm359_vm0, %v313_v34  ;;  %v933_v38 = vadd.f32 %v4140_v39, %v932_v37  ;;  %v4246_v41 = vpop.f32.mrf.mxu3  ;;  %v1417_v34 = vadd.f32 %v4280_v32, %v1416_v27 }
 0x2b8   : > { %v1202_v3 = vmax.f32 %v933_v38, 0.0 }
 0x2bb   : > { %1478 = vmatmul.f32.gmra.mxu1 %v1202_v3  ;;  %v1728_v3 = vmax.f32 %v1417_v34, 0.0  ;;  %v4310_v34 = vpop.permute.xlu2 %2589 }
 0x2bd   : > { %v935_v50 = vpop.f32.mrf.mxu0 }
 0x2be   : > { %3430 = vmatmul.msk.f32.gmra.mxu3 %vm359_vm0, %v314_v45  ;;  %v936_v52 = vadd.f32 %v4140_v39, %v935_v50  ;;  %v4256_v56 = vpop.f32.mrf.mxu3  ;;  %v1402_v45 = vadd.f32 %v4280_v32, %v4197_v43  ;;  %v1860_v50 = vmul.f32 %v4235_v40, %v1728_v3 }
 0x2c0   : > { %v1203_v59 = vmax.f32 %v936_v52, 0.0  ;;  %v1723_v54 = vmax.f32 %v1402_v45, 0.0 }
 0x2c2   : > { %v1855_v43 = vmul.f32 %v4235_v40, %v1723_v54  ;;  %v4319_v54 = vpop.permute.xlu0 %2586 }
 0x2c3   : > { %1481 = vmatmul.f32.gmra.mxu1 %v1203_v59  ;;  %v1405_v59 = vadd.f32 %v4280_v32, %v4206_v57 }
 0x2c5   : > { %v938_v63 = vpop.f32.mrf.mxu0 }
 0x2c6   : > { %3431 = vmatmul.msk.f32.gmra.mxu3 %vm359_vm0, %v315_v62  ;;  %v939_v6 = vadd.f32 %v4140_v39, %v938_v63  ;;  %v4263_v12 = vpop.f32.mrf.mxu3 }
 0x2c8   : > { %v1204_v2 = vmax.f32 %v939_v6, 0.0  ;;  %v1724_v6 = vmax.f32 %v1405_v59, 0.0 }
 0x2cb   : > { %1484 = vmatmul.f32.gmra.mxu1 %v1204_v2  ;;  %v4299_v2 = vpop.f32.mrf.mxu1 }
 0x2ce   : > { %3432 = vmatmul.msk.f32.gmra.mxu3 %vm359_vm0, %v316_v16 }
 0x2d6   : > { %3433 = vmatmul.msk.f32.gmra.mxu3 %vm359_vm0, %v317_v9 }
 0x2d7   : > { %2018 = vadd.xlane.f32.xlu0 %v1857_v18  ;;  %v941_v18 = vpop.f32.mrf.mxu0 }
 0x2d8   : > { %2008 = vadd.xlane.f32.xlu1 %v1852_v22  ;;  %v942_v19 = vadd.f32 %v4140_v39, %v941_v18  ;;  %v4270_v22 = vpop.f32.mrf.mxu3  ;;  %v1856_v18 = vmul.f32 %v4235_v40, %v1724_v6 }
 0x2da   : > { %v1205_v25 = vmax.f32 %v942_v19, 0.0 }
 0x2dc   : > { %1487 = vmatmul.f32.gmra.mxu1 %v1205_v25  ;;  %v4305_v25 = vpop.permute.xlu1 %2598 }
 0x2dd   : > { %5888 = vst [vmem:[#allocation18_spill] sm:$0xff] %v4305_v25 }
 0x2de   : > { %2010 = vadd.xlane.f32.xlu2 %v1853_v30  ;;  %3434 = vmatmul.msk.f32.gmra.mxu3 %vm359_vm0, %v318_v28  ;;  %v321_v28 = vld [vmem:[%s3739_s17 + $0x300] sm:$0xff] }
 0x2df   : > { %v944_v30 = vpop.f32.mrf.mxu0 }
 0x2e0   : > { %v4274_v55 = vpop.f32.mrf.mxu3 }
 0x2e4   : > { %v1997_v45 = vpop.xlane.xlu1 %1996 }
 0x2e5   : > { %v2345_v59 = vadd.f32 %v4007_v4, %v1997_v45  ;;  %v969_v45 = vadd.f32 %v4140_v39, %v4219_v5  ;;  %v327_v5 = vld [vmem:[%s3739_s17 + $0x330] sm:$0xff] }
 0x2e6   : > { %3435 = vmatmul.msk.f32.gmra.mxu3 %vm359_vm0, %v319_v44 }
 0x2e7   : > { %v947_v37 = vpop.f32.mrf.mxu0 }
 0x2e8   : > { %v4284_v38 = vpop.f32.mrf.mxu3  ;;  %v948_v16 = vadd.f32 %v4140_v39, %v947_v37  ;;  %v4312_v37 = vpop.f32.mrf.mxu1 }
 0x2ea   : > { %v1207_v27 = vmax.f32 %v948_v16, 0.0  ;;  %v963_v16 = vadd.f32 %v4140_v39, %v4204_v47  ;;  %v966_v47 = vadd.f32 %v4140_v39, %v4211_v53  ;;  %v972_v53 = vadd.f32 %v4140_v39, %v4228_v23 }
 0x2eb   : > { %2637 = vperm.xlu0 %3567, %v2342_v49   ;;  %v945_v49 = vadd.f32 %v4140_v39, %v944_v30  ;;  %v1411_v23 = vadd.f32 %v4280_v32, %v4253_v51 }
 0x2ef   : > { %v950_v52 = vpop.f32.mrf.mxu0 }
 0x2f0   : > { %v951_v62 = vadd.f32 %v4140_v39, %v950_v52  ;;  %v4295_v7 = vpop.f32.mrf.mxu3  ;;  %v322_v52 = vld [vmem:[%s3739_s17 + $0x308] sm:$0xff] }
 0x2f1   : > { %2625 = vperm.xlu1 %3566, %v2338_v61   ;;  %v1206_v61 = vmax.f32 %v945_v49, 0.0 }
 0x2f2   : > { %v1208_v63 = vmax.f32 %v951_v62, 0.0  ;;  %v4325_v62 = vpop.permute.xlu2 %2595 }
 0x2f3   : > { %1490 = vmatmul.f32.gmra.mxu1 %v1206_v61  ;;  %v960_v61 = vadd.f32 %v4140_v39, %v4199_v36 }
 0x2f4   : > { %1496 = vmatmul.f32.vlgmr.msra.gmra.mxu2 %v1208_v63 }
 0x2f5   : > { %v1211_v6 = vmax.f32 %v960_v61, 0.0 }
 0x2f6   : > { %2631 = vperm.xlu2 %3565, %v2340_v8   ;;  %v320_v8 = vld [vmem:[%s3739_s17 + $0x2f8] sm:$0xff] }
 0x2f7   : > { %3436 = vmatmul.msk.f32.gmra.mxu3 %vm359_vm0, %v320_v8  ;;  %v953_v57 = vpop.f32.mrf.mxu0  ;;  %v1989_v8 = vpop.xlane.xlu0 %1988 }
 0x2f8   : > { %v954_v19 = vadd.f32 %v4140_v39, %v953_v57  ;;  %v4307_v9 = vpop.f32.mrf.mxu3  ;;  %v2341_v36 = vadd.f32 %v3950_v1, %v1989_v8  ;;  %v1215_v8 = vmax.f32 %v972_v53, 0.0  ;;  %v329_v53 = vld [vmem:[%s3739_s17 + $0x340] sm:$0xff] }
 0x2fa   : > { %v1209_v30 = vmax.f32 %v954_v19, 0.0  ;;  %v1993_v57 = vpop.xlane.xlu2 %1992 }
 0x2fb   : > { %1493 = vmatmul.f32.gmra.mxu1 %v1207_v27  ;;  %v2343_v27 = vadd.f32 %v4001_v0, %v1993_v57 }
 0x2fc   : > { %1499 = vmatmul.f32.gmra.mxu2 %v1209_v30  ;;  %v324_v30 = vld [vmem:[%s3739_s17 + $0x318] sm:$0xff] }
 0x2ff   : > { %3437 = vmatmul.msk.f32.gmra.mxu3 %vm359_vm0, %v321_v28  ;;  %v956_v3 = vpop.f32.mrf.mxu0 }
 0x300   : > { %v957_v44 = vadd.f32 %v4140_v39, %v956_v3  ;;  %v4316_v49 = vpop.f32.mrf.mxu3  ;;  %v1213_v3 = vmax.f32 %v966_v47, 0.0  ;;  %v1726_v47 = vmax.f32 %v1411_v23, 0.0 }
 0x302   : > { %v1858_v51 = vmul.f32 %v4235_v40, %v1726_v47  ;;  %v331_v47 = vld [vmem:[%s3739_s17 + $0x350] sm:$0xff] }
 0x307   : > { %3438 = vmatmul.msk.f32.gmra.mxu3 %vm359_vm0, %v322_v52 }
 0x308   : > { %v4327_v63 = vpop.f32.mrf.mxu3 }
 0x310   : > { %v4334_v19 = vpop.f32.mrf.mxu3 }
 0x315   : > { %2024 = vadd.xlane.f32.xlu0 %v1860_v50  ;;  %v1210_v50 = vmax.f32 %v957_v44, 0.0  ;;  %v325_v44 = vld [vmem:[%s3739_s17 + $0x320] sm:$0xff] }
 0x317   : > { %1502 = vmatmul.f32.gmra.mxu2 %v1210_v50  ;;  %v1425_v50 = vpop.f32.mrf.mxu1 }
 0x318   : > { %v4341_v28 = vpop.f32.mrf.mxu3  ;;  %v1426_v61 = vadd.f32 %v4280_v32, %v1425_v50 }
 0x31b   : > { %2014 = vadd.xlane.f32.xlu1 %v1855_v43  ;;  %v323_v43 = vld [vmem:[%s3739_s17 + $0x310] sm:$0xff] }
 0x31c   : > { %3439 = vmatmul.msk.f32.gmra.mxu3 %vm359_vm0, %v323_v43  ;;  %v1731_v43 = vmax.f32 %v1426_v61, 0.0 }
 0x31e   : > { %v1863_v57 = vmul.f32 %v4235_v40, %v1731_v43 }
 0x31f   : > { %2016 = vadd.xlane.f32.xlu2 %v1856_v18  ;;  %1505 = vmatmul.f32.gmra.mxu2 %v1211_v6  ;;  %v1212_v18 = vmax.f32 %v963_v16, 0.0  ;;  %v326_v6 = vld [vmem:[%s3739_s17 + $0x328] sm:$0xff] }
 0x320   : > { %v4347_v52 = vpop.f32.mrf.mxu3 }
 0x324   : > { %3440 = vmatmul.msk.f32.gmra.mxu3 %vm359_vm0, %v324_v30 }
 0x327   : > { %1508 = vmatmul.f32.gmra.mxu2 %v1212_v18 }
 0x328   : > { %v4354_v16 = vpop.f32.mrf.mxu3 }
 0x329   : > { %2646 = vperm.xlu0 %3567, %v2345_v59   ;;  %v1214_v59 = vmax.f32 %v969_v45, 0.0  ;;  %v4371_v45 = vpop.permute.xlu1 %2607 }
 0x32a   : > { %5889 = vst [vmem:[#allocation19_spill] sm:$0xff] %v4371_v45 }
 0x32c   : > { %3441 = vmatmul.msk.f32.gmra.mxu3 %vm359_vm0, %v325_v44  ;;  %v328_v44 = vld [vmem:[%s3739_s17 + $0x338] sm:$0xff] }
 0x32f   : > { %1511 = vmatmul.f32.gmra.mxu2 %v1213_v3 }
 0x330   : > { %v4365_v30 = vpop.f32.mrf.mxu3 }
 0x331   : > { %v2003_v61 = vpop.xlane.xlu1 %2002 }
 0x334   : > { %2634 = vperm.xlu1 %3566, %v2341_v36   ;;  %3442 = vmatmul.msk.f32.gmra.mxu3 %vm359_vm0, %v326_v6  ;;  %v975_v36 = vadd.f32 %v4140_v39, %v4239_v60  ;;  %v978_v60 = vadd.f32 %v4140_v39, %v4246_v41  ;;  %v981_v41 = vadd.f32 %v4140_v39, %v4256_v56  ;;  %v4388_v56 = vpop.permute.xlu2 %2604 }
 0x335   : > { %5890 = vst [vmem:[#allocation20_spill] sm:$0xff] %v4388_v56 }
 0x336   : > { %v1216_v18 = vmax.f32 %v975_v36, 0.0  ;;  %v1217_v50 = vmax.f32 %v978_v60, 0.0  ;;  %v1218_v6 = vmax.f32 %v981_v41, 0.0  ;;  %v984_v36 = vadd.f32 %v4140_v39, %v4263_v12  ;;  %v1995_v60 = vpop.xlane.xlu0 %1994 }
 0x337   : > { %2640 = vperm.xlu2 %3565, %v2343_v27   ;;  %1514 = vmatmul.f32.gmra.mxu2 %v1214_v59  ;;  %v1414_v27 = vadd.f32 %v4280_v32, %v4265_v15 }
 0x338   : > { %v4375_v15 = vpop.f32.mrf.mxu3  ;;  %v1219_v23 = vmax.f32 %v984_v36, 0.0 }
 0x339   : > { %v1727_v3 = vmax.f32 %v1414_v27, 0.0  ;;  %v987_v27 = vadd.f32 %v4140_v39, %v4270_v22  ;;  %v990_v22 = vadd.f32 %v4140_v39, %v4274_v55 }
 0x33b   : > { %v1859_v59 = vmul.f32 %v4235_v40, %v1727_v3  ;;  %v1220_v3 = vmax.f32 %v987_v27, 0.0  ;;  %v996_v27 = vadd.f32 %v4140_v39, %v4295_v7 }
 0x33c   : > { %3443 = vmatmul.msk.f32.gmra.mxu3 %vm359_vm0, %v327_v5  ;;  %v330_v5 = vld [vmem:[%s3739_s17 + $0x348] sm:$0xff]  ;;  %v1999_v12 = vpop.xlane.xlu2 %1998 }
 0x33f   : > { %1517 = vmatmul.f32.gmra.mxu2 %v1215_v8  ;;  %v2348_v8 = vadd.f32 %v4015_v11, %v2003_v61  ;;  %v1221_v61 = vmax.f32 %v990_v22, 0.0  ;;  %v1420_v22 = vadd.f32 %v4280_v32, %v4299_v2 }
 0x340   : > { %v4381_v43 = vpop.f32.mrf.mxu3 }
 0x344   : > { %3444 = vmatmul.msk.f32.gmra.mxu3 %vm359_vm0, %v328_v44 }
 0x347   : > { %1520 = vmatmul.f32.gmra.mxu2 %v1216_v18  ;;  %v4392_v18 = vpop.f32.mrf.mxu1 }
 0x34c   : > { %3445 = vmatmul.msk.f32.gmra.mxu3 %vm359_vm0, %v329_v53 }
 0x34f   : > { %1523 = vmatmul.f32.gmra.mxu2 %v1217_v50  ;;  %v2346_v50 = vadd.f32 %v3963_v17, %v1999_v12  ;;  %v4405_v53 = vpop.f32.mrf.mxu1  ;;  %v1223_v12 = vmax.f32 %v996_v27, 0.0 }
 0x353   : > { %2030 = vadd.xlane.f32.xlu0 %v1863_v57  ;;  %v4390_v57 = vpop.f32.mrf.mxu3 }
 0x354   : > { %3446 = vmatmul.msk.f32.gmra.mxu3 %vm359_vm0, %v330_v5 }
 0x357   : > { %1526 = vmatmul.f32.gmra.mxu2 %v1218_v6  ;;  %v333_v6 = vld [vmem:[%s3739_s17 + $0x360] sm:$0xff]  ;;  %v1434_v5 = vpop.f32.mrf.mxu1 }
 0x358   : > { %v1435_v55 = vadd.f32 %v4280_v32, %v1434_v5  ;;  %v1729_v5 = vmax.f32 %v1420_v22, 0.0  ;;  %v1008_v22 = vadd.f32 %v4140_v39, %v4334_v19  ;;  %v1011_v19 = vadd.f32 %v4140_v39, %v4341_v28 }
 0x359   : > { %v1014_v28 = vadd.f32 %v4140_v39, %v4347_v52 }
 0x35b   : > { %v4398_v44 = vpop.f32.mrf.mxu3  ;;  %v1229_v35 = vmax.f32 %v1014_v28, 0.0 }
 0x35c   : > { %3447 = vmatmul.msk.f32.gmra.mxu3 %vm359_vm0, %v331_v47  ;;  %v334_v47 = vld [vmem:[%s3739_s17 + $0x368] sm:$0xff] }
 0x35e   : > { %2020 = vadd.xlane.f32.xlu1 %v1858_v51  ;;  %v2344_v51 = vadd.f32 %v3957_v10, %v1995_v60  ;;  %v1734_v60 = vmax.f32 %v1435_v55, 0.0 }
 0x35f   : > { %1529 = vmatmul.f32.gmra.mxu2 %v1219_v23 }
 0x360   : > { %2022 = vadd.xlane.f32.xlu2 %v1859_v59  ;;  %v332_v59 = vld [vmem:[%s3739_s17 + $0x358] sm:$0xff] }
 0x363   : > { %v4408_v41 = vpop.f32.mrf.mxu3 }
 0x364   : > { %3448 = vmatmul.msk.f32.gmra.mxu3 %vm359_vm0, %v332_v59 }
 0x367   : > { %2655 = vperm.xlu0 %3567, %v2348_v8   ;;  %1532 = vmatmul.f32.gmra.mxu2 %v1220_v3  ;;  %v993_v8 = vadd.f32 %v4140_v39, %v4284_v38  ;;  %v1866_v38 = vmul.f32 %v4235_v40, %v1734_v60  ;;  %v337_v60 = vld [vmem:[%s3739_s17 + $0x380] sm:$0xff] }
 0x369   : > { %v1222_v23 = vmax.f32 %v993_v8, 0.0  ;;  %v1002_v8 = vadd.f32 %v4140_v39, %v4316_v49 }
 0x36b   : > { %v4414_v36 = vpop.f32.mrf.mxu3  ;;  %v1225_v27 = vmax.f32 %v1002_v8, 0.0  ;;  %v1227_v8 = vmax.f32 %v1008_v22, 0.0 }
 0x36c   : > { %3449 = vmatmul.msk.f32.gmra.mxu3 %vm359_vm0, %v333_v6  ;;  %v336_v6 = vld [vmem:[%s3739_s17 + $0x378] sm:$0xff] }
 0x36f   : > { %1535 = vmatmul.f32.gmra.mxu2 %v1221_v61  ;;  %v1423_v61 = vadd.f32 %v4280_v32, %v4312_v37  ;;  %v1861_v37 = vmul.f32 %v4235_v40, %v1729_v5  ;;  %v4463_v5 = vpop.f32.mrf.mxu1 }
 0x371   : > { %v1730_v55 = vmax.f32 %v1423_v61, 0.0  ;;  %v338_v61 = vld [vmem:[%s3739_s17 + $0x388] sm:$0xff] }
 0x373   : > { %v4421_v3 = vpop.f32.mrf.mxu3  ;;  %v1862_v2 = vmul.f32 %v4235_v40, %v1730_v55 }
 0x374   : > { %3450 = vmatmul.msk.f32.gmra.mxu3 %vm359_vm0, %v334_v47 }
 0x377   : > { %2643 = vperm.xlu1 %3566, %v2344_v51   ;;  %1538 = vmatmul.f32.gmra.mxu2 %v1222_v23  ;;  %v335_v51 = vld [vmem:[%s3739_s17 + $0x370] sm:$0xff]  ;;  %v4440_v23 = vpop.f32.mrf.mxu2 }
 0x378   : > { %2649 = vperm.xlu2 %3565, %v2346_v50   ;;  %v999_v50 = vadd.f32 %v4140_v39, %v4307_v9  ;;  %v4437_v9 = vpop.permute.xlu1 %2616 }
 0x379   : > { %5891 = vst [vmem:[#allocation21_spill] sm:$0xff] %v4437_v9 }
 0x37a   : > { %v1224_v7 = vmax.f32 %v999_v50, 0.0 }
 0x37b   : > { %v4428_v59 = vpop.f32.mrf.mxu3 }
 0x37c   : > { %3451 = vmatmul.msk.f32.gmra.mxu3 %vm359_vm0, %v335_v51 }
 0x37f   : > { %1541 = vmatmul.f32.gmra.mxu2 %v1223_v12  ;;  %v1005_v12 = vadd.f32 %v4140_v39, %v4327_v63 }
 0x380   : > { %v2009_v49 = vpop.xlane.xlu1 %2008 }
 0x381   : > { %v2351_v51 = vadd.f32 %v3976_v31, %v2009_v49 }
 0x383   : > { %v4442_v47 = vpop.f32.mrf.mxu3 }
 0x384   : > { %3452 = vmatmul.msk.f32.gmra.mxu3 %vm359_vm0, %v336_v6  ;;  %v4461_v6 = vpop.permute.xlu2 %2613 }
 0x385   : > { %5893 = vst [vmem:[#allocation23_spill] sm:$0xff] %v4461_v6  ;;  %v341_v6 = vld [vmem:[%s3739_s17 + $0x3a0] sm:$0xff] }
 0x387   : > { %1544 = vmatmul.f32.gmra.mxu2 %v1224_v7  ;;  %v1226_v7 = vmax.f32 %v1005_v12, 0.0  ;;  %v1228_v12 = vmax.f32 %v1011_v19, 0.0 }
 0x38b   : > { %v4453_v50 = vpop.f32.mrf.mxu3 }
 0x38c   : > { %3453 = vmatmul.msk.f32.gmra.mxu3 %vm359_vm0, %v337_v60  ;;  %v2005_v60 = vpop.xlane.xlu2 %2004 }
 0x38d   : > { %v2349_v22 = vadd.f32 %v3969_v24, %v2005_v60  ;;  %v1017_v60 = vadd.f32 %v4140_v39, %v4354_v16 }
 0x38f   : > { %1547 = vmatmul.f32.gmra.mxu2 %v1225_v27  ;;  %v4467_v27 = vpop.permute.xlu0 %2601 }
 0x390   : > { %5894 = vst [vmem:[#allocation24_spill] sm:$0xff] %v4467_v27 }
 0x391   : > { %2036 = vadd.xlane.f32.xlu0 %v1866_v38  ;;  %v4450_v38 = vpop.f32.mrf.mxu2 }
 0x392   : > { %5892 = vst [vmem:[#allocation22_spill] sm:$0xff] %v4450_v38 }
 0x393   : > { %v4465_v55 = vpop.f32.mrf.mxu3 }
 0x394   : > { %3454 = vmatmul.msk.f32.gmra.mxu3 %vm359_vm0, %v338_v61  ;;  %v340_v61 = vld [vmem:[%s3739_s17 + $0x398] sm:$0xff] }
 0x397   : > { %1550 = vmatmul.f32.gmra.mxu2 %v1226_v7  ;;  %v4477_v7 = vpop.f32.mrf.mxu1 }
 0x39a   : > { %v4459_v63 = vpop.f32.mrf.mxu2 }
 0x39f   : > { %1553 = vmatmul.f32.gmra.mxu2 %v1227_v8  ;;  %v4475_v49 = vpop.f32.mrf.mxu3 }
 0x3a1   : > { %2028 = vadd.xlane.f32.xlu2 %v1862_v2  ;;  %2026 = vadd.xlane.f32.xlu1 %v1861_v37  ;;  %v339_v2 = vld [vmem:[%s3739_s17 + $0x390] sm:$0xff] }
 0x3a2   : > { %3455 = vmatmul.msk.f32.gmra.mxu3 %vm359_vm0, %v339_v2  ;;  %v4473_v37 = vpop.f32.mrf.mxu2 }
 0x3a5   : > { %2664 = vperm.xlu0 %3567, %v2351_v51   ;;  %v2001_v51 = vpop.xlane.xlu0 %2000 }
 0x3a6   : > { %v2347_v8 = vadd.f32 %v3966_v20, %v2001_v51 }
 0x3a7   : > { %1556 = vmatmul.f32.gmra.mxu2 %v1228_v12  ;;  %v4487_v19 = vpop.f32.mrf.mxu3  ;;  %v1443_v12 = vpop.f32.mrf.mxu1 }
 0x3a8   : > { %v1444_v52 = vadd.f32 %v4280_v32, %v1443_v12  ;;  %v1023_v12 = vadd.f32 %v4140_v39, %v4375_v15  ;;  %v344_v15 = vld [vmem:[%s3739_s17 + $0x3b8] sm:$0xff] }
 0x3aa   : > { %3456 = vmatmul.msk.f32.gmra.mxu3 %vm359_vm0, %v340_v61  ;;  %v4485_v2 = vpop.f32.mrf.mxu2  ;;  %v1230_v61 = vmax.f32 %v1017_v60, 0.0  ;;  %v343_v60 = vld [vmem:[%s3739_s17 + $0x3b0] sm:$0xff] }
 0x3ab   : > { %5895 = vst [vmem:[#allocation25_spill] sm:$0xff] %v4485_v2  ;;  %v342_v2 = vld [vmem:[%s3739_s17 + $0x3a8] sm:$0xff] }
 0x3af   : > { %1559 = vmatmul.f32.gmra.mxu2 %v1229_v35  ;;  %v1020_v35 = vadd.f32 %v4140_v39, %v4365_v30  ;;  %v1232_v30 = vmax.f32 %v1023_v12, 0.0 }
 0x3b2   : > { %3457 = vmatmul.msk.f32.gmra.mxu3 %vm359_vm0, %v341_v6  ;;  %v4493_v51 = vpop.f32.mrf.mxu2 }
 0x3b3   : > { %5896 = vst [vmem:[#allocation26_spill] sm:$0xff] %v4493_v51  ;;  %v1231_v51 = vmax.f32 %v1020_v35, 0.0  ;;  %v1026_v35 = vadd.f32 %v4140_v39, %v4381_v43  ;;  %v1029_v43 = vadd.f32 %v4140_v39, %v4390_v57  ;;  %v1032_v57 = vadd.f32 %v4140_v39, %v4398_v44  ;;  %v4555_v44 = vpop.permute.xlu0 %2610 }
 0x3b4   : > { %5903 = vst [vmem:[#allocation33_spill] sm:$0xff] %v4555_v44 }
 0x3b5   : > { %v1233_v12 = vmax.f32 %v1026_v35, 0.0  ;;  %v1234_v35 = vmax.f32 %v1029_v43, 0.0  ;;  %v1035_v43 = vadd.f32 %v4140_v39, %v4408_v41 }
 0x3b7   : > { %1562 = vmatmul.f32.gmra.mxu2 %v1230_v61  ;;  %v4515_v61 = vpop.permute.xlu1 %2625 }
 0x3b8   : > { %5898 = vst [vmem:[#allocation28_spill] sm:$0xff] %v4515_v61 }
 0x3b9   : > { %2658 = vperm.xlu2 %3565, %v2349_v22   ;;  %v4496_v22 = vpop.f32.mrf.mxu3 }
 0x3ba   : > { %2652 = vperm.xlu1 %3566, %v2347_v8   ;;  %v1737_v8 = vmax.f32 %v1444_v52, 0.0  ;;  %3458 = vmatmul.msk.f32.gmra.mxu3 %vm359_vm0, %v342_v2  ;;  %v4502_v16 = vpop.f32.mrf.mxu2 }
 0x3bb   : > { %v2007_v41 = vpop.xlane.xlu0 %2006 }
 0x3bc   : > { %v1869_v6 = vmul.f32 %v4235_v40, %v1737_v8  ;;  %v1432_v8 = vadd.f32 %v4280_v32, %v4405_v53 }
 0x3bf   : > { %1565 = vmatmul.f32.gmra.mxu2 %v1231_v51  ;;  %v1429_v51 = vadd.f32 %v4280_v32, %v4392_v18  ;;  %v2015_v9 = vpop.xlane.xlu1 %2014 }
 0x3c1   : > { %v4505_v28 = vpop.f32.mrf.mxu3 }
 0x3c2   : > { %3459 = vmatmul.msk.f32.gmra.mxu3 %vm359_vm0, %v343_v60  ;;  %v4511_v52 = vpop.f32.mrf.mxu2 }
 0x3c3   : > { %5897 = vst [vmem:[#allocation27_spill] sm:$0xff] %v4511_v52  ;;  %v1732_v52 = vmax.f32 %v1429_v51, 0.0 }
 0x3c5   : > { %v1864_v18 = vmul.f32 %v4235_v40, %v1732_v52 }
 0x3c7   : > { %1568 = vmatmul.f32.gmra.mxu2 %v1232_v30  ;;  %v345_v30 = vld [vmem:[%s3739_s17 + $0x3c0] sm:$0xff] }
 0x3c9   : > { %v4513_v2 = vpop.f32.mrf.mxu3 }
 0x3ca   : > { %3460 = vmatmul.msk.f32.gmra.mxu3 %vm359_vm0, %v344_v15  ;;  %v4525_v60 = vpop.f32.mrf.mxu2 }
 0x3cb   : > { %5899 = vst [vmem:[#allocation29_spill] sm:$0xff] %v4525_v60  ;;  %v1038_v60 = vadd.f32 %v4140_v39, %v4414_v36  ;;  %v1041_v36 = vadd.f32 %v4140_v39, %v4421_v3 }
 0x3cf   : > { %2042 = vadd.xlane.f32.xlu0 %v1869_v6  ;;  %v1733_v6 = vmax.f32 %v1432_v8, 0.0  ;;  %1571 = vmatmul.f32.gmra.mxu2 %v1233_v12  ;;  %v2354_v8 = vadd.f32 %v3983_v42, %v2015_v9  ;;  %v4543_v12 = vpop.f32.mrf.mxu1  ;;  %v1235_v9 = vmax.f32 %v1032_v57, 0.0 }
 0x3d1   : > { %v4527_v61 = vpop.f32.mrf.mxu3  ;;  %v1865_v53 = vmul.f32 %v4235_v40, %v1733_v6  ;;  %v346_v6 = vld [vmem:[%s3739_s17 + $0x3c8] sm:$0xff] }
 0x3d2   : > { %3461 = vmatmul.msk.f32.gmra.mxu3 %vm359_vm0, %v345_v30  ;;  %v4538_v51 = vpop.f32.mrf.mxu2 }
 0x3d3   : > { %5900 = vst [vmem:[#allocation30_spill] sm:$0xff] %v4538_v51 }
 0x3d7   : > { %1574 = vmatmul.f32.gmra.mxu2 %v1234_v35  ;;  %v4558_v35 = vpop.f32.mrf.mxu1 }
 0x3d9   : > { %v4536_v15 = vpop.f32.mrf.mxu3 }
 0x3da   : > { %3462 = vmatmul.msk.f32.gmra.mxu3 %vm359_vm0, %v346_v6  ;;  %v4552_v30 = vpop.f32.mrf.mxu2 }
 0x3db   : > { %5902 = vst [vmem:[#allocation32_spill] sm:$0xff] %v4552_v30 }
 0x3df   : > { %1577 = vmatmul.f32.gmra.mxu2 %v1235_v9  ;;  %v348_v9 = vld [vmem:[%s3739_s17 + $0x3d8] sm:$0xff]  ;;  %v1452_v38 = vpop.f32.mrf.mxu1 }
 0x3e1   : > { %v4546_v52 = vpop.f32.mrf.mxu3 }
 0x3e2   : > { %2034 = vadd.xlane.f32.xlu2 %v1865_v53  ;;  %v4548_v53 = vpop.permute.xlu2 %2622 }
 0x3e3   : > { %2673 = vperm.xlu0 %3567, %v2354_v8   ;;  %5901 = vst [vmem:[#allocation31_spill] sm:$0xff] %v4548_v53  ;;  %v1236_v8 = vmax.f32 %v1035_v43, 0.0  ;;  %v4566_v53 = vpop.f32.mrf.mxu2  ;;  %v2350_v43 = vadd.f32 %v4022_v21, %v2007_v41 }
 0x3e4   : > { %2032 = vadd.xlane.f32.xlu1 %v1864_v18  ;;  %v347_v18 = vld [vmem:[%s3739_s17 + $0x3d0] sm:$0xff]  ;;  %5904 = vst [vmem:[#allocation34_spill] sm:$0xff] %v4566_v53  ;;  %v350_v53 = vld [vmem:[%s3739_s17 + $0x3e8] sm:$0xff] }
 0x3e5   : > { %3463 = vmatmul.msk.f32.gmra.mxu3 %vm359_vm0, %v347_v18  ;;  %v1237_v18 = vmax.f32 %v1038_v60, 0.0 }
 0x3e7   : > { %1580 = vmatmul.f32.gmra.mxu2 %v1236_v8  ;;  %v349_v8 = vld [vmem:[%s3739_s17 + $0x3e0] sm:$0xff] }
 0x3e9   : > { %v4560_v57 = vpop.f32.mrf.mxu3 }
 0x3ea   : > { %v2011_v6 = vpop.xlane.xlu2 %2010 }
 0x3eb   : > { %v2352_v30 = vadd.f32 %v3972_v26, %v2011_v6  ;;  %v1453_v6 = vadd.f32 %v4280_v32, %v1452_v38 }
 0x3ed   : > { %3464 = vmatmul.msk.f32.gmra.mxu3 %vm359_vm0, %v348_v9  ;;  %v4577_v9 = vpop.f32.mrf.mxu2  ;;  %v1740_v60 = vmax.f32 %v1453_v6, 0.0 }
 0x3ee   : > { %5905 = vst [vmem:[#allocation35_spill] sm:$0xff] %v4577_v9 }
 0x3ef   : > { %1583 = vmatmul.f32.gmra.mxu2 %v1237_v18  ;;  %v1872_v3 = vmul.f32 %v4235_v40, %v1740_v60  ;;  %v1441_v60 = vadd.f32 %v4280_v32, %v4477_v7 }
 0x3f1   : > { %v4570_v51 = vpop.f32.mrf.mxu3 }
 0x3f5   : > { %3465 = vmatmul.msk.f32.gmra.mxu3 %vm359_vm0, %v349_v8  ;;  %v4593_v8 = vld [vmem:[%s5841_s4] ss:$0 sm:$0xff] }
 0x3f6   : > { %v1053_v44 = vadd.f32 %v4593_v8, %v4465_v55  ;;  %v4624_v55 = vpop.f32.mrf.mxu1 }
 0x3f9   : > { %v4579_v41 = vpop.f32.mrf.mxu3 }
 0x3fa   : > { %2667 = vperm.xlu2 %3565, %v2352_v30   ;;  %v1238_v30 = vmax.f32 %v1041_v36, 0.0  ;;  %v4588_v36 = vpop.f32.mrf.mxu2 }
 0x3fb   : > { %5906 = vst [vmem:[#allocation36_spill] sm:$0xff] %v4588_v36 }
 0x3fc   : > { %1586 = vmatmul.f32.gmra.mxu2 %v1238_v30 }
 0x3fd   : > { %2661 = vperm.xlu1 %3566, %v2350_v43   ;;  %v1044_v43 = vadd.f32 %v4140_v39, %v4428_v59  ;;  %3466 = vmatmul.msk.f32.gmra.mxu3 %vm359_vm0, %v350_v53  ;;  %v1047_v39 = vadd.f32 %v4593_v8, %v4442_v47  ;;  %v351_v59 = vld [vmem:[%s3739_s17 + $0x3f0] sm:$0xff]  ;;  %v4599_v53 = vpop.permute.xlu1 %2634  ;;  %v1438_v47 = vadd.f32 %v4280_v32, %v4463_v5 }
 0x3ff   : > { %v1239_v18 = vmax.f32 %v1044_v43, 0.0  ;;  %v1240_v6 = vmax.f32 %v1047_v39, 0.0  ;;  %v1050_v43 = vadd.f32 %v4593_v8, %v4453_v50  ;;  %v1735_v9 = vmax.f32 %v1438_v47, 0.0 }
 0x401   : > { %v4586_v38 = vpop.f32.mrf.mxu3  ;;  %v1241_v36 = vmax.f32 %v1050_v43, 0.0  ;;  %v1867_v5 = vmul.f32 %v4235_v40, %v1735_v9  ;;  %v1056_v43 = vadd.f32 %v4593_v8, %v4475_v49  ;;  %v4636_v9 = vpop.permute.xlu0 %2619 }
 0x402   : > { %5910 = vst [vmem:[#allocation40_spill] sm:$0xff] %v4636_v9 }
 0x403   : > { %v1243_v47 = vmax.f32 %v1056_v43, 0.0  ;;  %v1062_v43 = vadd.f32 %v4593_v8, %v4496_v22 }
 0x404   : > { %1589 = vmatmul.f32.gmra.mxu2 %v1239_v18  ;;  %v1736_v18 = vmax.f32 %v1441_v60, 0.0 }
 0x405   : > { %3467 = vmatmul.msk.f32.gmra.mxu3 %vm359_vm0, %v351_v59  ;;  %v2021_v59 = vpop.xlane.xlu1 %2020 }
 0x406   : > { %v2357_v7 = vadd.f32 %v3950_v1, %v2021_v59  ;;  %v1868_v45 = vmul.f32 %v4235_v40, %v1736_v18  ;;  %v4630_v18 = vpop.permute.xlu2 %2631 }
 0x409   : > { %v4601_v30 = vpop.f32.mrf.mxu3 }
 0x40c   : > { %1592 = vmatmul.f32.gmra.mxu2 %v1240_v6  ;;  %v1242_v6 = vmax.f32 %v1053_v44, 0.0  ;;  %v4634_v44 = vpop.f32.mrf.mxu1 }
 0x40d   : > { %2048 = vadd.xlane.f32.xlu0 %v1872_v3  ;;  %v4607_v3 = vpop.f32.mrf.mxu2 }
 0x40e   : > { %5907 = vst [vmem:[#allocation37_spill] sm:$0xff] %v4607_v3  ;;  %v2013_v3 = vpop.xlane.xlu0 %2012 }
 0x40f   : > { %v2353_v9 = vadd.f32 %v4028_v29, %v2013_v3 }
 0x411   : > { %v4611_v39 = vpop.f32.mrf.mxu3 }
 0x414   : > { %1595 = vmatmul.f32.gmra.mxu2 %v1241_v36 }
 0x415   : > { %v4617_v50 = vpop.f32.mrf.mxu2 }
 0x416   : > { %5908 = vst [vmem:[#allocation38_spill] sm:$0xff] %v4617_v50  ;;  %v1245_v50 = vmax.f32 %v1062_v43, 0.0 }
 0x419   : > { %v4620_v60 = vpop.f32.mrf.mxu3 }
 0x41c   : > { %1598 = vmatmul.f32.gmra.mxu2 %v1242_v6 }
 0x41d   : > { %v4626_v59 = vpop.f32.mrf.mxu2 }
 0x41e   : > { %5909 = vst [vmem:[#allocation39_spill] sm:$0xff] %v4626_v59 }
 0x421   : > { %2682 = vperm.xlu0 %3567, %v2357_v7   ;;  %v4628_v36 = vpop.f32.mrf.mxu3 }
 0x423   : > { %2040 = vadd.xlane.f32.xlu2 %v1868_v45  ;;  %v1059_v45 = vadd.f32 %v4593_v8, %v4487_v19  ;;  %v1461_v19 = vpop.f32.mrf.mxu1 }
 0x424   : > { %1601 = vmatmul.f32.gmra.mxu2 %v1243_v47 }
 0x425   : > { %v1244_v49 = vmax.f32 %v1059_v45, 0.0  ;;  %v4638_v7 = vpop.f32.mrf.mxu2  ;;  %v1065_v45 = vadd.f32 %v4593_v8, %v4505_v28 }
 0x426   : > { %5911 = vst [vmem:[#allocation41_spill] sm:$0xff] %v4638_v7  ;;  %v1462_v7 = vadd.f32 %v4280_v32, %v1461_v19 }
 0x427   : > { %2038 = vadd.xlane.f32.xlu1 %v1867_v5  ;;  %v2017_v5 = vpop.xlane.xlu2 %2016  ;;  %v1246_v22 = vmax.f32 %v1065_v45, 0.0 }
 0x428   : > { %v2355_v59 = vadd.f32 %v3989_v48, %v2017_v5 }
 0x429   : > { %v4640_v6 = vpop.f32.mrf.mxu3 }
 0x42c   : > { %1604 = vmatmul.f32.gmra.mxu2 %v1244_v49  ;;  %v1743_v49 = vmax.f32 %v1462_v7, 0.0 }
 0x42d   : > { %v4651_v56 = vpop.f32.mrf.mxu2 }
 0x42e   : > { %5912 = vst [vmem:[#allocation42_spill] sm:$0xff] %v4651_v56  ;;  %v1875_v43 = vmul.f32 %v4235_v40, %v1743_v49 }
 0x431   : > { %v4645_v47 = vpop.f32.mrf.mxu3 }
 0x434   : > { %1607 = vmatmul.f32.gmra.mxu2 %v1245_v50  ;;  %v1071_v50 = vadd.f32 %v4593_v8, %v4527_v61 }
 0x435   : > { %v4658_v3 = vpop.f32.mrf.mxu2 }
 0x436   : > { %5913 = vst [vmem:[#allocation43_spill] sm:$0xff] %v4658_v3  ;;  %v1248_v7 = vmax.f32 %v1071_v50, 0.0  ;;  %v1447_v50 = vadd.f32 %v4280_v32, %v4543_v12  ;;  %v1080_v12 = vadd.f32 %v4593_v8, %v4560_v57 }
 0x439   : > { %v4653_v5 = vpop.f32.mrf.mxu3 }
 0x43b   : > { %2676 = vperm.xlu2 %3565, %v2355_v59   ;;  %v1068_v59 = vadd.f32 %v4593_v8, %v4513_v2  ;;  %v1074_v2 = vadd.f32 %v4593_v8, %v4536_v15 }
 0x43c   : > { %1610 = vmatmul.f32.gmra.mxu2 %v1246_v22  ;;  %v1450_v22 = vadd.f32 %v4280_v32, %v4558_v35  ;;  %v1738_v35 = vmax.f32 %v1447_v50, 0.0 }
 0x43d   : > { %v1247_v27 = vmax.f32 %v1068_v59, 0.0  ;;  %v4666_v19 = vpop.f32.mrf.mxu2  ;;  %v1249_v59 = vmax.f32 %v1074_v2, 0.0 }
 0x43e   : > { %5914 = vst [vmem:[#allocation44_spill] sm:$0xff] %v4666_v19  ;;  %v1077_v19 = vadd.f32 %v4593_v8, %v4546_v52  ;;  %v1870_v2 = vmul.f32 %v4235_v40, %v1738_v35  ;;  %v1251_v52 = vmax.f32 %v1080_v12, 0.0  ;;  %v4703_v35 = vpop.permute.xlu0 %2628 }
 0x440   : > { %2670 = vperm.xlu1 %3566, %v2353_v9   ;;  %v4664_v9 = vpop.permute.xlu1 %2643 }
 0x441   : > { %v4660_v28 = vpop.f32.mrf.mxu3 }
 0x444   : > { %1613 = vmatmul.f32.gmra.mxu2 %v1247_v27 }
 0x445   : > { %v4675_v27 = vpop.f32.mrf.mxu2 }
 0x446   : > { %5915 = vst [vmem:[#allocation45_spill] sm:$0xff] %v4675_v27 }
 0x448   : > { %v2027_v49 = vpop.xlane.xlu1 %2026 }
 0x449   : > { %v4668_v45 = vpop.f32.mrf.mxu3  ;;  %v2360_v61 = vadd.f32 %v3957_v10, %v2027_v49  ;;  %v1089_v10 = vadd.f32 %v4593_v8, %v4586_v38 }
 0x44b   : > { %2054 = vadd.xlane.f32.xlu0 %v1875_v43  ;;  %v1739_v43 = vmax.f32 %v1450_v22, 0.0  ;;  %v4685_v22 = vpop.f32.mrf.mxu1  ;;  %v1254_v25 = vmax.f32 %v1089_v10, 0.0  ;;  %v1095_v10 = vadd.f32 %v4593_v8, %v4611_v39 }
 0x44c   : > { %1616 = vmatmul.f32.gmra.mxu2 %v1248_v7  ;;  %v1250_v7 = vmax.f32 %v1077_v19, 0.0  ;;  %v1083_v19 = vadd.f32 %v4593_v8, %v4570_v51 }
 0x44d   : > { %v1871_v15 = vmul.f32 %v4235_v40, %v1739_v43  ;;  %v4691_v27 = vpop.f32.mrf.mxu2  ;;  %v4695_v43 = vpop.permute.xlu2 %2640 }
 0x44e   : > { %5916 = vst [vmem:[#allocation46_spill] sm:$0xff] %v4691_v27 }
 0x451   : > { %v4679_v3 = vpop.f32.mrf.mxu3 }
 0x454   : > { %1619 = vmatmul.f32.gmra.mxu2 %v1249_v59 }
 0x455   : > { %v4701_v50 = vpop.f32.mrf.mxu2 }
 0x456   : > { %5917 = vst [vmem:[#allocation47_spill] sm:$0xff] %v4701_v50 }
 0x459   : > { %v4687_v49 = vpop.f32.mrf.mxu3 }
 0x45c   : > { %1622 = vmatmul.f32.gmra.mxu2 %v1250_v7  ;;  %v2023_v7 = vpop.xlane.xlu2 %2022 }
 0x45d   : > { %v2358_v12 = vadd.f32 %v3996_v58, %v2023_v7  ;;  %v4710_v51 = vpop.f32.mrf.mxu2  ;;  %v352_v58 = vld [vmem:[%s3739_s17 + $0x3f8] sm:$0xff]  ;;  %s3260_s17 = scalar_lea.sflag [#allocation3], %s216_s12 }
 0x45e   : > { %5918 = vst [vmem:[#allocation48_spill] sm:$0xff] %v4710_v51  ;;  %3468 = vmatmul.msk.f32.gmra.mxu3 %vm359_vm0, %v352_v58  ;;  %v1459_v58 = vadd.f32 %v4280_v32, %v4634_v44  ;;  %v4750_v44 = vld [vmem:[%s5840_s3] ss:$0 sm:$0xff]  ;;  %vm3243_vm0 = vcmask 1041409  }
 0x45f   : > { %2691 = vperm.xlu0 %3567, %v2360_v61   ;;  %v4699_v61 = vpop.f32.mrf.mxu1 }
 0x461   : > { %v4693_v59 = vpop.f32.mrf.mxu3 }
 0x464   : > { %2046 = vadd.xlane.f32.xlu2 %v1871_v15  ;;  %1625 = vmatmul.f32.gmra.mxu2 %v1251_v52  ;;  %v1252_v15 = vmax.f32 %v1083_v19, 0.0  ;;  %v2019_v19 = vpop.xlane.xlu0 %2018 }
 0x465   : > { %v4718_v7 = vpop.f32.mrf.mxu2 }
 0x466   : > { %5919 = vst [vmem:[#allocation49_spill] sm:$0xff] %v4718_v7 }
 0x467   : > { %v1470_v27 = vpop.f32.mrf.mxu1 }
 0x468   : > { %v1471_v52 = vadd.f32 %v4280_v32, %v1470_v27  ;;  %v1092_v27 = vadd.f32 %v4593_v8, %v4601_v30 }
 0x469   : > { %v4705_v57 = vpop.f32.mrf.mxu3 }
 0x46a   : > { %2044 = vadd.xlane.f32.xlu1 %v1870_v2  ;;  %v1086_v2 = vadd.f32 %v4593_v8, %v4579_v41  ;;  %v2356_v41 = vadd.f32 %v3960_v13, %v2019_v19  ;;  %v1255_v51 = vmax.f32 %v1092_v27, 0.0  ;;  %v1742_v27 = vmax.f32 %v1459_v58, 0.0 }
 0x46c   : > { %1628 = vmatmul.f32.gmra.mxu2 %v1252_v15  ;;  %v1253_v56 = vmax.f32 %v1086_v2, 0.0  ;;  %v1746_v15 = vmax.f32 %v1471_v52, 0.0  ;;  %v1256_v52 = vmax.f32 %v1095_v10, 0.0  ;;  %v1101_v10 = vadd.f32 %v4593_v8, %v4628_v36 }
 0x46d   : > { %v1104_v36 = vadd.f32 %v4593_v8, %v4640_v6 }
 0x46e   : > { %v1878_v2 = vmul.f32 %v4235_v40, %v1746_v15  ;;  %v4733_v40 = vpop.permute.xlu1 %2652 }
 0x46f   : > { %v1259_v58 = vmax.f32 %v1104_v36, 0.0 }
 0x471   : > { %v4713_v50 = vpop.f32.mrf.mxu3 }
 0x474   : > { %1631 = vmatmul.f32.gmra.mxu2 %v1253_v56  ;;  %v4731_v56 = vpop.f32.mrf.mxu2 }
 0x475   : > { %5920 = vst [vmem:[#allocation50_spill] sm:$0xff] %v4731_v56 }
 0x47c   : > { %2685 = vperm.xlu2 %3565, %v2358_v12   ;;  %v4721_v12 = vpop.f32.mrf.mxu3  ;;  %1634 = vmatmul.f32.gmra.mxu2 %v1254_v25  ;;  %v1098_v25 = vadd.f32 %v4593_v8, %v4620_v60  ;;  %v4740_v15 = vpop.f32.mrf.mxu2  ;;  %v1456_v60 = vadd.f32 %v4280_v32, %v4624_v55 }
 0x47d   : > { %5921 = vst [vmem:[#allocation51_spill] sm:$0xff] %v4740_v15 }
 0x483   : > { %2679 = vperm.xlu1 %3566, %v2356_v41   ;;  %v2033_v41 = vpop.xlane.xlu1 %2032 }
 0x484   : > { %v4726_v38 = vpop.f32.mrf.mxu3  ;;  %1637 = vmatmul.f32.gmra.mxu2 %v1255_v51  ;;  %v2363_v51 = vadd.f32 %v3966_v20, %v2033_v41  ;;  %v1741_v41 = vmax.f32 %v1456_v60, 0.0  ;;  %v1110_v60 = vadd.f32 %v4593_v8, %v4653_v5 }
 0x486   : > { %v1873_v55 = vmul.f32 %v4750_v44, %v1741_v41  ;;  %v4772_v41 = vpop.permute.xlu0 %2637 }
 0x489   : > { %2060 = vadd.xlane.f32.xlu0 %v1878_v2  ;;  %v1257_v2 = vmax.f32 %v1098_v25, 0.0  ;;  %v4753_v25 = vpop.f32.mrf.mxu2 }
 0x48a   : > { %5922 = vst [vmem:[#allocation52_spill] sm:$0xff] %v4753_v25 }
 0x48c   : > { %v1139_v19 = vpop.f32.mrf.mxu3  ;;  %1640 = vmatmul.f32.gmra.mxu2 %v1256_v52  ;;  %v1874_v52 = vmul.f32 %v4750_v44, %v1742_v27  ;;  %v4766_v27 = vpop.permute.xlu2 %2649 }
 0x48d   : > { %v1140_v30 = vadd.f32 %v4593_v8, %v1139_v19  ;;  %v1258_v19 = vmax.f32 %v1101_v10, 0.0 }
 0x48f   : > { %v1271_v39 = vmax.f32 %v1140_v30, 0.0  ;;  %v4755_v30 = vpop.f32.mrf.mxu1 }
 0x491   : > { %1685 = vmatmul.f32.vlgmr.msrb.gmra.mxu3 %v1271_v39  ;;  %v4760_v39 = vpop.f32.mrf.mxu2 }
 0x492   : > { %5923 = vst [vmem:[#allocation53_spill] sm:$0xff] %v4760_v39 }
 0x494   : > { %1643 = vmatmul.f32.gmra.mxu2 %v1257_v2 }
 0x497   : > { %v4762_v2 = vpop.f32.mrf.mxu1 }
 0x499   : > { %v4770_v6 = vpop.f32.mrf.mxu2 }
 0x49a   : > { %5924 = vst [vmem:[#allocation54_spill] sm:$0xff] %v4770_v6 }
 0x49c   : > { %1646 = vmatmul.f32.gmra.mxu2 %v1258_v19 }
 0x49d   : > { %2700 = vperm.xlu0 %3567, %v2363_v51   ;;  %v1107_v51 = vadd.f32 %v4593_v8, %v4645_v47  ;;  %v1113_v47 = vadd.f32 %v4593_v8, %v4660_v28  ;;  %v4786_v28 = vpop.permute.xlu1 %2661 }
 0x49f   : > { %v1260_v10 = vmax.f32 %v1107_v51, 0.0  ;;  %v1479_v19 = vpop.f32.mrf.mxu1  ;;  %v2025_v51 = vpop.xlane.xlu0 %2024  ;;  %v1262_v39 = vmax.f32 %v1113_v47, 0.0 }
 0x4a0   : > { %v1480_v25 = vadd.f32 %v4280_v32, %v1479_v19  ;;  %v2359_v7 = vadd.f32 %v4001_v0, %v2025_v51  ;;  %v1125_v51 = vadd.f32 %v4593_v8, %v4693_v59 }
 0x4a1   : > { %v4778_v5 = vpop.f32.mrf.mxu2 }
 0x4a2   : > { %5925 = vst [vmem:[#allocation55_spill] sm:$0xff] %v4778_v5 }
 0x4a4   : > { %1649 = vmatmul.f32.gmra.mxu2 %v1259_v58  ;;  %v1749_v58 = vmax.f32 %v1480_v25, 0.0  ;;  %v1119_v25 = vadd.f32 %v4593_v8, %v4679_v3 }
 0x4a5   : > { %2052 = vadd.xlane.f32.xlu2 %v1874_v52  ;;  %v2029_v52 = vpop.xlane.xlu2 %2028 }
 0x4a6   : > { %v2361_v36 = vadd.f32 %v4007_v4, %v2029_v52  ;;  %v1264_v19 = vmax.f32 %v1119_v25, 0.0 }
 0x4a9   : > { %v4784_v52 = vpop.f32.mrf.mxu2 }
 0x4aa   : > { %5926 = vst [vmem:[#allocation56_spill] sm:$0xff] %v4784_v52 }
 0x4ac   : > { %1652 = vmatmul.f32.gmra.mxu2 %v1260_v10  ;;  %v1881_v10 = vmul.f32 %v4750_v44, %v1749_v58 }
 0x4ad   : > { %2050 = vadd.xlane.f32.xlu1 %v1873_v55  ;;  %v1261_v55 = vmax.f32 %v1110_v60, 0.0  ;;  %v1116_v60 = vadd.f32 %v4593_v8, %v4668_v45 }
 0x4af   : > { %v1263_v32 = vmax.f32 %v1116_v60, 0.0  ;;  %v4807_v60 = vpop.f32.mrf.mxu1 }
 0x4b4   : > { %1655 = vmatmul.f32.gmra.mxu2 %v1261_v55  ;;  %v2039_v55 = vpop.xlane.xlu1 %2038 }
 0x4b5   : > { %v2366_v45 = vadd.f32 %v4022_v21, %v2039_v55 }
 0x4bc   : > { %1658 = vmatmul.f32.gmra.mxu2 %v1262_v39  ;;  %v4798_v39 = vld [vmem:[%s5841_s4 + $0x1] ss:$0 sm:$0xff] }
 0x4bd   : > { %2694 = vperm.xlu2 %3565, %v2361_v36   ;;  %v4790_v36 = vpop.f32.mrf.mxu2  ;;  %v1468_v47 = vadd.f32 %v4798_v39, %v4699_v61  ;;  %v1465_v25 = vadd.f32 %v4798_v39, %v4685_v22  ;;  %v1128_v61 = vadd.f32 %v4593_v8, %v4705_v57 }
 0x4be   : > { %5927 = vst [vmem:[#allocation57_spill] sm:$0xff] %v4790_v36 }
 0x4bf   : > { %v1745_v58 = vmax.f32 %v1468_v47, 0.0  ;;  %v1267_v59 = vmax.f32 %v1128_v61, 0.0  ;;  %v1131_v47 = vadd.f32 %v4593_v8, %v4713_v50  ;;  %v4827_v61 = vpop.permute.xlu0 %2646 }
 0x4c1   : > { %v1268_v22 = vmax.f32 %v1131_v47, 0.0 }
 0x4c4   : > { %1661 = vmatmul.f32.gmra.mxu2 %v1263_v32  ;;  %v1266_v32 = vmax.f32 %v1125_v51, 0.0  ;;  %v1134_v51 = vadd.f32 %v4593_v8, %v4721_v12 }
 0x4c6   : > { %2688 = vperm.xlu1 %3566, %v2359_v7   ;;  %v1122_v7 = vadd.f32 %v4593_v8, %v4687_v49  ;;  %v1877_v49 = vmul.f32 %v4750_v44, %v1745_v58 }
 0x4c7   : > { %2066 = vadd.xlane.f32.xlu0 %v1881_v10  ;;  %v4804_v10 = vpop.f32.mrf.mxu2 }
 0x4c8   : > { %v1265_v3 = vmax.f32 %v1122_v7, 0.0  ;;  %5928 = vst [vmem:[#allocation58_spill] sm:$0xff] %v4804_v10 }
 0x4cc   : > { %1664 = vmatmul.f32.gmra.mxu2 %v1264_v19  ;;  %v1744_v19 = vmax.f32 %v1465_v25, 0.0  ;;  %v1269_v25 = vmax.f32 %v1134_v51, 0.0 }
 0x4ce   : > { %v1876_v7 = vmul.f32 %v4750_v44, %v1744_v19 }
 0x4cf   : > { %v4813_v55 = vpop.f32.mrf.mxu2 }
 0x4d0   : > { %5929 = vst [vmem:[#allocation59_spill] sm:$0xff] %v4813_v55 }
 0x4d4   : > { %1667 = vmatmul.f32.gmra.mxu2 %v1265_v3  ;;  %v4820_v3 = vpop.permute.xlu2 %2658 }
 0x4d7   : > { %v4822_v58 = vpop.f32.mrf.mxu2 }
 0x4d8   : > { %5930 = vst [vmem:[#allocation60_spill] sm:$0xff] %v4822_v58 }
 0x4db   : > { %2709 = vperm.xlu0 %3567, %v2366_v45   ;;  %v4816_v45 = vpop.f32.mrf.mxu1 }
 0x4dc   : > { %1670 = vmatmul.f32.gmra.mxu2 %v1266_v32 }
 0x4df   : > { %v4830_v19 = vpop.f32.mrf.mxu2 }
 0x4e0   : > { %5931 = vst [vmem:[#allocation61_spill] sm:$0xff] %v4830_v19 }
 0x4e1   : > { %v1142_v19 = vpop.f32.mrf.mxu3 }
 0x4e3   : > { %v1488_v57 = vpop.f32.mrf.mxu1 }
 0x4e4   : > { %1673 = vmatmul.f32.gmra.mxu2 %v1267_v59  ;;  %v1489_v32 = vadd.f32 %v4798_v39, %v1488_v57 }
 0x4e6   : > { %2058 = vadd.xlane.f32.xlu2 %v1877_v49  ;;  %v2035_v49 = vpop.xlane.xlu2 %2034  ;;  %v1752_v59 = vmax.f32 %v1489_v32, 0.0  ;;  %v1143_v32 = vadd.f32 %v4593_v8, %v1142_v19 }
 0x4e7   : > { %v2364_v50 = vadd.f32 %v4015_v11, %v2035_v49  ;;  %v4836_v51 = vpop.f32.mrf.mxu2  ;;  %v4838_v49 = vpop.permute.xlu1 %2670 }
 0x4e8   : > { %v1884_v47 = vmul.f32 %v4750_v44, %v1752_v59  ;;  %5932 = vst [vmem:[#allocation62_spill] sm:$0xff] %v4836_v51  ;;  %v1272_v10 = vmax.f32 %v1143_v32, 0.0 }
 0x4ea   : > { %1688 = vmatmul.f32.gmra.mxu3 %v1272_v10 }
 0x4ec   : > { %1676 = vmatmul.f32.gmra.mxu2 %v1268_v22  ;;  %v2031_v22 = vpop.xlane.xlu0 %2030 }
 0x4ed   : > { %v2362_v57 = vadd.f32 %v3963_v17, %v2031_v22 }
 0x4f0   : > { %2056 = vadd.xlane.f32.xlu1 %v1876_v7  ;;  %v1137_v7 = vadd.f32 %v4593_v8, %v4726_v38  ;;  %v4848_v8 = vpop.permute.xlu2 %2667 }
 0x4f2   : > { %v1270_v12 = vmax.f32 %v1137_v7, 0.0 }
 0x4f4   : > { %1679 = vmatmul.f32.gmra.mxu2 %v1269_v25  ;;  %v1477_v25 = vadd.f32 %v4798_v39, %v4762_v2 }
 0x4f6   : > { %v1748_v59 = vmax.f32 %v1477_v25, 0.0 }
 0x4f8   : > { %v1880_v7 = vmul.f32 %v4750_v44, %v1748_v59 }
 0x4fc   : > { %1682 = vmatmul.f32.gmra.mxu2 %v1270_v12 }
 0x4fe   : > { %2703 = vperm.xlu2 %3565, %v2364_v50   ;;  %v2045_v50 = vpop.xlane.xlu1 %2044 }
 0x4ff   : > { %v2369_v38 = vadd.f32 %v4028_v29, %v2045_v50  ;;  %v1498_v50 = vadd.f32 %v4798_v39, %v4440_v23  ;;  %v1486_v23 = vadd.f32 %v4798_v39, %v4816_v45 }
 0x501   : > { %v1755_v25 = vmax.f32 %v1498_v50, 0.0 }
 0x505   : > { %2072 = vadd.xlane.f32.xlu0 %v1884_v47  ;;  %v1474_v47 = vadd.f32 %v4798_v39, %v4755_v30 }
 0x507   : > { %v1747_v12 = vmax.f32 %v1474_v47, 0.0 }
 0x509   : > { %2697 = vperm.xlu1 %3566, %v2362_v57   ;;  %v1879_v22 = vmul.f32 %v4750_v44, %v1747_v12  ;;  %v2041_v57 = vpop.xlane.xlu2 %2040  ;;  %v4859_v12 = vpop.permute.xlu1 %2679 }
 0x50a   : > { %v2367_v2 = vadd.f32 %v3976_v31, %v2041_v57 }
 0x514   : > { %v1686_v10 = vpop.f32.mrf.mxu3 }
 0x515   : > { %v1687_v19 = vadd.f32 %v4798_v39, %v1686_v10 }
 0x517   : > { %v1818_v32 = vmax.f32 %v1687_v19, 0.0 }
 0x519   : > { %2718 = vperm.xlu0 %3567, %v2369_v38   ;;  %v4854_v38 = vpop.permute.xlu0 %2655  ;;  %v1950_v30 = vmul.f32 %v4750_v44, %v1818_v32  ;;  %v1751_v32 = vmax.f32 %v1486_v23, 0.0 }
 0x520   : > { %v2051_v10 = vpop.xlane.xlu1 %2050 }
 0x521   : > { %v2037_v59 = vpop.xlane.xlu0 %2036  ;;  %v2372_v19 = vadd.f32 %v3960_v13, %v2051_v10 }
 0x522   : > { %v2365_v47 = vadd.f32 %v3969_v24, %v2037_v59 }
 0x527   : > { %2064 = vadd.xlane.f32.xlu2 %v1880_v7  ;;  %v1887_v7 = vmul.f32 %v4750_v44, %v1755_v25 }
 0x533   : > { %2062 = vadd.xlane.f32.xlu1 %v1879_v22  ;;  %v4861_v22 = vpop.permute.xlu0 %2664 }
 0x538   : > { %v4887_v51 = vpop.permute.xlu1 %2688 }
 0x53b   : > { %v2043_v57 = vpop.xlane.xlu0 %2042 }
 0x53f   : > { %2712 = vperm.xlu2 %3565, %v2367_v2   ;;  %v1883_v2 = vmul.f32 %v4750_v44, %v1751_v32 }
 0x543   : > { %2204 = vadd.xlane.f32.xlu0 %v1950_v30  ;;  %v4867_v50 = vpop.permute.xlu0 %2673  ;;  %v1483_v30 = vadd.f32 %v4798_v39, %v4807_v60 }
 0x545   : > { %v1750_v25 = vmax.f32 %v1483_v30, 0.0 }
 0x54b   : > { %2078 = vadd.xlane.f32.xlu0 %v1887_v7  ;;  %v2049_v59 = vpop.xlane.xlu0 %2048  ;;  %v1882_v7 = vmul.f32 %v4750_v44, %v1750_v25  ;;  %v2368_v25 = vadd.f32 %v3972_v26, %v2043_v57 }
 0x54c   : > { %2706 = vperm.xlu1 %3566, %v2365_v47   ;;  %v4872_v47 = vpop.permute.xlu2 %2676 }
 0x553   : > { %v4874_v45 = vpop.permute.xlu0 %2682 }
 0x554   : > { %v2047_v10 = vpop.xlane.xlu2 %2046 }
 0x555   : > { %v2370_v23 = vadd.f32 %v3983_v42, %v2047_v10  ;;  %v1491_v10 = vpop.f32.mrf.mxu1 }
 0x556   : > { %v1492_v36 = vadd.f32 %v4798_v39, %v1491_v10 }
 0x55b   : > { %v4879_v32 = vpop.xlane.xlu0 %2054 }
 0x55d   : > { %v1494_v5 = vpop.f32.mrf.mxu1 }
 0x55f   : > { %2727 = vperm.xlu0 %3567, %v2372_v19   ;;  %v1507_v19 = vadd.f32 %v4798_v39, %v4473_v37 }
 0x563   : > { %v4881_v60 = vpop.permute.xlu0 %2691  ;;  %v2057_v37 = vpop.xlane.xlu1 %2056 }
 0x568   : > { %2070 = vadd.xlane.f32.xlu2 %v1883_v2  ;;  %v1758_v2 = vmax.f32 %v1507_v19, 0.0  ;;  %v4892_v19 = vpop.permute.xlu2 %2685 }
 0x56a   : > { %v1890_v30 = vmul.f32 %v4750_v44, %v1758_v2  ;;  %v1495_v2 = vadd.f32 %v4798_v39, %v1494_v5 }
 0x56c   : > { %v1754_v57 = vmax.f32 %v1495_v2, 0.0 }
 0x56d   : > { %v1689_v15 = vpop.f32.mrf.mxu3 }
 0x56e   : > { %v1690_v5 = vadd.f32 %v4798_v39, %v1689_v15 }
 0x570   : > { %v2053_v52 = vpop.xlane.xlu2 %2052 }
 0x571   : > { %v2373_v42 = vadd.f32 %v3950_v1, %v2053_v52 }
 0x576   : > { %2068 = vadd.xlane.f32.xlu1 %v1882_v7  ;;  %v4885_v7 = vpop.xlane.xlu0 %2060 }
 0x578   : > { %v4901_v56 = vpop.permute.xlu2 %2694 }
 0x57e   : > { %v4889_v55 = vpop.permute.xlu0 %2700 }
 0x580   : > { %2721 = vperm.xlu2 %3565, %v2370_v23   ;;  %v2375_v23 = vadd.f32 %v4001_v0, %v2057_v37  ;;  %v1753_v37 = vmax.f32 %v1492_v36, 0.0  ;;  %v4907_v0 = vpop.xlane.xlu2 %2058 }
 0x588   : > { %v4917_v31 = vpop.permute.xlu2 %2703 }
 0x589   : > { %2084 = vadd.xlane.f32.xlu0 %v1890_v30  ;;  %v4895_v30 = vpop.xlane.xlu0 %2066 }
 0x58a   : > { %5933 = vst [vmem:[#allocation63_spill] sm:$0xff] %v4895_v30 }
 0x58f   : > { %2715 = vperm.xlu1 %3566, %v2368_v25   ;;  %v1886_v25 = vmul.f32 %v4750_v44, %v1754_v57  ;;  %v1819_v57 = vmax.f32 %v1690_v5, 0.0  ;;  %v5937_v5 = vlaneseq }
 0x591   : > { %v4898_v58 = vpop.permute.xlu0 %2709  ;;  %v1951_v10 = vmul.f32 %v4750_v44, %v1819_v57  ;;  %v4927_v57 = vpop.permute.xlu1 %2697 }
 0x599   : > { %v4903_v6 = vpop.xlane.xlu0 %2072 }
 0x59a   : > { %5934 = vst [vmem:[#allocation64_spill] sm:$0xff] %v4903_v6 }
 0x59d   : > { %2736 = vperm.xlu0 %3567, %v2375_v23   ;;  %v1885_v23 = vmul.f32 %v4750_v44, %v1753_v37  ;;  %v4920_v37 = vpop.xlane.xlu2 %2064 }
 0x5a1   : > { %v4909_v2 = vpop.permute.xlu0 %2718 }
 0x5a9   : > { %2076 = vadd.xlane.f32.xlu2 %v1886_v25  ;;  %v1516_v25 = vadd.f32 %v4798_v39, %v4502_v16  ;;  %v4925_v16 = vand.u32 127, %v5937_v5 }
 0x5ab   : > { %v1761_v36 = vmax.f32 %v1516_v25, 0.0  ;;  %v4930_v52 = vadd.s32 4294967288, %v4925_v16  ;;  %v4943_v1 = vadd.s32 4294967280, %v4925_v16 }
 0x5ad   : > { %v1893_v15 = vmul.f32 %v4750_v44, %v1761_v36  ;;  %v2063_v36 = vpop.xlane.xlu1 %2062  ;;  %v3029_v6 = vperm.slane %v4599_v53, %v4943_v1  ;;  %v2967_v53 = vperm.slane %v4182_v14, %v4930_v52  ;;  %v3058_v30 = vperm.slane %v4859_v12, %v4930_v52 }
 0x5b6   : > { %v4915_v13 = vpop.xlane.xlu0 %2204 }
 0x5b7   : > { %5935 = vst [vmem:[#allocation65_spill] sm:$0xff] %v4915_v13  ;;  %v2378_v13 = vadd.f32 %v3963_v17, %v2063_v36  ;;  %v3026_v36 = vperm.slane %v4703_v35, %v4925_v16  ;;  %v2971_v35 = vperm.slane %v4319_v54, %v4943_v1 }
 0x5b9   : > { %2074 = vadd.xlane.f32.xlu1 %v1885_v23 }
 0x5be   : > { %v4922_v23 = vpop.xlane.xlu0 %2078 }
 0x5bf   : > { %5936 = vst [vmem:[#allocation66_spill] sm:$0xff] %v4922_v23  ;;  %v1504_v23 = vadd.f32 %v4798_v39, %v4459_v63 }
 0x5c1   : > { %2730 = vperm.xlu2 %3565, %v2373_v42   ;;  %2206 = vadd.xlane.f32.xlu1 %v1951_v10  ;;  %v4936_v10 = vpop.permute.xlu2 %2712  ;;  %v3027_v42 = vperm.slane %v4630_v18, %v4930_v52  ;;  %v1757_v63 = vmax.f32 %v1504_v23, 0.0  ;;  %v2965_v18 = vperm.slane %v4249_v46, %v4925_v16  ;;  %v4979_v46 = vadd.s32 4294967256, %v4925_v16 }
 0x5c3   : > { %v3028_v17 = vsel %vm2968_vm1, %v3027_v42, %v3026_v36  ;;  %v1889_v12 = vmul.f32 %v4750_v44, %v1757_v63  ;;  %v2969_v36 = vsel %vm2968_vm1, %v2967_v53, %v2965_v18  ;;  %v3035_v23 = vperm.slane %v4664_v9, %v4979_v46  ;;  %v5938_v18 = vld [vmem:[#allocation18_spill] sm:$0xff] }
 0x5c4   : > { %v3030_v11 = vsel %vm2972_vm2, %v3029_v6, %v3028_v17  ;;  %v4986_v17 = vadd.s32 4294967248, %v4925_v16  ;;  %v3057_v6 = vperm.slane %v4872_v47, %v4925_v16  ;;  %v5001_v47 = vadd.s32 4294967240, %v4925_v16 }
 0x5c5   : > { %v3060_v63 = vperm.slane %v4874_v45, %v4943_v1  ;;  %v5016_v45 = vadd.s32 4294967232, %v4925_v16 }
 0x5c6   : > { %v2987_v53 = vperm.slane %v5938_v18, %v4986_v17 }
 0x5c7   : > { %2090 = vadd.xlane.f32.xlu0 %v1893_v15  ;;  %v2371_v15 = vadd.f32 %v3989_v48, %v2049_v59  ;;  %v4952_v59 = vadd.s32 4294967272, %v4925_v16  ;;  %v3059_v48 = vsel %vm2968_vm1, %v3058_v30, %v3057_v6 }
 0x5c9   : > { %v2975_v14 = vperm.slane %v4310_v34, %v4952_v59  ;;  %v3031_v42 = vperm.slane %v4772_v41, %v4952_v59  ;;  %v2973_v41 = vsel %vm2972_vm2, %v2971_v35, %v2969_v36  ;;  %v3061_v35 = vsel %vm2972_vm2, %v3060_v63, %v3059_v48 }
 0x5cb   : > { %v3032_v34 = vsel %vm2976_vm3, %v3031_v42, %v3030_v11  ;;  %v2977_v21 = vsel %vm2976_vm3, %v2975_v14, %v2973_v41  ;;  %v2983_v11 = vperm.slane %v4325_v62, %v4979_v46  ;;  %v3062_v62 = vperm.slane %v4892_v19, %v4952_v59 }
 0x5cc   : > { %v3039_v19 = vperm.slane %v4766_v27, %v5001_v47  ;;  %v3066_v41 = vperm.slane %v4881_v60, %v4979_v46  ;;  %v2707_v27 = vpop.permute.xlu1 %2706  ;;  %v5052_v60 = vadd.s32 4294967208, %v4925_v16 }
 0x5cd   : > { %v3063_v6 = vsel %vm2976_vm3, %v3062_v62, %v3061_v35 }
 0x5d1   : > { %v4932_v25 = vpop.permute.xlu0 %2727 }
 0x5da   : > { %2724 = vperm.xlu1 %3566, %v2371_v15   ;;  %v4960_v15 = vadd.s32 4294967176, %v4925_v16 }
 0x5db   : > { %v4940_v5 = vpop.xlane.xlu2 %2070  ;;  %2745 = vperm.xlu0 %3567, %v2378_v13   ;;  %v4957_v13 = vadd.s32 4294967264, %v4925_v16 }
 0x5dd   : > { %v2979_v54 = vperm.slane %v4241_v33, %v4957_v13  ;;  %v3033_v33 = vperm.slane %v4695_v43, %v4957_v13  ;;  %v3064_v14 = vperm.slane %v4887_v51, %v4957_v13  ;;  %v3041_v51 = vperm.slane %v4733_v40, %v5016_v45 }
 0x5df   : > { %v2981_v9 = vsel %vm2980_vm4, %v2979_v54, %v2977_v21  ;;  %v3034_v43 = vsel %vm2980_vm4, %v3033_v33, %v3032_v34  ;;  %v3037_v21 = vperm.slane %v4827_v61, %v4986_v17  ;;  %v5024_v54 = vadd.s32 4294967224, %v4925_v16  ;;  %v5939_v61 = vld [vmem:[#allocation24_spill] sm:$0xff] }
 0x5e0   : > { %v3036_v30 = vsel %vm2984_vm5, %v3035_v23, %v3034_v43  ;;  %v2985_v42 = vsel %vm2984_vm5, %v2983_v11, %v2981_v9  ;;  %v3065_v36 = vsel %vm2980_vm4, %v3064_v14, %v3063_v6  ;;  %v5037_v34 = vadd.s32 4294967216, %v4925_v16  ;;  %v5940_v33 = vld [vmem:[#allocation20_spill] sm:$0xff]  ;;  %v5941_v11 = vld [vmem:[#allocation19_spill] sm:$0xff] }
 0x5e1   : > { %v2989_v48 = vsel %vm2988_vm6, %v2987_v53, %v2985_v42  ;;  %v3038_v23 = vsel %vm2988_vm6, %v3037_v21, %v3036_v30  ;;  %v2995_v40 = vperm.slane %v5940_v33, %v5016_v45  ;;  %v2999_v9 = vperm.slane %v5941_v11, %v5024_v54 }
 0x5e2   : > { %v3040_v18 = vsel %vm2992_vm7, %v3039_v19, %v3038_v23  ;;  %v3067_v43 = vsel %vm2984_vm5, %v3066_v41, %v3065_v36  ;;  %v3070_v30 = vperm.slane %v4927_v57, %v5001_v47  ;;  %v3043_v35 = vperm.slane %v4854_v38, %v5024_v54  ;;  %v5942_v23 = vld [vmem:[#allocation33_spill] sm:$0xff] }
 0x5e3   : > { %v4967_v29 = vpop.permute.xlu2 %2721  ;;  %v3042_v53 = vsel %vm2996_vm8, %v3041_v51, %v3040_v18  ;;  %v3068_v14 = vperm.slane %v4901_v56, %v4986_v17  ;;  %v3003_v51 = vperm.slane %v5942_v23, %v5037_v34  ;;  %v5067_v38 = vadd.s32 4294967200, %v4925_v16 }
 0x5e4   : > { %v3044_v42 = vsel %vm3000_vm9, %v3043_v35, %v3042_v53  ;;  %v3045_v56 = vperm.slane %v4820_v3, %v5037_v34  ;;  %v5079_v41 = vadd.s32 4294967184, %v4925_v16 }
 0x5e5   : > { %v3069_v57 = vsel %vm2988_vm6, %v3068_v14, %v3067_v43  ;;  %v3049_v53 = vperm.slane %v4861_v22, %v5067_v38  ;;  %v3074_v43 = vperm.slane %v4917_v31, %v5024_v54  ;;  %v5095_v14 = vadd.s32 4294967192, %v4925_v16 }
 0x5e6   : > { %v3071_v6 = vsel %vm2992_vm7, %v3070_v30, %v3069_v57  ;;  %v3046_v36 = vsel %vm3004_vm10, %v3045_v56, %v3044_v42  ;;  %v5946_v30 = vld [vmem:[#allocation23_spill] sm:$0xff]  ;;  %v5947_v56 = vld [vmem:[#allocation40_spill] sm:$0xff] }
 0x5e7   : > { %v3007_v35 = vperm.slane %v5946_v30, %v5052_v60  ;;  %v3051_v31 = vperm.slane %v4848_v8, %v5095_v14 }
 0x5ea   : > { %2082 = vadd.xlane.f32.xlu2 %v1889_v12  ;;  %v2991_v12 = vperm.slane %v5939_v61, %v5001_v47  ;;  %v3072_v61 = vperm.slane %v4889_v55, %v5016_v45  ;;  %v5944_v55 = vld [vmem:[#allocation21_spill] sm:$0xff] }
 0x5eb   : > { %v3011_v11 = vperm.slane %v5944_v55, %v5067_v38 }
 0x5ec   : > { %v2993_v63 = vsel %vm2992_vm7, %v2991_v12, %v2989_v48  ;;  %v3047_v48 = vperm.slane %v4786_v28, %v5052_v60  ;;  %v5943_v28 = vld [vmem:[#allocation22_spill] sm:$0xff]  ;;  %v3073_v3 = vsel %vm2996_vm8, %v3072_v61, %v3071_v6  ;;  %v3015_v6 = vperm.slane %v5947_v56, %v5095_v14 }
 0x5ed   : > { %v2997_v21 = vsel %vm2996_vm8, %v2995_v40, %v2993_v63  ;;  %v1501_v19 = vadd.f32 %v4798_v39, %v5943_v28  ;;  %v3076_v40 = vperm.slane %v2707_v27, %v5037_v34  ;;  %v2069_v63 = vpop.xlane.xlu1 %2068  ;;  %v3075_v42 = vsel %vm3000_vm9, %v3074_v43, %v3073_v3 }
 0x5ee   : > { %v3001_v62 = vsel %vm3000_vm9, %v2999_v9, %v2997_v21  ;;  %v3048_v33 = vsel %vm5868_vm11, %v3047_v48, %v3046_v36  ;;  %v5945_v9 = vld [vmem:[#allocation30_spill] sm:$0xff]  ;;  %v3055_v3 = vperm.slane %v4867_v50, %v4960_v15  ;;  %v3084_v43 = vperm.slane %v4909_v2, %v5079_v41 }
 0x5ef   : > { %v3005_v12 = vsel %vm3004_vm10, %v3003_v51, %v3001_v62  ;;  %v1525_v18 = vadd.f32 %v4798_v39, %v5945_v9  ;;  %v1756_v27 = vmax.f32 %v1501_v19, 0.0  ;;  %v3050_v21 = vsel %vm3012_vm12, %v3049_v53, %v3048_v33  ;;  %v5949_v33 = vld [vmem:[#allocation28_spill] sm:$0xff] }
 0x5f0   : > { %v3053_v62 = vperm.slane %v4838_v49, %v5079_v41  ;;  %v3009_v22 = vsel %vm5868_vm11, %v3007_v35, %v3005_v12  ;;  %v3077_v48 = vsel %vm3004_vm10, %v3076_v40, %v3075_v42  ;;  %v3078_v51 = vperm.slane %v4898_v58, %v5052_v60  ;;  %v5948_v12 = vld [vmem:[#allocation6_spill] sm:$0xff] }
 0x5f1   : > { %v3013_v57 = vsel %vm3012_vm12, %v3011_v11, %v3009_v22  ;;  %v1764_v23 = vmax.f32 %v1525_v18, 0.0  ;;  %v3052_v49 = vsel %vm3016_vm13, %v3051_v31, %v3050_v21  ;;  %v2376_v8 = vadd.f32 %v5948_v12, %v4907_v0  ;;  %v5950_v11 = vld [vmem:[#allocation31_spill] sm:$0xff] }
 0x5f2   : > { %v3054_v61 = vsel %vm3020_vm14, %v3053_v62, %v3052_v49  ;;  %v3079_v28 = vsel %vm5868_vm11, %v3078_v51, %v3077_v48  ;;  %v1888_v19 = vmul.f32 %v4750_v44, %v1756_v27  ;;  %v3017_v36 = vsel %vm3016_vm13, %v3015_v6, %v3013_v57 }
 0x5f3   : > { %v3023_v58 = vperm.slane %v5949_v33, %v4960_v15  ;;  %v3080_v40 = vperm.slane %v4936_v10, %v5067_v38  ;;  %v3019_v9 = vperm.slane %v5950_v11, %v5079_v41  ;;  %v1896_v18 = vmul.f32 %v4750_v44, %v1764_v23  ;;  %v5952_v23 = vld [vmem:[#allocation12_spill] sm:$0xff]  ;;  %v5955_v33 = vld [vmem:[#allocation25_spill] sm:$0xff] }
 0x5f4   : > { %v3056_v53 = vsel %vm3024_vm15, %v3055_v3, %v3054_v61  ;;  %vm3245_vm11 = vcmask 1042434   ;;  %v5951_v62 = vperm.slane %v4967_v29, %v4960_v15  ;;  %v2381_v57 = vadd.f32 %v3969_v24, %v2069_v63  ;;  %v5953_v29 = vld [vmem:[#allocation26_spill] sm:$0xff] }
 0x5f5   : > { %v3081_v50 = vsel %vm3012_vm12, %v3080_v40, %v3079_v28  ;;  %v3021_v10 = vsel %vm3020_vm14, %v3019_v9, %v3017_v36  ;;  %v2374_v51 = vadd.f32 %v5952_v23, %v4879_v32  ;;  %v1513_v6 = vadd.f32 %v4798_v39, %v5953_v29  ;;  %v5959_v29 = vld [vmem:[#allocation38_spill] sm:$0xff] }
 0x5f6   : > { %v3025_v35 = vsel %vm3024_vm15, %v3023_v58, %v3021_v10  ;;  %v1510_v32 = vadd.f32 %v4798_v39, %v5955_v33  ;;  %v2379_v40 = vadd.f32 %v3966_v20, %v4920_v37  ;;  %v5957_v37 = vperm.slane %v4932_v25, %v4930_v52 }
 0x5f7   : > { %v3244_v21 = vsel %vm3243_vm0, %v3056_v53, %v3025_v35  ;;  %v1760_v61 = vmax.f32 %v1513_v6, 0.0  ;;  %v1543_v6 = vadd.f32 %v4798_v39, %v5959_v29  ;;  %vm3247_vm0 = vcmask 1043459  }
 0x5f8   : > { %v1759_v3 = vmax.f32 %v1510_v32, 0.0 }
 0x5f9   : > { %v1892_v28 = vmul.f32 %v4750_v44, %v1760_v61 }
 0x5fc   : > { %v5139_v2 = vpop.xlane.xlu0 %2084 }
 0x601   : > { %v2716_v55 = vpop.permute.xlu1 %2715 }
 0x602   : > { %v3082_v0 = vperm.slane %v2716_v55, %v5095_v14  ;;  %2739 = vperm.xlu2 %3565, %v2376_v8  }
 0x604   : > { %v3083_v30 = vsel %vm3016_vm13, %v3082_v0, %v3081_v50  ;;  %2080 = vadd.xlane.f32.xlu1 %v1888_v19  ;;  %v5954_v19 = vld [vmem:[#allocation35_spill] sm:$0xff]  ;;  %v1891_v0 = vmul.f32 %v4750_v44, %v1759_v3 }
 0x605   : > { %v3085_v27 = vsel %vm3020_vm14, %v3084_v43, %v3083_v30  ;;  %2096 = vadd.xlane.f32.xlu0 %v1896_v18  ;;  %v1534_v63 = vadd.f32 %v4798_v39, %v5954_v19 }
 0x606   : > { %v3087_v42 = vsel %vm3024_vm15, %v5951_v62, %v3085_v27  ;;  %v5958_v62 = vld [vmem:[#allocation29_spill] sm:$0xff] }
 0x607   : > { %v5141_v22 = vsel %vm3245_vm11, %v3087_v42, %v3244_v21  ;;  %v1767_v58 = vmax.f32 %v1534_v63, 0.0  ;;  %v2377_v21 = vadd.f32 %v4007_v4, %v4885_v7  ;;  %v1522_v42 = vadd.f32 %v4798_v39, %v5958_v62 }
 0x608   : > { %vm5975_vm11 = vcmask 786112  }
 0x609   : > { %v1899_v55 = vmul.f32 %v4750_v44, %v1767_v58 }
 0x60f   : > { %v5143_v31 = vpop.permute.xlu0 %2736 }
 0x610   : > { %v3095_v48 = vperm.slane %v5143_v31, %v4957_v13 }
 0x619   : > { %2754 = vperm.xlu0 %3567, %v2381_v57   ;;  %v1763_v57 = vmax.f32 %v1522_v42, 0.0  ;;  %v5965_v42 = vld [vmem:[#allocation34_spill] sm:$0xff] }
 0x61c   : > { %v5150_v56 = vpop.xlane.xlu2 %2076 }
 0x61d   : > { %2733 = vperm.xlu1 %3566, %v2374_v51   ;;  %v1895_v51 = vmul.f32 %v4750_v44, %v1763_v57 }
 0x624   : > { %v2731_v49 = vpop.permute.xlu2 %2730 }
 0x625   : > { %v3091_v8 = vperm.slane %v2731_v49, %v4943_v1  ;;  %v1770_v49 = vmax.f32 %v1543_v6, 0.0 }
 0x627   : > { %v1902_v61 = vmul.f32 %v4750_v44, %v1770_v49 }
 0x62b   : > { %2088 = vadd.xlane.f32.xlu2 %v1892_v28  ;;  %v5961_v28 = vld [vmem:[#allocation16_spill] sm:$0xff] }
 0x62c   : > { %v2075_v36 = vpop.xlane.xlu1 %2074  ;;  %v2382_v19 = vadd.f32 %v5961_v28, %v4940_v5 }
 0x62d   : > { %v2384_v35 = vadd.f32 %v3972_v26, %v2075_v36 }
 0x634   : > { %v5163_v11 = vpop.xlane.xlu1 %2206 }
 0x635   : > { %5956 = vst [vmem:[#allocation18_spill] sm:$0xff] %v5163_v11 }
 0x63a   : > { %v5165_v9 = vpop.xlane.xlu0 %2090 }
 0x643   : > { %2748 = vperm.xlu2 %3565, %v2379_v40   ;;  %2102 = vadd.xlane.f32.xlu0 %v1899_v55 }
 0x647   : > { %2086 = vadd.xlane.f32.xlu1 %v1891_v0 }
 0x64c   : > { %v2725_v18 = vpop.permute.xlu1 %2724 }
 0x64d   : > { %v3088_v53 = vperm.slane %v2725_v18, %v4925_v16  ;;  %v5169_v43 = vpop.permute.xlu0 %2745  ;;  %v5962_v18 = vld [vmem:[#allocation11_spill] sm:$0xff] }
 0x64e   : > { %v3101_v50 = vperm.slane %v5169_v43, %v5001_v47  ;;  %v5972_v43 = vld [vmem:[#allocation45_spill] sm:$0xff] }
 0x64f   : > { %v3090_v10 = vsel %vm2968_vm1, %v5957_v37, %v3088_v53 }
 0x650   : > { %v3092_v30 = vsel %vm2972_vm2, %v3091_v8, %v3090_v10  ;;  %v5960_v8 = vld [vmem:[#allocation27_spill] sm:$0xff] }
 0x651   : > { %v1519_v7 = vadd.f32 %v4798_v39, %v5960_v8  ;;  %v5967_v8 = vld [vmem:[#allocation32_spill] sm:$0xff] }
 0x653   : > { %v1762_v36 = vmax.f32 %v1519_v7, 0.0  ;;  %v1528_v7 = vadd.f32 %v4798_v39, %v5967_v8 }
 0x655   : > { %v1894_v32 = vmul.f32 %v4750_v44, %v1762_v36 }
 0x657   : > { %2763 = vperm.xlu0 %3567, %v2384_v35   ;;  %v5963_v35 = vld [vmem:[#allocation63_spill] sm:$0xff] }
 0x65d   : > { %v5179_v27 = vpop.xlane.xlu2 %2082 }
 0x660   : > { %2742 = vperm.xlu1 %3566, %v2377_v21   ;;  %v5964_v21 = vld [vmem:[#allocation15_spill] sm:$0xff] }
 0x661   : > { %v2380_v62 = vadd.f32 %v5964_v21, %v5963_v35 }
 0x665   : > { %v2740_v31 = vpop.permute.xlu2 %2739 }
 0x666   : > { %v3097_v25 = vperm.slane %v2740_v31, %v4979_v46  ;;  %v1531_v31 = vadd.f32 %v4798_v39, %v5965_v42 }
 0x66c   : > { %2094 = vadd.xlane.f32.xlu2 %v1895_v51  ;;  %v1766_v51 = vmax.f32 %v1531_v31, 0.0 }
 0x66e   : > { %v1898_v29 = vmul.f32 %v4750_v44, %v1766_v51 }
 0x677   : > { %v2081_v33 = vpop.xlane.xlu1 %2080 }
 0x678   : > { %v5194_v63 = vpop.xlane.xlu0 %2096  ;;  %v2387_v5 = vadd.f32 %v5962_v18, %v2081_v33  ;;  %v1765_v33 = vmax.f32 %v1528_v7, 0.0 }
 0x681   : > { %2108 = vadd.xlane.f32.xlu0 %v1902_v61 }
 0x684   : > { %2757 = vperm.xlu2 %3565, %v2382_v19   ;;  %v5968_v19 = vld [vmem:[#allocation17_spill] sm:$0xff] }
 0x685   : > { %v2385_v36 = vadd.f32 %v5968_v19, %v5150_v56 }
 0x68a   : > { %2092 = vadd.xlane.f32.xlu1 %v1894_v32 }
 0x68b   : > { %v5197_v58 = vpop.permute.xlu0 %2754 }
 0x68c   : > { %v3107_v3 = vperm.slane %v5197_v58, %v5037_v34  ;;  %v5979_v58 = vld [vmem:[#allocation48_spill] sm:$0xff] }
 0x68f   : > { %v2734_v40 = vpop.permute.xlu1 %2733 }
 0x690   : > { %v3093_v55 = vperm.slane %v2734_v40, %v4952_v59 }
 0x692   : > { %v3094_v0 = vsel %vm2976_vm3, %v3093_v55, %v3092_v30 }
 0x693   : > { %v3096_v53 = vsel %vm2980_vm4, %v3095_v48, %v3094_v0  ;;  %v5966_v48 = vld [vmem:[#allocation42_spill] sm:$0xff]  ;;  %v1897_v0 = vmul.f32 %v4750_v44, %v1765_v33  ;;  %v5973_v33 = vld [vmem:[#allocation7_spill] sm:$0xff] }
 0x694   : > { %v3098_v37 = vsel %vm2984_vm5, %v3097_v25, %v3096_v53  ;;  %v1552_v25 = vadd.f32 %v4798_v39, %v5966_v48  ;;  %v5971_v48 = vld [vmem:[#allocation9_spill] sm:$0xff] }
 0x695   : > { %2772 = vperm.xlu0 %3567, %v2387_v5  }
 0x696   : > { %v1773_v6 = vmax.f32 %v1552_v25, 0.0 }
 0x698   : > { %v1905_v49 = vmul.f32 %v4750_v44, %v1773_v6 }
 0x69e   : > { %v5206_v10 = vpop.xlane.xlu2 %2088 }
 0x6a3   : > { %2751 = vperm.xlu1 %3566, %v2380_v62  }
 0x6a6   : > { %v2749_v57 = vpop.permute.xlu2 %2748 }
 0x6a7   : > { %v3103_v30 = vperm.slane %v2749_v57, %v5016_v45  ;;  %v5969_v57 = vld [vmem:[#allocation37_spill] sm:$0xff] }
 0x6a8   : > { %v1540_v51 = vadd.f32 %v4798_v39, %v5969_v57 }
 0x6ad   : > { %2100 = vadd.xlane.f32.xlu2 %v1898_v29  ;;  %v5970_v29 = vld [vmem:[#allocation64_spill] sm:$0xff] }
 0x6ae   : > { %v2383_v25 = vadd.f32 %v5971_v48, %v5970_v29 }
 0x6b6   : > { %v5217_v61 = vpop.xlane.xlu0 %2102 }
 0x6ba   : > { %v2087_v40 = vpop.xlane.xlu1 %2086 }
 0x6bb   : > { %v2390_v5 = vadd.f32 %v5952_v23, %v2087_v40  ;;  %v2388_v40 = vadd.f32 %v5973_v33, %v5179_v27 }
 0x6bf   : > { %2114 = vadd.xlane.f32.xlu0 %v1905_v49  ;;  %v1769_v49 = vmax.f32 %v1540_v51, 0.0 }
 0x6c1   : > { %v1901_v8 = vmul.f32 %v4750_v44, %v1769_v49 }
 0x6c5   : > { %2766 = vperm.xlu2 %3565, %v2385_v36  }
 0x6c9   : > { %v5223_v32 = vpop.permute.xlu0 %2763 }
 0x6ca   : > { %v3113_v55 = vperm.slane %v5223_v32, %v5095_v14  ;;  %v5304_v32 = vld [vmem:[%s5840_s3] ss:$0 sm:$0xff] }
 0x6cd   : > { %2098 = vadd.xlane.f32.xlu1 %v1897_v0  ;;  %v5974_v0 = vld [vmem:[#allocation36_spill] sm:$0xff] }
 0x6d2   : > { %v2743_v53 = vpop.permute.xlu1 %2742 }
 0x6d3   : > { %v3099_v35 = vperm.slane %v2743_v53, %v4986_v17  ;;  %2781 = vperm.xlu0 %3567, %v2390_v5   ;;  %v1537_v5 = vadd.f32 %v4798_v39, %v5974_v0 }
 0x6d5   : > { %v3100_v62 = vsel %vm2988_vm6, %v3099_v35, %v3098_v37 }
 0x6d6   : > { %v3102_v56 = vsel %vm2992_vm7, %v3101_v50, %v3100_v62  ;;  %v1561_v50 = vadd.f32 %v4798_v39, %v5972_v43  ;;  %v1768_v62 = vmax.f32 %v1537_v5, 0.0  ;;  %v5976_v43 = vld [vmem:[#allocation41_spill] sm:$0xff] }
 0x6d7   : > { %v3104_v42 = vsel %vm2996_vm8, %v3103_v30, %v3102_v56 }
 0x6d8   : > { %v1776_v30 = vmax.f32 %v1561_v50, 0.0  ;;  %v1900_v57 = vmul.f32 %v4750_v44, %v1768_v62  ;;  %v1549_v50 = vadd.f32 %v4798_v39, %v5976_v43 }
 0x6da   : > { %v1908_v7 = vmul.f32 %v4750_v44, %v1776_v30  ;;  %v5977_v30 = vld [vmem:[#allocation66_spill] sm:$0xff]  ;;  %v1772_v5 = vmax.f32 %v1549_v50, 0.0 }
 0x6df   : > { %v5236_v31 = vpop.xlane.xlu2 %2094 }
 0x6e6   : > { %2760 = vperm.xlu1 %3566, %v2383_v25  }
 0x6e7   : > { %v2758_v6 = vpop.permute.xlu2 %2757 }
 0x6e8   : > { %v3109_v37 = vperm.slane %v2758_v6, %v5052_v60 }
 0x6ee   : > { %2106 = vadd.xlane.f32.xlu2 %v1901_v8 }
 0x6f4   : > { %v5247_v36 = vpop.xlane.xlu0 %2108 }
 0x6fd   : > { %2120 = vadd.xlane.f32.xlu0 %v1908_v7  ;;  %v2093_v56 = vpop.xlane.xlu1 %2092  ;;  %v5978_v7 = vld [vmem:[#allocation10_spill] sm:$0xff] }
 0x6fe   : > { %v2393_v51 = vadd.f32 %v4007_v4, %v2093_v56 }
 0x706   : > { %2775 = vperm.xlu2 %3565, %v2388_v40   ;;  %v2386_v40 = vadd.f32 %v5978_v7, %v5977_v30 }
 0x707   : > { %v2773_v53 = vpop.permute.xlu0 %2772 }
 0x708   : > { %v3119_v35 = vperm.slane %v2773_v53, %v4925_v16 }
 0x710   : > { %2104 = vadd.xlane.f32.xlu1 %v1900_v57  ;;  %v5980_v57 = vld [vmem:[#allocation13_spill] sm:$0xff] }
 0x711   : > { %2790 = vperm.xlu0 %3567, %v2393_v51   ;;  %v2391_v51 = vadd.f32 %v5980_v57, %v5206_v10 }
 0x715   : > { %v2752_v29 = vpop.permute.xlu1 %2751 }
 0x716   : > { %v3105_v25 = vperm.slane %v2752_v29, %v5024_v54 }
 0x718   : > { %v3106_v27 = vsel %vm3000_vm9, %v3105_v25, %v3104_v42  ;;  %v1904_v42 = vmul.f32 %v4750_v44, %v1772_v5 }
 0x719   : > { %v3108_v6 = vsel %vm3004_vm10, %v3107_v3, %v3106_v27  ;;  %v1570_v3 = vadd.f32 %v4798_v39, %v5979_v58  ;;  %v5981_v27 = vld [vmem:[#allocation39_spill] sm:$0xff] }
 0x71a   : > { %v3110_v49 = vsel %vm5975_vm11, %v3109_v37, %v3108_v6  ;;  %v1546_v6 = vadd.f32 %v4798_v39, %v5981_v27  ;;  %v5983_v27 = vld [vmem:[#allocation5_spill] sm:$0xff] }
 0x71b   : > { %v1779_v37 = vmax.f32 %v1570_v3, 0.0 }
 0x71c   : > { %v1771_v50 = vmax.f32 %v1546_v6, 0.0  ;;  %v2389_v6 = vadd.f32 %v5983_v27, %v5139_v2 }
 0x71d   : > { %v1911_v62 = vmul.f32 %v4750_v44, %v1779_v37  ;;  %v5982_v37 = vld [vmem:[#allocation44_spill] sm:$0xff] }
 0x720   : > { %v5263_v8 = vpop.xlane.xlu2 %2100 }
 0x728   : > { %v2767_v0 = vpop.permute.xlu2 %2766 }
 0x729   : > { %v3115_v53 = vperm.slane %v2767_v0, %v5079_v41  ;;  %2769 = vperm.xlu1 %3566, %v2386_v40   ;;  %v1903_v40 = vmul.f32 %v4750_v44, %v1771_v50 }
 0x72f   : > { %2112 = vadd.xlane.f32.xlu2 %v1904_v42 }
 0x732   : > { %v5274_v56 = vpop.xlane.xlu0 %2114 }
 0x73b   : > { %2126 = vadd.xlane.f32.xlu0 %v1911_v62  ;;  %v1558_v62 = vadd.f32 %v4798_v39, %v5982_v37 }
 0x73d   : > { %v1775_v44 = vmax.f32 %v1558_v62, 0.0  ;;  %v5986_v62 = vld [vmem:[#allocation43_spill] sm:$0xff] }
 0x740   : > { %v2099_v43 = vpop.xlane.xlu1 %2098 }
 0x741   : > { %v2396_v30 = vadd.f32 %v5964_v21, %v2099_v43 }
 0x745   : > { %v5278_v29 = vpop.permute.xlu0 %2781 }
 0x746   : > { %v3124_v25 = vperm.slane %v5278_v29, %v4952_v59 }
 0x747   : > { %2784 = vperm.xlu2 %3565, %v2391_v51  }
 0x74f   : > { %2799 = vperm.xlu0 %3567, %v2396_v30  }
 0x753   : > { %2110 = vadd.xlane.f32.xlu1 %v1903_v40 }
 0x758   : > { %v2761_v0 = vpop.permute.xlu1 %2760 }
 0x759   : > { %v3111_v10 = vperm.slane %v2761_v0, %v5067_v38 }
 0x75b   : > { %v3112_v5 = vsel %vm3012_vm12, %v3111_v10, %v3110_v49  ;;  %v5985_v10 = vld [vmem:[#allocation8_spill] sm:$0xff] }
 0x75c   : > { %v3114_v42 = vsel %vm3016_vm13, %v3113_v55, %v3112_v5  ;;  %v1907_v55 = vmul.f32 %v5304_v32, %v1775_v44  ;;  %v2394_v5 = vadd.f32 %v5985_v10, %v5236_v31 }
 0x75d   : > { %v3116_v58 = vsel %vm3020_vm14, %v3115_v53, %v3114_v42  ;;  %v5984_v53 = vld [vmem:[#allocation51_spill] sm:$0xff] }
 0x75e   : > { %v1579_v50 = vadd.f32 %v4798_v39, %v5984_v53 }
 0x760   : > { %v1782_v30 = vmax.f32 %v1579_v50, 0.0 }
 0x761   : > { %v5293_v3 = vpop.xlane.xlu2 %2106 }
 0x762   : > { %v1914_v40 = vmul.f32 %v5304_v32, %v1782_v30  ;;  %v5987_v30 = vld [vmem:[#allocation47_spill] sm:$0xff] }
 0x769   : > { %v2776_v51 = vpop.permute.xlu2 %2775 }
 0x76a   : > { %v3120_v43 = vperm.slane %v2776_v51, %v4930_v52  ;;  %v1555_v51 = vadd.f32 %v4798_v39, %v5986_v62  ;;  %v5988_v62 = vld [vmem:[#allocation54_spill] sm:$0xff] }
 0x76c   : > { %v3121_v49 = vsel %vm2968_vm1, %v3120_v43, %v3119_v35  ;;  %2778 = vperm.xlu1 %3566, %v2389_v6   ;;  %v1774_v44 = vmax.f32 %v1555_v51, 0.0  ;;  %v1588_v51 = vadd.f32 %v4798_v39, %v5988_v62 }
 0x76e   : > { %v1906_v6 = vmul.f32 %v5304_v32, %v1774_v44  ;;  %v2392_v44 = vadd.f32 %v5948_v12, %v5165_v9 }
 0x770   : > { %2118 = vadd.xlane.f32.xlu2 %v1907_v55  ;;  %v5310_v2 = vpop.xlane.xlu0 %2120 }
 0x779   : > { %2132 = vadd.xlane.f32.xlu0 %v1914_v40  ;;  %v1567_v40 = vadd.f32 %v4798_v39, %v5987_v30 }
 0x783   : > { %v5312_v0 = vpop.permute.xlu0 %2790  ;;  %v2105_v42 = vpop.xlane.xlu1 %2104 }
 0x784   : > { %v3130_v35 = vperm.slane %v5312_v0, %v4986_v17  ;;  %v2399_v37 = vadd.f32 %v5971_v48, %v2105_v42  ;;  %v1778_v42 = vmax.f32 %v1567_v40, 0.0  ;;  %v2397_v40 = vadd.f32 %v3969_v24, %v5263_v8 }
 0x785   : > { %v2398_v0 = vadd.f32 %v5961_v28, %v5217_v61  ;;  %v5995_v61 = vld [vmem:[#allocation52_spill] sm:$0xff] }
 0x788   : > { %2793 = vperm.xlu2 %3565, %v2394_v5  }
 0x78d   : > { %2808 = vperm.xlu0 %3567, %v2399_v37  }
 0x796   : > { %2116 = vadd.xlane.f32.xlu1 %v1906_v6 }
 0x79b   : > { %v2770_v43 = vpop.permute.xlu1 %2769 }
 0x79c   : > { %v3117_v55 = vperm.slane %v2770_v43, %v4960_v15 }
 0x79e   : > { %v3118_v53 = vsel %vm3024_vm15, %v3117_v55, %v3116_v58  ;;  %v1910_v58 = vmul.f32 %v5304_v32, %v1778_v42 }
 0x79f   : > { %v5325_v31 = vsel %vm3247_vm0, %v3118_v53, %v5141_v22  ;;  %v1785_v22 = vmax.f32 %v1588_v51, 0.0  ;;  %vm3249_vm0 = vcmask 1044484  }
 0x7a1   : > { %v1917_v6 = vmul.f32 %v5304_v32, %v1785_v22 }
 0x7a2   : > { %v5327_v50 = vpop.xlane.xlu2 %2112 }
 0x7aa   : > { %v2785_v5 = vpop.permute.xlu2 %2784 }
 0x7ab   : > { %v3126_v37 = vperm.slane %v2785_v5, %v4957_v13  ;;  %v5989_v5 = vld [vmem:[#allocation46_spill] sm:$0xff] }
 0x7ac   : > { %v1564_v42 = vadd.f32 %v4798_v39, %v5989_v5  ;;  %v5362_v39 = vld [vmem:[%s5841_s4 + $0x1] ss:$0 sm:$0xff]  ;;  %v5991_v5 = vld [vmem:[#allocation57_spill] sm:$0xff] }
 0x7ae   : > { %v5338_v43 = vpop.xlane.xlu0 %2126  ;;  %v1777_v62 = vmax.f32 %v1564_v42, 0.0 }
 0x7af   : > { %2787 = vperm.xlu1 %3566, %v2392_v44  }
 0x7b0   : > { %v1909_v51 = vmul.f32 %v5304_v32, %v1777_v62 }
 0x7b1   : > { %2124 = vadd.xlane.f32.xlu2 %v1910_v58 }
 0x7b7   : > { %2138 = vadd.xlane.f32.xlu0 %v1917_v6 }
 0x7c1   : > { %v5340_v55 = vpop.permute.xlu0 %2799 }
 0x7c2   : > { %v3136_v53 = vperm.slane %v5340_v55, %v5024_v54  ;;  %v2401_v55 = vadd.f32 %v5968_v19, %v5247_v36  ;;  %v5997_v36 = vld [vmem:[#allocation55_spill] sm:$0xff] }
 0x7c6   : > { %v2111_v30 = vpop.xlane.xlu1 %2110 }
 0x7c7   : > { %v2402_v9 = vadd.f32 %v5978_v7, %v2111_v30 }
 0x7c9   : > { %2802 = vperm.xlu2 %3565, %v2397_v40   ;;  %v5990_v40 = vld [vmem:[#allocation50_spill] sm:$0xff] }
 0x7cb   : > { %2817 = vperm.xlu0 %3567, %v2402_v9   ;;  %v1576_v9 = vadd.f32 %v5362_v39, %v5990_v40  ;;  %v2400_v40 = vadd.f32 %v3972_v26, %v5293_v3 }
 0x7cd   : > { %v1781_v62 = vmax.f32 %v1576_v9, 0.0 }
 0x7d9   : > { %2122 = vadd.xlane.f32.xlu1 %v1909_v51  ;;  %v2395_v51 = vadd.f32 %v3966_v20, %v5194_v63 }
 0x7de   : > { %v2779_v44 = vpop.permute.xlu1 %2778 }
 0x7df   : > { %v3122_v58 = vperm.slane %v2779_v44, %v4943_v1 }
 0x7e1   : > { %v3123_v22 = vsel %vm2972_vm2, %v3122_v58, %v3121_v49  ;;  %v1597_v49 = vadd.f32 %v5362_v39, %v5991_v5  ;;  %v5992_v5 = vld [vmem:[#allocation49_spill] sm:$0xff] }
 0x7e2   : > { %v3125_v8 = vsel %vm2976_vm3, %v3124_v25, %v3123_v22 }
 0x7e3   : > { %v5356_v6 = vpop.xlane.xlu2 %2118  ;;  %v3127_v30 = vsel %vm2980_vm4, %v3126_v37, %v3125_v8  ;;  %v1788_v25 = vmax.f32 %v1597_v49, 0.0  ;;  %v1913_v37 = vmul.f32 %v5304_v32, %v1781_v62  ;;  %v1573_v49 = vadd.f32 %v5362_v39, %v5992_v5  ;;  %v5994_v5 = vld [vmem:[#allocation60_spill] sm:$0xff] }
 0x7e5   : > { %v1920_v44 = vmul.f32 %v5304_v32, %v1788_v25 }
 0x7eb   : > { %v2794_v42 = vpop.permute.xlu2 %2793 }
 0x7ec   : > { %v3132_v29 = vperm.slane %v2794_v42, %v5001_v47  ;;  %v5373_v58 = vpop.xlane.xlu0 %2132  ;;  %v1780_v42 = vmax.f32 %v1573_v49, 0.0  ;;  %v1606_v49 = vadd.f32 %v5362_v39, %v5994_v5 }
 0x7ee   : > { %v1912_v62 = vmul.f32 %v5304_v32, %v1780_v42 }
 0x7f2   : > { %2130 = vadd.xlane.f32.xlu2 %v1913_v37  ;;  %2796 = vperm.xlu1 %3566, %v2395_v51  }
 0x7f5   : > { %2144 = vadd.xlane.f32.xlu0 %v1920_v44 }
 0x7ff   : > { %v5375_v22 = vpop.permute.xlu0 %2808 }
 0x800   : > { %v3142_v8 = vperm.slane %v5375_v22, %v5067_v38  ;;  %v2404_v22 = vadd.f32 %v5973_v33, %v5274_v56  ;;  %v5999_v56 = vld [vmem:[#allocation58_spill] sm:$0xff] }
 0x809   : > { %v2117_v9 = vpop.xlane.xlu1 %2116 }
 0x80a   : > { %v2405_v63 = vadd.f32 %v5983_v27, %v2117_v9  ;;  %2811 = vperm.xlu2 %3565, %v2400_v40   ;;  %v5993_v9 = vld [vmem:[#allocation53_spill] sm:$0xff] }
 0x80c   : > { %2826 = vperm.xlu0 %3567, %v2405_v63   ;;  %v1585_v63 = vadd.f32 %v5362_v39, %v5993_v9  ;;  %v2403_v9 = vadd.f32 %v5962_v18, %v5327_v50 }
 0x81c   : > { %2128 = vadd.xlane.f32.xlu1 %v1912_v62  ;;  %v1784_v62 = vmax.f32 %v1585_v63, 0.0 }
 0x821   : > { %v2788_v25 = vpop.permute.xlu1 %2787 }
 0x822   : > { %v3128_v51 = vperm.slane %v2788_v25, %v4979_v46 }
 0x824   : > { %v3129_v37 = vsel %vm2984_vm5, %v3128_v51, %v3127_v30  ;;  %v5387_v44 = vpop.xlane.xlu2 %2124  ;;  %v1791_v30 = vmax.f32 %v1606_v49, 0.0  ;;  %v1916_v51 = vmul.f32 %v5304_v32, %v1784_v62  ;;  %v1582_v49 = vadd.f32 %v5362_v39, %v5995_v61  ;;  %v1614_v61 = vpop.f32.mrf.mxu2 }
 0x825   : > { %v3131_v3 = vsel %vm2988_vm6, %v3130_v35, %v3129_v37 }
 0x826   : > { %v3133_v40 = vsel %vm2992_vm7, %v3132_v29, %v3131_v3  ;;  %v1923_v35 = vmul.f32 %v5304_v32, %v1791_v30 }
 0x82a   : > { %v5403_v29 = vpop.xlane.xlu0 %2138 }
 0x82c   : > { %v2803_v42 = vpop.permute.xlu2 %2802 }
 0x82d   : > { %v3138_v25 = vperm.slane %v2803_v42, %v5037_v34  ;;  %v1783_v42 = vmax.f32 %v1582_v49, 0.0 }
 0x82f   : > { %v1915_v62 = vmul.f32 %v5304_v32, %v1783_v42 }
 0x833   : > { %2136 = vadd.xlane.f32.xlu2 %v1916_v51 }
 0x835   : > { %2805 = vperm.xlu1 %3566, %v2398_v0  }
 0x836   : > { %2150 = vadd.xlane.f32.xlu0 %v1923_v35 }
 0x83d   : > { %v5405_v37 = vpop.permute.xlu0 %2817 }
 0x84b   : > { %2820 = vperm.xlu2 %3565, %v2403_v9  }
 0x84c   : > { %v2123_v63 = vpop.xlane.xlu1 %2122 }
 0x84d   : > { %v2408_v5 = vadd.f32 %v5948_v12, %v2123_v63  ;;  %v5996_v63 = vld [vmem:[#allocation56_spill] sm:$0xff] }
 0x84f   : > { %2835 = vperm.xlu0 %3567, %v2408_v5   ;;  %v1594_v5 = vadd.f32 %v5362_v39, %v5996_v63 }
 0x851   : > { %v1787_v42 = vmax.f32 %v1594_v5, 0.0  ;;  %v1591_v5 = vadd.f32 %v5362_v39, %v5997_v36 }
 0x853   : > { %v1919_v3 = vmul.f32 %v5304_v32, %v1787_v42 }
 0x85f   : > { %2134 = vadd.xlane.f32.xlu1 %v1915_v62 }
 0x864   : > { %v2797_v30 = vpop.permute.xlu1 %2796 }
 0x865   : > { %v3134_v51 = vperm.slane %v2797_v30, %v5016_v45  ;;  %v5416_v0 = vpop.xlane.xlu2 %2130  ;;  %v1615_v30 = vadd.f32 %v5362_v39, %v1614_v61  ;;  %v5443_v61 = vpop.f32.mrf.mxu2 }
 0x867   : > { %v3135_v35 = vsel %vm2996_vm8, %v3134_v51, %v3133_v40  ;;  %v1794_v40 = vmax.f32 %v1615_v30, 0.0 }
 0x868   : > { %v3137_v50 = vsel %vm3000_vm9, %v3136_v53, %v3135_v35  ;;  %v5431_v53 = vpop.xlane.xlu0 %2144 }
 0x869   : > { %v3139_v9 = vsel %vm3004_vm10, %v3138_v25, %v3137_v50  ;;  %v1926_v25 = vmul.f32 %v5304_v32, %v1794_v40  ;;  %v2406_v50 = vadd.f32 %v5952_v23, %v5356_v6 }
 0x86d   : > { %v2812_v49 = vpop.permute.xlu2 %2811  ;;  %v5446_v30 = vpop.f32.mrf.mxu2 }
 0x86e   : > { %v3144_v62 = vperm.slane %v2812_v49, %v5095_v14  ;;  %v1786_v49 = vmax.f32 %v1591_v5, 0.0 }
 0x870   : > { %v1918_v42 = vmul.f32 %v5304_v32, %v1786_v49 }
 0x874   : > { %2142 = vadd.xlane.f32.xlu2 %v1919_v3 }
 0x878   : > { %2814 = vperm.xlu1 %3566, %v2401_v55  }
 0x879   : > { %2156 = vadd.xlane.f32.xlu0 %v1926_v25 }
 0x87e   : > { %v5434_v51 = vpop.permute.xlu0 %2826 }
 0x88c   : > { %2829 = vperm.xlu2 %3565, %v2406_v50   ;;  %v5998_v50 = vld [vmem:[#allocation59_spill] sm:$0xff] }
 0x88f   : > { %v2129_v63 = vpop.xlane.xlu1 %2128 }
 0x890   : > { %v2411_v3 = vadd.f32 %v3966_v20, %v2129_v63  ;;  %v1603_v63 = vadd.f32 %v5362_v39, %v5998_v50 }
 0x892   : > { %2844 = vperm.xlu0 %3567, %v2411_v3   ;;  %v1790_v49 = vmax.f32 %v1603_v63, 0.0  ;;  %v2409_v63 = vadd.f32 %v4007_v4, %v5387_v44 }
 0x8a2   : > { %2140 = vadd.xlane.f32.xlu1 %v1918_v42  ;;  %v1623_v42 = vpop.f32.mrf.mxu2 }
 0x8a6   : > { %v5448_v40 = vpop.xlane.xlu2 %2136 }
 0x8a7   : > { %v2806_v55 = vpop.permute.xlu1 %2805 }
 0x8a8   : > { %v3140_v6 = vperm.slane %v2806_v55, %v5052_v60  ;;  %v1624_v55 = vadd.f32 %v5362_v39, %v1623_v42 }
 0x8a9   : > { %v5467_v50 = vpop.xlane.xlu0 %2150 }
 0x8aa   : > { %v3141_v25 = vsel %vm5975_vm11, %v3140_v6, %v3139_v9  ;;  %v1922_v9 = vmul.f32 %v5304_v32, %v1790_v49  ;;  %v1797_v6 = vmax.f32 %v1624_v55, 0.0  ;;  %v1600_v49 = vadd.f32 %v5362_v39, %v5999_v56  ;;  %v5479_v42 = vpop.f32.mrf.mxu2 }
 0x8ab   : > { %v3143_v3 = vsel %vm3012_vm12, %v3142_v8, %v3141_v25  ;;  %v6001_v56 = vperm.slane %v5405_v37, %v4960_v15 }
 0x8ac   : > { %v3145_v36 = vsel %vm3016_vm13, %v3144_v62, %v3143_v3  ;;  %v1929_v8 = vmul.f32 %v5304_v32, %v1797_v6  ;;  %v1789_v55 = vmax.f32 %v1600_v49, 0.0 }
 0x8ae   : > { %v5459_v5 = vpop.permute.xlu2 %2820 }
 0x8af   : > { %v3150_v35 = vperm.slane %v5459_v5, %v4925_v16 }
 0x8b5   : > { %2148 = vadd.xlane.f32.xlu2 %v1922_v9  ;;  %v1921_v9 = vmul.f32 %v5304_v32, %v1789_v55 }
 0x8bb   : > { %2823 = vperm.xlu1 %3566, %v2404_v22   ;;  %v5484_v22 = vpop.f32.mrf.mxu2 }
 0x8bc   : > { %2162 = vadd.xlane.f32.xlu0 %v1929_v8 }
 0x8c1   : > { %v5470_v62 = vpop.permute.xlu0 %2835 }
 0x8cd   : > { %2838 = vperm.xlu2 %3565, %v2409_v63   ;;  %v6000_v63 = vld [vmem:[#allocation62_spill] sm:$0xff] }
 0x8d2   : > { %v2135_v3 = vpop.xlane.xlu1 %2134 }
 0x8d3   : > { %v2414_v5 = vadd.f32 %v5961_v28, %v2135_v3  ;;  %v1612_v3 = vadd.f32 %v5362_v39, %v6000_v63  ;;  %v1632_v28 = vpop.f32.mrf.mxu2 }
 0x8d4   : > { %v1633_v63 = vadd.f32 %v5362_v39, %v1632_v28 }
 0x8d5   : > { %2853 = vperm.xlu0 %3567, %v2414_v5   ;;  %v1793_v25 = vmax.f32 %v1612_v3, 0.0 }
 0x8d6   : > { %v1800_v4 = vmax.f32 %v1633_v63, 0.0 }
 0x8e5   : > { %2146 = vadd.xlane.f32.xlu1 %v1921_v9 }
 0x8e7   : > { %v5482_v6 = vpop.xlane.xlu2 %2142 }
 0x8ea   : > { %v2815_v8 = vpop.permute.xlu1 %2814 }
 0x8eb   : > { %v3146_v44 = vperm.slane %v2815_v8, %v5079_v41  ;;  %v1925_v8 = vmul.f32 %v5304_v32, %v1793_v25  ;;  %v2412_v25 = vadd.f32 %v5964_v21, %v5416_v0  ;;  %v1621_v0 = vadd.f32 %v5362_v39, %v5446_v30 }
 0x8ec   : > { %v5502_v37 = vpop.xlane.xlu0 %2156 }
 0x8ed   : > { %v3147_v5 = vsel %vm3020_vm14, %v3146_v44, %v3145_v36  ;;  %v2407_v36 = vadd.f32 %v5980_v57, %v5310_v2  ;;  %v1932_v44 = vmul.f32 %v5304_v32, %v1800_v4  ;;  %v6002_v2 = vld [vmem:[#allocation61_spill] sm:$0xff] }
 0x8ee   : > { %v3149_v49 = vsel %vm3024_vm15, %v6001_v56, %v3147_v5  ;;  %v1609_v56 = vadd.f32 %v5362_v39, %v6002_v2  ;;  %v6003_v2 = vperm.slane %v5434_v51, %v4943_v1 }
 0x8ef   : > { %v5495_v55 = vsel %vm3249_vm0, %v3149_v49, %v5325_v31  ;;  %v2830_v9 = vpop.permute.xlu2 %2829  ;;  %v5514_v49 = vpop.f32.mrf.mxu2  ;;  %vm3251_vm0 = vcmask 1045509  }
 0x8f0   : > { %v3155_v11 = vperm.slane %v2830_v9, %v4952_v59  ;;  %v1792_v4 = vmax.f32 %v1609_v56, 0.0 }
 0x8f2   : > { %v1924_v9 = vmul.f32 %v5304_v32, %v1792_v4 }
 0x8f6   : > { %2154 = vadd.xlane.f32.xlu2 %v1925_v8 }
 0x8f7   : > { %v5519_v63 = vpop.f32.mrf.mxu2 }
 0x8fe   : > { %2832 = vperm.xlu1 %3566, %v2407_v36  }
 0x8ff   : > { %2168 = vadd.xlane.f32.xlu0 %v1932_v44 }
 0x904   : > { %v5505_v31 = vpop.permute.xlu0 %2844 }
 0x90e   : > { %2847 = vperm.xlu2 %3565, %v2412_v25  }
 0x915   : > { %v2141_v28 = vpop.xlane.xlu1 %2140 }
 0x916   : > { %v2417_v5 = vadd.f32 %v5968_v19, %v2141_v28  ;;  %v1641_v19 = vpop.f32.mrf.mxu2 }
 0x917   : > { %v1642_v30 = vadd.f32 %v5362_v39, %v1641_v19 }
 0x918   : > { %2862 = vperm.xlu0 %3567, %v2417_v5   ;;  %v1796_v5 = vmax.f32 %v1621_v0, 0.0 }
 0x91a   : > { %v1928_v3 = vmul.f32 %v5304_v32, %v1796_v5 }
 0x928   : > { %v5517_v8 = vpop.xlane.xlu2 %2148  ;;  %2152 = vadd.xlane.f32.xlu1 %v1924_v9 }
 0x92d   : > { %v2824_v36 = vpop.permute.xlu1 %2823 }
 0x92e   : > { %v3151_v44 = vperm.slane %v2824_v36, %v4930_v52  ;;  %v1803_v36 = vmax.f32 %v1642_v30, 0.0  ;;  %v1630_v30 = vadd.f32 %v5362_v39, %v5484_v22 }
 0x92f   : > { %v5535_v0 = vpop.xlane.xlu0 %2162 }
 0x930   : > { %v3152_v25 = vsel %vm2968_vm1, %v3151_v44, %v3150_v35  ;;  %v2839_v28 = vpop.permute.xlu2 %2838  ;;  %v2410_v35 = vadd.f32 %v5985_v10, %v5338_v43  ;;  %v1935_v51 = vmul.f32 %v5304_v32, %v1803_v36  ;;  %v1618_v43 = vadd.f32 %v5362_v39, %v5443_v61 }
 0x931   : > { %v3154_v56 = vsel %vm2972_vm2, %v6003_v2, %v3152_v25  ;;  %v3161_v4 = vperm.slane %v2839_v28, %v4986_v17  ;;  %v5547_v28 = vpop.f32.mrf.mxu2 }
 0x932   : > { %v3156_v9 = vsel %vm2976_vm3, %v3155_v11, %v3154_v56  ;;  %v1795_v5 = vmax.f32 %v1618_v43, 0.0 }
 0x934   : > { %v1927_v2 = vmul.f32 %v5304_v32, %v1795_v5 }
 0x937   : > { %2160 = vadd.xlane.f32.xlu2 %v1928_v3  ;;  %v2415_v3 = vadd.f32 %v5971_v48, %v5448_v40 }
 0x939   : > { %v5554_v40 = vpop.f32.mrf.mxu2 }
 0x941   : > { %2841 = vperm.xlu1 %3566, %v2410_v35  }
 0x942   : > { %2174 = vadd.xlane.f32.xlu0 %v1935_v51 }
 0x947   : > { %v5538_v44 = vpop.permute.xlu0 %2853 }
 0x94f   : > { %2856 = vperm.xlu2 %3565, %v2415_v3   ;;  %v1799_v3 = vmax.f32 %v1630_v30, 0.0  ;;  %v2413_v30 = vadd.f32 %v3969_v24, %v5373_v58  ;;  %v1627_v58 = vadd.f32 %v5362_v39, %v5479_v42 }
 0x951   : > { %v1931_v22 = vmul.f32 %v5304_v32, %v1799_v3 }
 0x958   : > { %v2147_v19 = vpop.xlane.xlu1 %2146 }
 0x959   : > { %v2420_v25 = vadd.f32 %v5973_v33, %v2147_v19 }
 0x95b   : > { %2871 = vperm.xlu0 %3567, %v2420_v25   ;;  %v6004_v25 = vperm.slane %v5470_v62, %v4979_v46 }
 0x969   : > { %v5550_v56 = vpop.xlane.xlu2 %2154 }
 0x96b   : > { %2158 = vadd.xlane.f32.xlu1 %v1927_v2  ;;  %v1650_v2 = vpop.f32.mrf.mxu2 }
 0x96c   : > { %v1651_v11 = vadd.f32 %v5362_v39, %v1650_v2  ;;  %v1639_v2 = vadd.f32 %v5362_v39, %v5519_v63 }
 0x970   : > { %v2833_v36 = vpop.permute.xlu1 %2832 }
 0x971   : > { %v3157_v35 = vperm.slane %v2833_v36, %v4957_v13  ;;  %v2848_v51 = vpop.permute.xlu2 %2847  ;;  %v1806_v36 = vmax.f32 %v1651_v11, 0.0 }
 0x972   : > { %v3167_v61 = vperm.slane %v2848_v51, %v5024_v54  ;;  %v5568_v51 = vpop.xlane.xlu0 %2168 }
 0x973   : > { %v3158_v19 = vsel %vm2980_vm4, %v3157_v35, %v3156_v9  ;;  %v1938_v9 = vmul.f32 %v5304_v32, %v1806_v36  ;;  %v2418_v35 = vadd.f32 %v5978_v7, %v5482_v6 }
 0x974   : > { %v3160_v43 = vsel %vm2984_vm5, %v6004_v25, %v3158_v19  ;;  %v5580_v19 = vpop.f32.mrf.mxu2  ;;  %v1798_v25 = vmax.f32 %v1627_v58, 0.0  ;;  %v6005_v58 = vperm.slane %v5505_v31, %v5016_v45 }
 0x975   : > { %v3162_v5 = vsel %vm2988_vm6, %v3161_v4, %v3160_v43 }
 0x978   : > { %2166 = vadd.xlane.f32.xlu2 %v1931_v22  ;;  %v1930_v22 = vmul.f32 %v5304_v32, %v1798_v25 }
 0x97c   : > { %v5587_v6 = vpop.f32.mrf.mxu2 }
 0x984   : > { %2850 = vperm.xlu1 %3566, %v2413_v30   ;;  %v1802_v30 = vmax.f32 %v1639_v2, 0.0 }
 0x985   : > { %2180 = vadd.xlane.f32.xlu0 %v1938_v9 }
 0x98a   : > { %v5571_v62 = vpop.permute.xlu0 %2862 }
 0x990   : > { %2865 = vperm.xlu2 %3565, %v2418_v35  }
 0x99b   : > { %v2153_v3 = vpop.xlane.xlu1 %2152 }
 0x99c   : > { %v2423_v11 = vadd.f32 %v5980_v57, %v2153_v3 }
 0x99e   : > { %2880 = vperm.xlu0 %3567, %v2423_v11   ;;  %v1934_v11 = vmul.f32 %v5304_v32, %v1802_v30 }
 0x9aa   : > { %v5582_v43 = vpop.xlane.xlu2 %2160 }
 0x9ae   : > { %2164 = vadd.xlane.f32.xlu1 %v1930_v22  ;;  %v1659_v22 = vpop.f32.mrf.mxu2 }
 0x9af   : > { %v1660_v2 = vadd.f32 %v5362_v39, %v1659_v22  ;;  %v1648_v22 = vadd.f32 %v5362_v39, %v5554_v40 }
 0x9b1   : > { %v1809_v4 = vmax.f32 %v1660_v2, 0.0  ;;  %v1805_v2 = vmax.f32 %v1648_v22, 0.0 }
 0x9b2   : > { %v2857_v36 = vpop.permute.xlu2 %2856 }
 0x9b3   : > { %v3173_v9 = vperm.slane %v2857_v36, %v5067_v38  ;;  %v2842_v35 = vpop.permute.xlu1 %2841  ;;  %v2416_v36 = vadd.f32 %v3972_v26, %v5403_v29  ;;  %v1636_v29 = vadd.f32 %v5362_v39, %v5514_v49  ;;  %v1937_v49 = vmul.f32 %v5304_v32, %v1805_v2 }
 0x9b4   : > { %v3163_v42 = vperm.slane %v2842_v35, %v5001_v47 }
 0x9b5   : > { %v5601_v35 = vpop.xlane.xlu0 %2174 }
 0x9b6   : > { %v3164_v3 = vsel %vm2992_vm7, %v3163_v42, %v3162_v5  ;;  %v1941_v5 = vmul.f32 %v5304_v32, %v1809_v4  ;;  %v1801_v4 = vmax.f32 %v1636_v29, 0.0  ;;  %v6006_v29 = vperm.slane %v5538_v44, %v5052_v60 }
 0x9b7   : > { %v3166_v25 = vsel %vm2996_vm8, %v6005_v58, %v3164_v3  ;;  %v2424_v44 = vadd.f32 %v5948_v12, %v5550_v56  ;;  %v1657_v56 = vadd.f32 %v5362_v39, %v5587_v6  ;;  %v6007_v6 = vperm.slane %v5571_v62, %v5079_v41 }
 0x9b8   : > { %v3168_v63 = vsel %vm3000_vm9, %v3167_v61, %v3166_v25  ;;  %v2421_v61 = vadd.f32 %v5983_v27, %v5517_v8  ;;  %v1933_v25 = vmul.f32 %v5304_v32, %v1801_v4  ;;  %v2427_v62 = vadd.f32 %v3966_v20, %v5582_v43 }
 0x9b9   : > { %2172 = vadd.xlane.f32.xlu2 %v1934_v11  ;;  %v5613_v11 = vpop.f32.mrf.mxu2 }
 0x9c7   : > { %2859 = vperm.xlu1 %3566, %v2416_v36   ;;  %v1665_v36 = vpop.f32.mrf.mxu2 }
 0x9c8   : > { %2186 = vadd.xlane.f32.xlu0 %v1941_v5 }
 0x9cd   : > { %v5604_v30 = vpop.permute.xlu0 %2871 }
 0x9d1   : > { %2874 = vperm.xlu2 %3565, %v2421_v61  }
 0x9de   : > { %v2159_v42 = vpop.xlane.xlu1 %2158 }
 0x9df   : > { %v2426_v3 = vadd.f32 %v5985_v10, %v2159_v42 }
 0x9e1   : > { %2889 = vperm.xlu0 %3567, %v2426_v3  }
 0x9eb   : > { %v5615_v58 = vpop.xlane.xlu2 %2166 }
 0x9f1   : > { %2170 = vadd.xlane.f32.xlu1 %v1933_v25  ;;  %v1668_v25 = vpop.f32.mrf.mxu2 }
 0x9f2   : > { %v1669_v22 = vadd.f32 %v5362_v39, %v1668_v25 }
 0x9f3   : > { %v2866_v8 = vpop.permute.xlu2 %2865 }
 0x9f4   : > { %v3179_v5 = vperm.slane %v2866_v8, %v4960_v15  ;;  %v1812_v31 = vmax.f32 %v1669_v22, 0.0  ;;  %v2419_v8 = vadd.f32 %v5962_v18, %v5431_v53  ;;  %v1645_v53 = vadd.f32 %v5362_v39, %v5547_v28 }
 0x9f5   : > { %v1808_v22 = vmax.f32 %v1657_v56, 0.0 }
 0x9f6   : > { %v2851_v61 = vpop.permute.xlu1 %2850  ;;  %v1944_v2 = vmul.f32 %v5304_v32, %v1812_v31 }
 0x9f7   : > { %v3169_v42 = vperm.slane %v2851_v61, %v5037_v34 }
 0x9f8   : > { %v5632_v61 = vpop.xlane.xlu0 %2180 }
 0x9f9   : > { %v3170_v3 = vsel %vm3004_vm10, %v3169_v42, %v3168_v63  ;;  %v5646_v31 = vpop.f32.mrf.mxu2 }
 0x9fa   : > { %v3172_v4 = vsel %vm5975_vm11, %v6006_v29, %v3170_v3  ;;  %2178 = vadd.xlane.f32.xlu2 %v1937_v49  ;;  %v1804_v29 = vmax.f32 %v1645_v53, 0.0 }
 0x9fb   : > { %v3174_v40 = vsel %vm3012_vm12, %v3173_v9, %v3172_v4 }
 0x9fc   : > { %v1936_v4 = vmul.f32 %v5304_v32, %v1804_v29 }
 0xa0a   : > { %2868 = vperm.xlu1 %3566, %v2419_v8  }
 0xa0b   : > { %2192 = vadd.xlane.f32.xlu0 %v1944_v2  ;;  %v1674_v2 = vpop.f32.mrf.mxu2 }
 0xa10   : > { %v5637_v63 = vpop.permute.xlu0 %2880 }
 0xa11   : > { %v3188_v9 = vperm.slane %v5637_v63, %v4957_v13  ;;  %v1672_v63 = vadd.f32 %v5362_v39, %v5646_v31 }
 0xa12   : > { %2883 = vperm.xlu2 %3565, %v2424_v44   ;;  %v1940_v44 = vmul.f32 %v5304_v32, %v1808_v22 }
 0xa21   : > { %v2165_v42 = vpop.xlane.xlu1 %2164 }
 0xa22   : > { %v2429_v49 = vadd.f32 %v3969_v24, %v2165_v42 }
 0xa24   : > { %2898 = vperm.xlu0 %3567, %v2429_v49  }
 0xa2c   : > { %v5644_v3 = vpop.xlane.xlu2 %2172 }
 0xa34   : > { %v2875_v25 = vpop.permute.xlu2 %2874  ;;  %2176 = vadd.xlane.f32.xlu1 %v1936_v4  ;;  %v1677_v4 = vpop.f32.mrf.mxu2 }
 0xa35   : > { %v3184_v8 = vperm.slane %v2875_v25, %v4943_v1  ;;  %v1678_v25 = vadd.f32 %v5362_v39, %v1677_v4 }
 0xa37   : > { %v1815_v22 = vmax.f32 %v1678_v25, 0.0 }
 0xa39   : > { %v2860_v42 = vpop.permute.xlu1 %2859 }
 0xa3a   : > { %v3175_v28 = vperm.slane %v2860_v42, %v5095_v14 }
 0xa3b   : > { %2184 = vadd.xlane.f32.xlu2 %v1940_v44  ;;  %v2422_v44 = vadd.f32 %v5952_v23, %v5467_v50  ;;  %v5666_v42 = vpop.xlane.xlu0 %2186  ;;  %v1654_v50 = vadd.f32 %v5362_v39, %v5580_v19  ;;  %v6008_v19 = vperm.slane %v5604_v30, %v4930_v52 }
 0xa3c   : > { %v3176_v49 = vsel %vm3016_vm13, %v3175_v28, %v3174_v40  ;;  %v1947_v40 = vmul.f32 %v5304_v32, %v1815_v22 }
 0xa3d   : > { %v3178_v53 = vsel %vm3020_vm14, %v6007_v6, %v3176_v49 }
 0xa3e   : > { %v3180_v29 = vsel %vm3024_vm15, %v3179_v5, %v3178_v53  ;;  %v1807_v53 = vmax.f32 %v1654_v50, 0.0 }
 0xa3f   : > { %v5661_v56 = vsel %vm3251_vm0, %v3180_v29, %v5495_v55  ;;  %v1666_v29 = vadd.f32 %v5362_v39, %v1665_v36  ;;  %vm3253_vm0 = vcmask 1046534  }
 0xa40   : > { %v1939_v43 = vmul.f32 %v5304_v32, %v1807_v53 }
 0xa41   : > { %v1811_v25 = vmax.f32 %v1666_v29, 0.0  ;;  %v6010_v29 = vld [vmem:[#allocation16_spill] sm:$0xff] }
 0xa4d   : > { %2877 = vperm.xlu1 %3566, %v2422_v44   ;;  %v1943_v44 = vmul.f32 %v5304_v32, %v1811_v25 }
 0xa4e   : > { %2198 = vadd.xlane.f32.xlu0 %v1947_v40 }
 0xa53   : > { %2892 = vperm.xlu2 %3565, %v2427_v62   ;;  %v5671_v5 = vpop.permute.xlu0 %2889 }
 0xa54   : > { %v3194_v55 = vperm.slane %v5671_v5, %v5001_v47 }
 0xa64   : > { %v2171_v28 = vpop.xlane.xlu1 %2170 }
 0xa65   : > { %v2432_v49 = vadd.f32 %v3972_v26, %v2171_v28 }
 0xa67   : > { %2907 = vperm.xlu0 %3567, %v2432_v49   ;;  %v6009_v49 = vld [vmem:[#allocation14_spill] sm:$0xff] }
 0xa68   : > { %v2425_v50 = vadd.f32 %v6009_v49, %v5502_v37  ;;  %v1663_v37 = vadd.f32 %v5362_v39, %v5613_v11 }
 0xa6d   : > { %v5678_v6 = vpop.xlane.xlu2 %2178 }
 0xa75   : > { %v2884_v4 = vpop.permute.xlu2 %2883 }
 0xa76   : > { %v3190_v22 = vperm.slane %v2884_v4, %v4979_v46 }
 0xa77   : > { %2182 = vadd.xlane.f32.xlu1 %v1939_v43  ;;  %v2430_v43 = vadd.f32 %v6010_v29, %v5615_v58 }
 0xa7c   : > { %2190 = vadd.xlane.f32.xlu2 %v1943_v44  ;;  %v2869_v40 = vpop.permute.xlu1 %2868 }
 0xa7d   : > { %v3181_v62 = vperm.slane %v2869_v40, %v4925_v16  ;;  %v1675_v40 = vadd.f32 %v5362_v39, %v1674_v2 }
 0xa7e   : > { %v5692_v53 = vpop.xlane.xlu0 %2192 }
 0xa7f   : > { %v3183_v28 = vsel %vm2968_vm1, %v6008_v19, %v3181_v62  ;;  %v1810_v62 = vmax.f32 %v1663_v37, 0.0  ;;  %v6011_v37 = vld [vmem:[#allocation17_spill] sm:$0xff] }
 0xa80   : > { %v3185_v36 = vsel %vm2972_vm2, %v3184_v8, %v3183_v28  ;;  %v1814_v28 = vmax.f32 %v1675_v40, 0.0  ;;  %v2433_v40 = vadd.f32 %v6011_v37, %v5644_v3 }
 0xa90   : > { %2886 = vperm.xlu1 %3566, %v2425_v50   ;;  %v1942_v50 = vmul.f32 %v5304_v32, %v1810_v62  ;;  %v1680_v62 = vpop.f32.mrf.mxu2 }
 0xa94   : > { %2901 = vperm.xlu2 %3565, %v2430_v43   ;;  %v1946_v43 = vmul.f32 %v5304_v32, %v1814_v28 }
 0xa96   : > { %v5696_v4 = vpop.permute.xlu0 %2898 }
 0xa98   : > { %v1683_v28 = vpop.f32.mrf.mxu2 }
 0xaa7   : > { %v2177_v30 = vpop.xlane.xlu1 %2176 }
 0xaa8   : > { %v2435_v44 = vadd.f32 %v5962_v18, %v2177_v30 }
 0xaaa   : > { %2916 = vperm.xlu0 %3567, %v2435_v44   ;;  %v2428_v44 = vadd.f32 %v5964_v21, %v5535_v0 }
 0xaae   : > { %v2185_v8 = vpop.xlane.xlu2 %2184 }
 0xab6   : > { %v2893_v19 = vpop.permute.xlu2 %2892 }
 0xab7   : > { %v3196_v58 = vperm.slane %v2893_v19, %v5016_v45 }
 0xaba   : > { %2188 = vadd.xlane.f32.xlu1 %v1942_v50 }
 0xabd   : > { %2196 = vadd.xlane.f32.xlu2 %v1946_v43 }
 0xabf   : > { %v2878_v25 = vpop.permute.xlu1 %2877 }
 0xac0   : > { %v3186_v18 = vperm.slane %v2878_v25, %v4952_v59 }
 0xac2   : > { %v3187_v30 = vsel %vm2976_vm3, %v3186_v18, %v3185_v36 }
 0xac3   : > { %v3189_v11 = vsel %vm2980_vm4, %v3188_v9, %v3187_v30  ;;  %v1684_v9 = vadd.f32 %v5362_v39, %v1683_v28 }
 0xac4   : > { %v3191_v2 = vsel %vm2984_vm5, %v3190_v22, %v3189_v11  ;;  %v1813_v22 = vmax.f32 %v1672_v63, 0.0 }
 0xac5   : > { %v1817_v0 = vmax.f32 %v1684_v9, 0.0 }
 0xac6   : > { %v1945_v3 = vmul.f32 %v5304_v32, %v1813_v22  ;;  %v2443_v22 = vadd.f32 %v3966_v20, %v5692_v53 }
 0xac7   : > { %v1949_v18 = vmul.f32 %v5304_v32, %v1817_v0 }
 0xad3   : > { %2895 = vperm.xlu1 %3566, %v2428_v44  }
 0xad5   : > { %2910 = vperm.xlu2 %3565, %v2433_v40   ;;  %v2431_v40 = vadd.f32 %v5971_v48, %v5568_v51  ;;  %v1681_v51 = vadd.f32 %v5362_v39, %v1680_v62  ;;  %v2434_v39 = vadd.f32 %v5978_v7, %v5601_v35  ;;  %v2440_v62 = vadd.f32 %v5948_v12, %v5666_v42  ;;  %v2199_v35 = vpop.xlane.xlu0 %2198 }
 0xadd   : > { %v2908_v42 = vpop.permute.xlu0 %2907 }
 0xaea   : > { %v2183_v19 = vpop.xlane.xlu1 %2182 }
 0xaeb   : > { %v2438_v25 = vadd.f32 %v5952_v23, %v2183_v19  ;;  %v2436_v19 = vadd.f32 %v5973_v33, %v5678_v6  ;;  %v1816_v6 = vmax.f32 %v1681_v51, 0.0 }
 0xaed   : > { %2925 = vperm.xlu0 %3567, %v2438_v25   ;;  %v2439_v25 = vadd.f32 %v5980_v57, %v2185_v8  ;;  %v1948_v57 = vmul.f32 %v5304_v32, %v1816_v6  ;;  %v2437_v32 = vadd.f32 %v5983_v27, %v5632_v61  ;;  %v2446_v27 = vadd.f32 %v6010_v29, %v2199_v35  ;;  %v6013_v61 = vld [vmem:[#allocation65_spill] sm:$0xff] }
 0xaee   : > { %v2449_v12 = vadd.f32 %v6011_v37, %v6013_v61 }
 0xaef   : > { %v2191_v36 = vpop.xlane.xlu2 %2190 }
 0xaf7   : > { %v2902_v50 = vpop.permute.xlu2 %2901 }
 0xaf8   : > { %v3202_v43 = vperm.slane %v2902_v50, %v5052_v60 }
 0xafd   : > { %2194 = vadd.xlane.f32.xlu1 %v1945_v3 }
 0xafe   : > { %2202 = vadd.xlane.f32.xlu2 %v1949_v18 }
 0xb02   : > { %v2887_v23 = vpop.permute.xlu1 %2886 }
 0xb03   : > { %v3192_v30 = vperm.slane %v2887_v23, %v4986_v17 }
 0xb05   : > { %v3193_v11 = vsel %vm2988_vm6, %v3192_v30, %v3191_v2  ;;  %v2442_v2 = vadd.f32 %v5985_v10, %v2191_v36  ;;  %v6014_v30 = vld [vmem:[#allocation18_spill] sm:$0xff] }
 0xb06   : > { %v3195_v31 = vsel %vm2992_vm7, %v3194_v55, %v3193_v11  ;;  %v2450_v37 = vadd.f32 %v5978_v7, %v6014_v30 }
 0xb07   : > { %v3197_v44 = vsel %vm2996_vm8, %v3196_v58, %v3195_v31 }
 0xb16   : > { %2919 = vperm.xlu2 %3565, %v2436_v19   ;;  %2904 = vperm.xlu1 %3566, %v2431_v40  }
 0xb1e   : > { %2928 = vperm.xlu2 %3565, %v2439_v25  }
 0xb26   : > { %2937 = vperm.xlu2 %3565, %v2442_v2   ;;  %v2917_v2 = vpop.permute.xlu0 %2916 }
 0xb27   : > { %v3212_v7 = vperm.slane %v2917_v2, %v4925_v16 }
 0xb2d   : > { %v2189_v28 = vpop.xlane.xlu1 %2188 }
 0xb2e   : > { %v2441_v5 = vadd.f32 %v6009_v49, %v2189_v28  ;;  %v6012_v49 = vperm.slane %v5696_v4, %v5037_v34 }
 0xb30   : > { %v2197_v55 = vpop.xlane.xlu2 %2196  ;;  %2934 = vperm.xlu0 %3567, %v2441_v5  }
 0xb31   : > { %v2445_v58 = vadd.f32 %v3969_v24, %v2197_v55 }
 0xb33   : > { %2946 = vperm.xlu2 %3565, %v2445_v58  }
 0xb38   : > { %v2911_v63 = vpop.permute.xlu2 %2910 }
 0xb39   : > { %v3208_v33 = vperm.slane %v2911_v63, %v5079_v41 }
 0xb40   : > { %2200 = vadd.xlane.f32.xlu1 %v1948_v57 }
 0xb45   : > { %v2896_v8 = vpop.permute.xlu1 %2895 }
 0xb46   : > { %v3198_v10 = vperm.slane %v2896_v8, %v5024_v54 }
 0xb48   : > { %v3199_v36 = vsel %vm3000_vm9, %v3198_v10, %v3197_v44 }
 0xb49   : > { %v3201_v24 = vsel %vm3004_vm10, %v6012_v49, %v3199_v36 }
 0xb4a   : > { %v3203_v9 = vsel %vm5975_vm11, %v3202_v43, %v3201_v24 }
 0xb59   : > { %2913 = vperm.xlu1 %3566, %v2434_v39  }
 0xb5f   : > { %v2926_v55 = vpop.permute.xlu0 %2925 }
 0xb61   : > { %2922 = vperm.xlu1 %3566, %v2437_v32  }
 0xb69   : > { %2931 = vperm.xlu1 %3566, %v2440_v62  }
 0xb70   : > { %v2195_v4 = vpop.xlane.xlu1 %2194 }
 0xb71   : > { %v2444_v50 = vadd.f32 %v5964_v21, %v2195_v4  ;;  %v2203_v0 = vpop.xlane.xlu2 %2202  ;;  %2940 = vperm.xlu1 %3566, %v2443_v22   ;;  %v3206_v21 = vperm.slane %v2908_v42, %v5095_v14 }
 0xb72   : > { %v2448_v43 = vadd.f32 %v3972_v26, %v2203_v0 }
 0xb73   : > { %2943 = vperm.xlu0 %3567, %v2444_v50  }
 0xb74   : > { %2955 = vperm.xlu2 %3565, %v2448_v43  }
 0xb79   : > { %2949 = vperm.xlu1 %3566, %v2446_v27   ;;  %v2920_v19 = vpop.permute.xlu2 %2919 }
 0xb81   : > { %2958 = vperm.xlu1 %3566, %v2449_v12   ;;  %v2929_v28 = vpop.permute.xlu2 %2928 }
 0xb88   : > { %v2905_v3 = vpop.permute.xlu1 %2904 }
 0xb89   : > { %v3204_v20 = vperm.slane %v2905_v3, %v5067_v38  ;;  %v2938_v6 = vpop.permute.xlu2 %2937 }
 0xb8b   : > { %v3205_v53 = vsel %vm3012_vm12, %v3204_v20, %v3203_v9  ;;  %v3225_v9 = vperm.slane %v2938_v6, %v5001_v47 }
 0xb8c   : > { %v3207_v26 = vsel %vm3016_vm13, %v3206_v21, %v3205_v53 }
 0xb8d   : > { %v3209_v18 = vsel %vm3020_vm14, %v3208_v33, %v3207_v26  ;;  %v3217_v33 = vperm.slane %v2926_v55, %v4952_v59 }
 0xb91   : > { %v2947_v39 = vpop.permute.xlu2 %2946 }
 0xb92   : > { %v3231_v4 = vperm.slane %v2947_v39, %v5037_v34 }
 0xbb3   : > { %v2201_v23 = vpop.xlane.xlu1 %2200 }
 0xbb4   : > { %v2447_v29 = vadd.f32 %v5971_v48, %v2201_v23  ;;  %v3213_v48 = vperm.slane %v2920_v19, %v4930_v52  ;;  %v3219_v52 = vperm.slane %v2929_v28, %v4957_v13 }
 0xbb6   : > { %2952 = vperm.xlu0 %3567, %v2447_v29   ;;  %v3214_v51 = vsel %vm2968_vm1, %v3213_v48, %v3212_v7  ;;  %vm6015_vm1 = vmmov %vm5975_vm11 }
 0xbbe   : > { %2961 = vperm.xlu0 %3567, %v2450_v37  }
 0xbcb   : > { %v2914_v11 = vpop.permute.xlu1 %2913 }
 0xbcc   : > { %v3210_v31 = vperm.slane %v2914_v11, %v4960_v15 }
 0xbce   : > { %v3211_v44 = vsel %vm3024_vm15, %v3210_v31, %v3209_v18  ;;  %v2956_v0 = vpop.permute.xlu2 %2955 }
 0xbcf   : > { %v3254_v40 = vsel %vm3253_vm0, %v3211_v44, %v5661_v56  ;;  %v2935_v56 = vpop.permute.xlu0 %2934  ;;  %v3237_v35 = vperm.slane %v2956_v0, %v5095_v14 }
 0xbd0   : > { %v3223_v36 = vperm.slane %v2935_v56, %v4986_v17 }
 0xbd3   : > { %v2923_v25 = vpop.permute.xlu1 %2922 }
 0xbd4   : > { %v3215_v58 = vperm.slane %v2923_v25, %v4943_v1 }
 0xbd6   : > { %v3216_v63 = vsel %vm2972_vm2, %v3215_v58, %v3214_v51  ;;  %vm3255_vm2 = vcmask 1047559  }
 0xbd7   : > { %v3218_v57 = vsel %vm2976_vm3, %v3217_v33, %v3216_v63 }
 0xbd8   : > { %v3220_v1 = vsel %vm2980_vm4, %v3219_v52, %v3218_v57 }
 0xbdb   : > { %v2932_v5 = vpop.permute.xlu1 %2931 }
 0xbdc   : > { %v3221_v8 = vperm.slane %v2932_v5, %v4979_v46 }
 0xbde   : > { %v3222_v16 = vsel %vm2984_vm5, %v3221_v8, %v3220_v1 }
 0xbdf   : > { %v3224_v49 = vsel %vm2988_vm6, %v3223_v36, %v3222_v16 }
 0xbe0   : > { %v3226_v46 = vsel %vm2992_vm7, %v3225_v9, %v3224_v49 }
 0xbe3   : > { %v2941_v10 = vpop.permute.xlu1 %2940 }
 0xbe4   : > { %v3227_v59 = vperm.slane %v2941_v10, %v5016_v45 }
 0xbe5   : > { %v2944_v24 = vpop.permute.xlu0 %2943 }
 0xbe6   : > { %v3229_v32 = vperm.slane %v2944_v24, %v5024_v54  ;;  %v3228_v62 = vsel %vm2996_vm8, %v3227_v59, %v3226_v46 }
 0xbe8   : > { %v3230_v22 = vsel %vm3000_vm9, %v3229_v32, %v3228_v62 }
 0xbe9   : > { %v3232_v47 = vsel %vm3004_vm10, %v3231_v4, %v3230_v22 }
 0xbeb   : > { %v2950_v13 = vpop.permute.xlu1 %2949 }
 0xbec   : > { %v3233_v17 = vperm.slane %v2950_v13, %v5052_v60 }
 0xbee   : > { %v3234_v54 = vsel %vm6015_vm1, %v3233_v17, %v3232_v47 }
 0xbf3   : > { %v2959_v27 = vpop.permute.xlu1 %2958 }
 0xbf4   : > { %v3239_v60 = vperm.slane %v2959_v27, %v5079_v41 }
 0xc28   : > { %v2953_v45 = vpop.permute.xlu0 %2952 }
 0xc29   : > { %v3235_v50 = vperm.slane %v2953_v45, %v5067_v38 }
 0xc2b   : > { %v3236_v43 = vsel %vm3012_vm12, %v3235_v50, %v3234_v54 }
 0xc2c   : > { %v3238_v34 = vsel %vm3016_vm13, %v3237_v35, %v3236_v43 }
 0xc2d   : > { %v3240_v12 = vsel %vm3020_vm14, %v3239_v60, %v3238_v34 }
 0xc30   : > { %v2962_v38 = vpop.permute.xlu0 %2961 }
 0xc31   : > { %v3241_v61 = vperm.slane %v2962_v38, %v4960_v15 }
 0xc33   : > { %v3242_v14 = vsel %vm3024_vm15, %v3241_v61, %v3240_v12 }
 0xc34   : > { %v3256_v42 = vsel %vm3255_vm2, %v3242_v14, %v3254_v40 }
 0xc35   : > { %3258 = vst [vmem:[%s218_s25] sm:$0xff] %v3256_v42 }
 0xc36   : > { %3607 = shalt.err (!%p3604_p3)
}
 0xc37   : > { %3509 = dma.vmem_to_hbm [thread:$0]  (%p3713_p5), %s3273_s26, 128, %s3275_s22, %s3260_s17  }
 0xc38 PF: > { %p3515_p4 = scmp.ge.s32.totalorder %s3642_s21, 2  ;;  %s3286_s12 = sand.u32 1, %s3630_s18  }
 0xc39   : > { %s3287_s13 = scalar_lea.sflag [#allocation3], %s3286_s12 }
 0xc3a   : > { %p3512_p7 = pnand %p3515_p4, %p3717_p6 }
 0xc3c   : > { %p3513_p8 = pneg %p3512_p7 }
 0xc3e   : > { %3625 = dma.done.wait (%p3513_p8), %s3287_s13, 128  }
 0xc3f   : > { %3627 = vsyncadd (%p3513_p8), %s3287_s13, 4294967168  ;;  %p15_p9 = scmp.ge.s32.totalorder %s3700_s24, 4   ;;  %s6016_s18 = smov %s3634_s19 }
 0xc40   : > { %s6017_s19 = smov %s3638_s20  ;;  %s6018_s20 = smov %s3711_s27 }
 0xc41   : > { %s6019_s21 = smov %s3700_s24  ;;  %17 = sbr.rel (!%p15_p9) target bundleno = 3 (0x3), region = 75 }
 0xc46   :  { %3293 = vsyncpa [#allocation3], 1 }
 0xc47   :  { %3295 = vsyncpa [#allocation3 + $0x1], 1 }

</bundles_post_ra>
